<compile_context>
chip_gen: v7x
topology: tpu7x:2x2x1
jax: 0.10.0
libtpu: 0.0.40
codegen_flags: <defaults>
</compile_context>

<pallas_src>
import math

import numpy as np
import jax
import jax.numpy as jnp
from jax import lax
from jax.experimental import pallas as pl
from jax.experimental.pallas import tpu as pltpu

D_MODEL = 32       # input_dim
NUM_HEADS = 4      # num_heads (must divide D_MODEL)
HEAD_DIM = D_MODEL // NUM_HEADS
FF_DIM = 64        # hidden_dim (dim_feedforward)
NUM_LAYERS = 6
LN_EPS = 1e-5

# vecs slab row layout (per layer, all rows are (D,)-wide):
#   0: bq (pre-scaled by 1/sqrt(head_dim))   1: bk   2: bv   3: bo   4: b2
#   5: ln1w   6: ln1b   7: ln2w   8: ln2b
N_VECS = 9


def encoder_kernel(x_ref, w_dd_ref, vecs_ref, w1_ref, b1_ref, w2_ref,
                   hmask_ref, bmask_ref, out_ref):
    f32 = jnp.float32
    N, D = x_ref.shape                       # (S*B, D), row = s*B + b

    x = x_ref[...]
    bmask = bmask_ref[...]                   # (N, N): 1.0 iff same batch element
    ones_nn = jnp.ones((N, N), f32)          # softmax row-sums on the MXU
    ones_dd = jnp.ones((D, D), f32)          # LayerNorm row-sums on the MXU
    inv_d = 1.0 / D
    nt = (((1,), (1,)), ((), ()))            # A @ B^T, no materialized transpose

    # Hoisted loop-invariant broadcasts (JAX does not CSE broadcast_in_dim).
    hm_all = hmask_ref[...]                  # (H, D) per-head lane masks
    hmask = [jnp.broadcast_to(hm_all[h:h + 1, :], (N, D)) for h in range(NUM_HEADS)]

    def layer_norm(y, w, b):
        # One-pass LN; both reductions are independent ones-matmuls (MXU, not XLU).
        mu = jnp.dot(y, ones_dd, preferred_element_type=f32) * inv_d
        ex2 = jnp.dot(y * y, ones_dd, preferred_element_type=f32) * inv_d
        rstd = lax.rsqrt(ex2 - mu * mu + LN_EPS)
        return (y - mu) * rstd * w + b

    for l in range(NUM_LAYERS):              # static, fully unrolled
        wl = w_dd_ref[l]                     # (4, D, D): wq*scale, wk, wv, wo
        lv = vecs_ref[l]                     # (N_VECS, D) per-layer vectors

        # --- multi-head self-attention (mask-based heads, zero lane shuffles) ----
        q = jnp.dot(x, wl[0], preferred_element_type=f32) + lv[0:1]   # scale folded in
        k = jnp.dot(x, wl[1], preferred_element_type=f32) + lv[1:2]
        v = jnp.dot(x, wl[2], preferred_element_type=f32) + lv[2:3]

        attn = None
        for h in range(NUM_HEADS):
            kh = k * hmask[h]                # only head-h lanes survive
            vh = v * hmask[h]
            s = lax.dot_general(q, kh, dimension_numbers=nt,
                                preferred_element_type=f32)           # (N, N)
            e = jnp.exp(s) * bmask           # zero cross-batch pairs (no max-subtract)
            den = jnp.dot(e, ones_nn, preferred_element_type=f32)     # row-sums, bcast
            pv = jnp.dot(e * pl.reciprocal(den, approx=False), vh,
                         preferred_element_type=f32)                  # head-h lanes only
            attn = pv if attn is None else attn + pv                  # sum == concat

        attn = jnp.dot(attn, wl[3], preferred_element_type=f32) + lv[3:4]
        x = layer_norm(x + attn, lv[5:6], lv[6:7])

        # --- feed-forward ----------------------------------------------------------
        ff = jnp.maximum(
            jnp.dot(x, w1_ref[l], preferred_element_type=f32) + b1_ref[l], 0.0)
        ff = jnp.dot(ff, w2_ref[l], preferred_element_type=f32) + lv[4:5]
        x = layer_norm(x + ff, lv[7:8], lv[8:9])

    out_ref[...] = x


@jax.jit
def perception_transformer_forward(x_sbd, packed):
    """x_sbd: (S, B, D) as in PyTorch (batch_first=False). Returns (S, B, D)."""
    S, B, D = x_sbd.shape
    assert D == D_MODEL
    N = S * B
    assert packed["bmask"].shape == (N, N)
    x2d = x_sbd.astype(jnp.float32).reshape(N, D)      # free leading-dim merge

    vmem = pl.BlockSpec(memory_space=pltpu.MemorySpace.VMEM)
    out = pl.pallas_call(
        encoder_kernel,
        out_shape=jax.ShapeDtypeStruct((N, D), jnp.float32),
        in_specs=[vmem] * 8,
        out_specs=vmem,
    )(x2d, packed["w_dd"], packed["vecs"], packed["w1"], packed["b1"],
      packed["w2"], packed["head_masks"], packed["bmask"])

    return out.reshape(S, B, D)                        # free leading-dim split


def pack_params(params, seq_len, batch):
    """One-time packing: weight transposes, scale folding, DMA-friendly slabs."""
    L, D, F = NUM_LAYERS, D_MODEL, FF_DIM
    scale = 1.0 / math.sqrt(HEAD_DIM)

    wqkv = params["wqkv"]                       # (L, 3D, D), PyTorch (out, in)
    wq, wk, wv = wqkv[:, :D, :], wqkv[:, D:2 * D, :], wqkv[:, 2 * D:, :]
    bqkv = params["bqkv"].reshape(L, 3 * D)
    bq, bk, bv = bqkv[:, :D], bqkv[:, D:2 * D], bqkv[:, 2 * D:]

    # (in, out) layout so the kernel only does x @ W; fold 1/sqrt(head_dim) into q.
    w_dd = jnp.stack([
        jnp.transpose(wq, (0, 2, 1)) * scale,
        jnp.transpose(wk, (0, 2, 1)),
        jnp.transpose(wv, (0, 2, 1)),
        jnp.transpose(params["wo"], (0, 2, 1)),
    ], axis=1).astype(jnp.float32)                                    # (L, 4, D, D)

    vecs = jnp.stack([
        bq * scale, bk, bv,
        params["bo"].reshape(L, D),
        params["b2"].reshape(L, D),
        params["ln1w"].reshape(L, D), params["ln1b"].reshape(L, D),
        params["ln2w"].reshape(L, D), params["ln2b"].reshape(L, D),
    ], axis=1).astype(jnp.float32)                                    # (L, 9, D)

    w1 = jnp.transpose(params["w1"], (0, 2, 1)).astype(jnp.float32)   # (L, D, F)
    w2 = jnp.transpose(params["w2"], (0, 2, 1)).astype(jnp.float32)   # (L, F, D)
    b1 = params["b1"].astype(jnp.float32)                             # (L, 1, F)

    head_masks = np.zeros((NUM_HEADS, D), np.float32)
    for h in range(NUM_HEADS):
        head_masks[h, h * HEAD_DIM:(h + 1) * HEAD_DIM] = 1.0

    n = seq_len * batch
    row_b = np.arange(n) % batch                                      # row = s*B + b
    bmask = (row_b[:, None] == row_b[None, :]).astype(np.float32)     # (N, N)

    return dict(w_dd=w_dd, vecs=vecs, w1=w1, b1=b1, w2=w2,
                head_masks=jnp.asarray(head_masks), bmask=jnp.asarray(bmask))


def init_params(key):
    """Deterministic synthetic parameters (PyTorch shapes: weight is (out, in))."""
    L, D, H = NUM_LAYERS, D_MODEL, FF_DIM
    keys = jax.random.split(key, 12)

    def w(k, shape, scale=0.1):
        return jax.random.normal(k, shape, jnp.float32) * scale

    return dict(
        wqkv=w(keys[0], (L, 3 * D, D)),        # in_proj_weight
        bqkv=w(keys[1], (L, 1, 3 * D), 0.02),  # in_proj_bias
        wo=w(keys[2], (L, D, D)),              # out_proj.weight
        bo=w(keys[3], (L, 1, D), 0.02),        # out_proj.bias
        ln1w=1.0 + w(keys[4], (L, 1, D), 0.02),
        ln1b=w(keys[5], (L, 1, D), 0.02),
        w1=w(keys[6], (L, H, D)),              # linear1.weight
        b1=w(keys[7], (L, 1, H), 0.02),        # linear1.bias
        w2=w(keys[8], (L, D, H)),              # linear2.weight
        b2=w(keys[9], (L, 1, D), 0.02),        # linear2.bias
        ln2w=1.0 + w(keys[10], (L, 1, D), 0.02),
        ln2b=w(keys[11], (L, 1, D), 0.02),
    )


def _ln_ref(y, w, b):
    mu = jnp.mean(y, axis=-1, keepdims=True)
    var = jnp.mean((y - mu) ** 2, axis=-1, keepdims=True)
    return (y - mu) * lax.rsqrt(var + LN_EPS) * w + b


def reference_forward(x_sbd, params):
    """Pure-JAX reference mirroring nn.TransformerEncoder (eval mode)."""
    x = jnp.transpose(x_sbd, (1, 0, 2)).astype(jnp.float32)   # (B, S, D)
    B, S, D = x.shape
    scale = 1.0 / math.sqrt(HEAD_DIM)
    for l in range(NUM_LAYERS):
        qkv = jnp.einsum("bsd,ed->bse", x, params["wqkv"][l]) + params["bqkv"][l]
        q, k, v = jnp.split(qkv, 3, axis=-1)

        def split_heads(t):
            return t.reshape(B, S, NUM_HEADS, HEAD_DIM).transpose(0, 2, 1, 3)

        qh, kh, vh = split_heads(q), split_heads(k), split_heads(v)
        s = jnp.einsum("bhqd,bhkd->bhqk", qh, kh) * scale
        p = jax.nn.softmax(s, axis=-1)
        o = jnp.einsum("bhqk,bhkd->bhqd", p, vh).transpose(0, 2, 1, 3).reshape(B, S, D)
        attn = jnp.einsum("bsd,ed->bse", o, params["wo"][l]) + params["bo"][l]
        x = _ln_ref(x + attn, params["ln1w"][l], params["ln1b"][l])
        ff = jnp.maximum(
            jnp.einsum("bsd,hd->bsh", x, params["w1"][l]) + params["b1"][l], 0.0)
        ff = jnp.einsum("bsh,dh->bsd", ff, params["w2"][l]) + params["b2"][l]
        x = _ln_ref(x + ff, params["ln2w"][l], params["ln2b"][l])
    return jnp.transpose(x, (1, 0, 2))


if __name__ == "__main__":
    key = jax.random.PRNGKey(0)
    pkey, xkey = jax.random.split(key)
    params = init_params(pkey)

    S, B = 8, 2
    packed = pack_params(params, S, B)       # one-time: transposes / scale folding
    x = jax.random.normal(xkey, (S, B, D_MODEL), jnp.float32)   # (seq, batch, d_model)

    out = perception_transformer_forward(x, packed)
    out = jax.block_until_ready(out)

    ref = reference_forward(x, params)
    assert out.shape == (S, B, D_MODEL)
    max_err = float(jnp.max(jnp.abs(out - ref)))
    assert jnp.allclose(out, ref, rtol=1e-4, atol=1e-4), f"max abs err {max_err}"

    print("KERNEL_OK")
</pallas_src>

<mosaic_0001>
module attributes {stable_mosaic.version = 11 : i64} {
  func.func @encoder_kernel(%arg0: memref<16x32xf32, #tpu.memory_space<vmem>>, %arg1: memref<6x4x32x32xf32, #tpu.memory_space<vmem>>, %arg2: memref<6x9x32xf32, #tpu.memory_space<vmem>>, %arg3: memref<6x32x64xf32, #tpu.memory_space<vmem>>, %arg4: memref<6x1x64xf32, #tpu.memory_space<vmem>>, %arg5: memref<6x64x32xf32, #tpu.memory_space<vmem>>, %arg6: memref<4x32xf32, #tpu.memory_space<vmem>>, %arg7: memref<16x16xf32, #tpu.memory_space<vmem>>, %arg8: memref<16x32xf32, #tpu.memory_space<vmem>>) attributes {dimension_semantics = [], scalar_prefetch = 0 : i64, scratch_operands = 0 : i64, tpu.core_type = #tpu.core_type<tc>} {
    %c0 = arith.constant 0 : index
    %c0_0 = arith.constant 0 : index
    %0 = vector.load %arg0[%c0, %c0_0] : memref<16x32xf32, #tpu.memory_space<vmem>>, vector<16x32xf32>
    %c0_1 = arith.constant 0 : index
    %c0_2 = arith.constant 0 : index
    %1 = vector.load %arg7[%c0_1, %c0_2] : memref<16x16xf32, #tpu.memory_space<vmem>>, vector<16x16xf32>
    %cst = arith.constant 1.000000e+00 : f32
    %2 = vector.broadcast %cst : f32 to vector<16x16xf32>
    %cst_3 = arith.constant 1.000000e+00 : f32
    %3 = vector.broadcast %cst_3 : f32 to vector<32x32xf32>
    %c0_4 = arith.constant 0 : index
    %c0_5 = arith.constant 0 : index
    %4 = vector.load %arg6[%c0_4, %c0_5] : memref<4x32xf32, #tpu.memory_space<vmem>>, vector<4x32xf32>
    %5 = vector.extract_strided_slice %4 {offsets = [0, 0], sizes = [1, 32], strides = [1, 1]} : vector<4x32xf32> to vector<1x32xf32>
    %6 = vector.shape_cast %5 : vector<1x32xf32> to vector<1x32xf32>
    %7 = vector.broadcast %6 : vector<1x32xf32> to vector<16x32xf32>
    %8 = vector.extract_strided_slice %4 {offsets = [1, 0], sizes = [1, 32], strides = [1, 1]} : vector<4x32xf32> to vector<1x32xf32>
    %9 = vector.shape_cast %8 : vector<1x32xf32> to vector<1x32xf32>
    %10 = vector.broadcast %9 : vector<1x32xf32> to vector<16x32xf32>
    %11 = vector.extract_strided_slice %4 {offsets = [2, 0], sizes = [1, 32], strides = [1, 1]} : vector<4x32xf32> to vector<1x32xf32>
    %12 = vector.shape_cast %11 : vector<1x32xf32> to vector<1x32xf32>
    %13 = vector.broadcast %12 : vector<1x32xf32> to vector<16x32xf32>
    %14 = vector.extract_strided_slice %4 {offsets = [3, 0], sizes = [1, 32], strides = [1, 1]} : vector<4x32xf32> to vector<1x32xf32>
    %15 = vector.shape_cast %14 : vector<1x32xf32> to vector<1x32xf32>
    %16 = vector.broadcast %15 : vector<1x32xf32> to vector<16x32xf32>
    %c0_6 = arith.constant 0 : index
    %c0_7 = arith.constant 0 : index
    %c0_8 = arith.constant 0 : index
    %c0_9 = arith.constant 0 : index
    %17 = vector.load %arg1[%c0_6, %c0_7, %c0_8, %c0_9] : memref<6x4x32x32xf32, #tpu.memory_space<vmem>>, vector<1x4x32x32xf32>
    %18 = vector.shape_cast %17 : vector<1x4x32x32xf32> to vector<4x32x32xf32>
    %c0_10 = arith.constant 0 : index
    %c0_11 = arith.constant 0 : index
    %c0_12 = arith.constant 0 : index
    %19 = vector.load %arg2[%c0_10, %c0_11, %c0_12] : memref<6x9x32xf32, #tpu.memory_space<vmem>>, vector<1x9x32xf32>
    %20 = vector.shape_cast %19 : vector<1x9x32xf32> to vector<9x32xf32>
    %21 = vector.extract_strided_slice %18 {offsets = [0, 0, 0], sizes = [1, 32, 32], strides = [1, 1, 1]} : vector<4x32x32xf32> to vector<1x32x32xf32>
    %22 = vector.shape_cast %21 : vector<1x32x32xf32> to vector<32x32xf32>
    %cst_13 = arith.constant dense<0.000000e+00> : vector<16x32xf32>
    %23 = tpu.matmul %0, %22, %cst_13 {dimension_numbers = #tpu.dot_dimension_numbers<[1], [0], [0], [1], [0, 0, 1, 1], [], []>} : vector<16x32xf32>, vector<32x32xf32>, vector<16x32xf32> -> vector<16x32xf32>
    %24 = vector.extract_strided_slice %20 {offsets = [0, 0], sizes = [1, 32], strides = [1, 1]} : vector<9x32xf32> to vector<1x32xf32>
    %25 = vector.broadcast %24 : vector<1x32xf32> to vector<16x32xf32>
    %26 = arith.addf %23, %25 : vector<16x32xf32>
    %27 = vector.extract_strided_slice %18 {offsets = [1, 0, 0], sizes = [1, 32, 32], strides = [1, 1, 1]} : vector<4x32x32xf32> to vector<1x32x32xf32>
    %28 = vector.shape_cast %27 : vector<1x32x32xf32> to vector<32x32xf32>
    %cst_14 = arith.constant dense<0.000000e+00> : vector<16x32xf32>
    %29 = tpu.matmul %0, %28, %cst_14 {dimension_numbers = #tpu.dot_dimension_numbers<[1], [0], [0], [1], [0, 0, 1, 1], [], []>} : vector<16x32xf32>, vector<32x32xf32>, vector<16x32xf32> -> vector<16x32xf32>
    %30 = vector.extract_strided_slice %20 {offsets = [1, 0], sizes = [1, 32], strides = [1, 1]} : vector<9x32xf32> to vector<1x32xf32>
    %31 = vector.broadcast %30 : vector<1x32xf32> to vector<16x32xf32>
    %32 = arith.addf %29, %31 : vector<16x32xf32>
    %33 = vector.extract_strided_slice %18 {offsets = [2, 0, 0], sizes = [1, 32, 32], strides = [1, 1, 1]} : vector<4x32x32xf32> to vector<1x32x32xf32>
    %34 = vector.shape_cast %33 : vector<1x32x32xf32> to vector<32x32xf32>
    %cst_15 = arith.constant dense<0.000000e+00> : vector<16x32xf32>
    %35 = tpu.matmul %0, %34, %cst_15 {dimension_numbers = #tpu.dot_dimension_numbers<[1], [0], [0], [1], [0, 0, 1, 1], [], []>} : vector<16x32xf32>, vector<32x32xf32>, vector<16x32xf32> -> vector<16x32xf32>
    %36 = vector.extract_strided_slice %20 {offsets = [2, 0], sizes = [1, 32], strides = [1, 1]} : vector<9x32xf32> to vector<1x32xf32>
    %37 = vector.broadcast %36 : vector<1x32xf32> to vector<16x32xf32>
    %38 = arith.addf %35, %37 : vector<16x32xf32>
    %39 = arith.mulf %32, %7 : vector<16x32xf32>
    %40 = arith.mulf %38, %7 : vector<16x32xf32>
    %cst_16 = arith.constant dense<0.000000e+00> : vector<16x16xf32>
    %41 = tpu.matmul %26, %39, %cst_16 {dimension_numbers = #tpu.dot_dimension_numbers<[1], [1], [0], [0], [0, 0, 1, 0], [], []>} : vector<16x32xf32>, vector<16x32xf32>, vector<16x16xf32> -> vector<16x16xf32>
    %42 = math.exp %41 : vector<16x16xf32>
    %43 = arith.mulf %42, %1 : vector<16x16xf32>
    %cst_17 = arith.constant dense<0.000000e+00> : vector<16x16xf32>
    %44 = tpu.matmul %43, %2, %cst_17 {dimension_numbers = #tpu.dot_dimension_numbers<[1], [0], [0], [1], [0, 0, 1, 1], [], []>} : vector<16x16xf32>, vector<16x16xf32>, vector<16x16xf32> -> vector<16x16xf32>
    %45 = tpu.reciprocal %44 : vector<16x16xf32> -> vector<16x16xf32>
    %46 = arith.mulf %43, %45 : vector<16x16xf32>
    %cst_18 = arith.constant dense<0.000000e+00> : vector<16x32xf32>
    %47 = tpu.matmul %46, %40, %cst_18 {dimension_numbers = #tpu.dot_dimension_numbers<[1], [0], [0], [1], [0, 0, 1, 1], [], []>} : vector<16x16xf32>, vector<16x32xf32>, vector<16x32xf32> -> vector<16x32xf32>
    %48 = arith.mulf %32, %10 : vector<16x32xf32>
    %49 = arith.mulf %38, %10 : vector<16x32xf32>
    %cst_19 = arith.constant dense<0.000000e+00> : vector<16x16xf32>
    %50 = tpu.matmul %26, %48, %cst_19 {dimension_numbers = #tpu.dot_dimension_numbers<[1], [1], [0], [0], [0, 0, 1, 0], [], []>} : vector<16x32xf32>, vector<16x32xf32>, vector<16x16xf32> -> vector<16x16xf32>
    %51 = math.exp %50 : vector<16x16xf32>
    %52 = arith.mulf %51, %1 : vector<16x16xf32>
    %cst_20 = arith.constant dense<0.000000e+00> : vector<16x16xf32>
    %53 = tpu.matmul %52, %2, %cst_20 {dimension_numbers = #tpu.dot_dimension_numbers<[1], [0], [0], [1], [0, 0, 1, 1], [], []>} : vector<16x16xf32>, vector<16x16xf32>, vector<16x16xf32> -> vector<16x16xf32>
    %54 = tpu.reciprocal %53 : vector<16x16xf32> -> vector<16x16xf32>
    %55 = arith.mulf %52, %54 : vector<16x16xf32>
    %cst_21 = arith.constant dense<0.000000e+00> : vector<16x32xf32>
    %56 = tpu.matmul %55, %49, %cst_21 {dimension_numbers = #tpu.dot_dimension_numbers<[1], [0], [0], [1], [0, 0, 1, 1], [], []>} : vector<16x16xf32>, vector<16x32xf32>, vector<16x32xf32> -> vector<16x32xf32>
    %57 = arith.addf %47, %56 : vector<16x32xf32>
    %58 = arith.mulf %32, %13 : vector<16x32xf32>
    %59 = arith.mulf %38, %13 : vector<16x32xf32>
    %cst_22 = arith.constant dense<0.000000e+00> : vector<16x16xf32>
    %60 = tpu.matmul %26, %58, %cst_22 {dimension_numbers = #tpu.dot_dimension_numbers<[1], [1], [0], [0], [0, 0, 1, 0], [], []>} : vector<16x32xf32>, vector<16x32xf32>, vector<16x16xf32> -> vector<16x16xf32>
    %61 = math.exp %60 : vector<16x16xf32>
    %62 = arith.mulf %61, %1 : vector<16x16xf32>
    %cst_23 = arith.constant dense<0.000000e+00> : vector<16x16xf32>
    %63 = tpu.matmul %62, %2, %cst_23 {dimension_numbers = #tpu.dot_dimension_numbers<[1], [0], [0], [1], [0, 0, 1, 1], [], []>} : vector<16x16xf32>, vector<16x16xf32>, vector<16x16xf32> -> vector<16x16xf32>
    %64 = tpu.reciprocal %63 : vector<16x16xf32> -> vector<16x16xf32>
    %65 = arith.mulf %62, %64 : vector<16x16xf32>
    %cst_24 = arith.constant dense<0.000000e+00> : vector<16x32xf32>
    %66 = tpu.matmul %65, %59, %cst_24 {dimension_numbers = #tpu.dot_dimension_numbers<[1], [0], [0], [1], [0, 0, 1, 1], [], []>} : vector<16x16xf32>, vector<16x32xf32>, vector<16x32xf32> -> vector<16x32xf32>
    %67 = arith.addf %57, %66 : vector<16x32xf32>
    %68 = arith.mulf %32, %16 : vector<16x32xf32>
    %69 = arith.mulf %38, %16 : vector<16x32xf32>
    %cst_25 = arith.constant dense<0.000000e+00> : vector<16x16xf32>
    %70 = tpu.matmul %26, %68, %cst_25 {dimension_numbers = #tpu.dot_dimension_numbers<[1], [1], [0], [0], [0, 0, 1, 0], [], []>} : vector<16x32xf32>, vector<16x32xf32>, vector<16x16xf32> -> vector<16x16xf32>
    %71 = math.exp %70 : vector<16x16xf32>
    %72 = arith.mulf %71, %1 : vector<16x16xf32>
    %cst_26 = arith.constant dense<0.000000e+00> : vector<16x16xf32>
    %73 = tpu.matmul %72, %2, %cst_26 {dimension_numbers = #tpu.dot_dimension_numbers<[1], [0], [0], [1], [0, 0, 1, 1], [], []>} : vector<16x16xf32>, vector<16x16xf32>, vector<16x16xf32> -> vector<16x16xf32>
    %74 = tpu.reciprocal %73 : vector<16x16xf32> -> vector<16x16xf32>
    %75 = arith.mulf %72, %74 : vector<16x16xf32>
    %cst_27 = arith.constant dense<0.000000e+00> : vector<16x32xf32>
    %76 = tpu.matmul %75, %69, %cst_27 {dimension_numbers = #tpu.dot_dimension_numbers<[1], [0], [0], [1], [0, 0, 1, 1], [], []>} : vector<16x16xf32>, vector<16x32xf32>, vector<16x32xf32> -> vector<16x32xf32>
    %77 = arith.addf %67, %76 : vector<16x32xf32>
    %78 = vector.extract_strided_slice %18 {offsets = [3, 0, 0], sizes = [1, 32, 32], strides = [1, 1, 1]} : vector<4x32x32xf32> to vector<1x32x32xf32>
    %79 = vector.shape_cast %78 : vector<1x32x32xf32> to vector<32x32xf32>
    %cst_28 = arith.constant dense<0.000000e+00> : vector<16x32xf32>
    %80 = tpu.matmul %77, %79, %cst_28 {dimension_numbers = #tpu.dot_dimension_numbers<[1], [0], [0], [1], [0, 0, 1, 1], [], []>} : vector<16x32xf32>, vector<32x32xf32>, vector<16x32xf32> -> vector<16x32xf32>
    %81 = vector.extract_strided_slice %20 {offsets = [3, 0], sizes = [1, 32], strides = [1, 1]} : vector<9x32xf32> to vector<1x32xf32>
    %82 = vector.broadcast %81 : vector<1x32xf32> to vector<16x32xf32>
    %83 = arith.addf %80, %82 : vector<16x32xf32>
    %84 = arith.addf %0, %83 : vector<16x32xf32>
    %85 = vector.extract_strided_slice %20 {offsets = [5, 0], sizes = [1, 32], strides = [1, 1]} : vector<9x32xf32> to vector<1x32xf32>
    %86 = vector.extract_strided_slice %20 {offsets = [6, 0], sizes = [1, 32], strides = [1, 1]} : vector<9x32xf32> to vector<1x32xf32>
    %cst_29 = arith.constant dense<0.000000e+00> : vector<16x32xf32>
    %87 = tpu.matmul %84, %3, %cst_29 {dimension_numbers = #tpu.dot_dimension_numbers<[1], [0], [0], [1], [0, 0, 1, 1], [], []>} : vector<16x32xf32>, vector<32x32xf32>, vector<16x32xf32> -> vector<16x32xf32>
    %cst_30 = arith.constant 3.125000e-02 : f32
    %88 = vector.broadcast %cst_30 : f32 to vector<16x32xf32>
    %89 = arith.mulf %87, %88 : vector<16x32xf32>
    %90 = arith.mulf %84, %84 : vector<16x32xf32>
    %cst_31 = arith.constant dense<0.000000e+00> : vector<16x32xf32>
    %91 = tpu.matmul %90, %3, %cst_31 {dimension_numbers = #tpu.dot_dimension_numbers<[1], [0], [0], [1], [0, 0, 1, 1], [], []>} : vector<16x32xf32>, vector<32x32xf32>, vector<16x32xf32> -> vector<16x32xf32>
    %cst_32 = arith.constant 3.125000e-02 : f32
    %92 = vector.broadcast %cst_32 : f32 to vector<16x32xf32>
    %93 = arith.mulf %91, %92 : vector<16x32xf32>
    %94 = arith.mulf %89, %89 : vector<16x32xf32>
    %95 = arith.subf %93, %94 : vector<16x32xf32>
    %cst_33 = arith.constant 9.99999974E-6 : f32
    %96 = vector.broadcast %cst_33 : f32 to vector<16x32xf32>
    %97 = arith.addf %95, %96 : vector<16x32xf32>
    %98 = math.rsqrt %97 : vector<16x32xf32>
    %99 = arith.subf %84, %89 : vector<16x32xf32>
    %100 = arith.mulf %99, %98 : vector<16x32xf32>
    %101 = vector.broadcast %85 : vector<1x32xf32> to vector<16x32xf32>
    %102 = arith.mulf %100, %101 : vector<16x32xf32>
    %103 = vector.broadcast %86 : vector<1x32xf32> to vector<16x32xf32>
    %104 = arith.addf %102, %103 : vector<16x32xf32>
    %c0_34 = arith.constant 0 : index
    %c0_35 = arith.constant 0 : index
    %c0_36 = arith.constant 0 : index
    %105 = vector.load %arg3[%c0_34, %c0_35, %c0_36] : memref<6x32x64xf32, #tpu.memory_space<vmem>>, vector<1x32x64xf32>
    %106 = vector.shape_cast %105 : vector<1x32x64xf32> to vector<32x64xf32>
    %cst_37 = arith.constant dense<0.000000e+00> : vector<16x64xf32>
    %107 = tpu.matmul %104, %106, %cst_37 {dimension_numbers = #tpu.dot_dimension_numbers<[1], [0], [0], [1], [0, 0, 1, 1], [], []>} : vector<16x32xf32>, vector<32x64xf32>, vector<16x64xf32> -> vector<16x64xf32>
    %c0_38 = arith.constant 0 : index
    %c0_39 = arith.constant 0 : index
    %c0_40 = arith.constant 0 : index
    %108 = vector.load %arg4[%c0_38, %c0_39, %c0_40] : memref<6x1x64xf32, #tpu.memory_space<vmem>>, vector<1x1x64xf32>
    %109 = vector.shape_cast %108 : vector<1x1x64xf32> to vector<1x64xf32>
    %110 = vector.broadcast %109 : vector<1x64xf32> to vector<16x64xf32>
    %111 = arith.addf %107, %110 : vector<16x64xf32>
    %cst_41 = arith.constant 0.000000e+00 : f32
    %112 = vector.broadcast %cst_41 : f32 to vector<16x64xf32>
    %113 = arith.maximumf %111, %112 : vector<16x64xf32>
    %c0_42 = arith.constant 0 : index
    %c0_43 = arith.constant 0 : index
    %c0_44 = arith.constant 0 : index
    %114 = vector.load %arg5[%c0_42, %c0_43, %c0_44] : memref<6x64x32xf32, #tpu.memory_space<vmem>>, vector<1x64x32xf32>
    %115 = vector.shape_cast %114 : vector<1x64x32xf32> to vector<64x32xf32>
    %cst_45 = arith.constant dense<0.000000e+00> : vector<16x32xf32>
    %116 = tpu.matmul %113, %115, %cst_45 {dimension_numbers = #tpu.dot_dimension_numbers<[1], [0], [0], [1], [0, 0, 1, 1], [], []>} : vector<16x64xf32>, vector<64x32xf32>, vector<16x32xf32> -> vector<16x32xf32>
    %117 = vector.extract_strided_slice %20 {offsets = [4, 0], sizes = [1, 32], strides = [1, 1]} : vector<9x32xf32> to vector<1x32xf32>
    %118 = vector.broadcast %117 : vector<1x32xf32> to vector<16x32xf32>
    %119 = arith.addf %116, %118 : vector<16x32xf32>
    %120 = arith.addf %104, %119 : vector<16x32xf32>
    %121 = vector.extract_strided_slice %20 {offsets = [7, 0], sizes = [1, 32], strides = [1, 1]} : vector<9x32xf32> to vector<1x32xf32>
    %122 = vector.extract_strided_slice %20 {offsets = [8, 0], sizes = [1, 32], strides = [1, 1]} : vector<9x32xf32> to vector<1x32xf32>
    %cst_46 = arith.constant dense<0.000000e+00> : vector<16x32xf32>
    %123 = tpu.matmul %120, %3, %cst_46 {dimension_numbers = #tpu.dot_dimension_numbers<[1], [0], [0], [1], [0, 0, 1, 1], [], []>} : vector<16x32xf32>, vector<32x32xf32>, vector<16x32xf32> -> vector<16x32xf32>
    %cst_47 = arith.constant 3.125000e-02 : f32
    %124 = vector.broadcast %cst_47 : f32 to vector<16x32xf32>
    %125 = arith.mulf %123, %124 : vector<16x32xf32>
    %126 = arith.mulf %120, %120 : vector<16x32xf32>
    %cst_48 = arith.constant dense<0.000000e+00> : vector<16x32xf32>
    %127 = tpu.matmul %126, %3, %cst_48 {dimension_numbers = #tpu.dot_dimension_numbers<[1], [0], [0], [1], [0, 0, 1, 1], [], []>} : vector<16x32xf32>, vector<32x32xf32>, vector<16x32xf32> -> vector<16x32xf32>
    %cst_49 = arith.constant 3.125000e-02 : f32
    %128 = vector.broadcast %cst_49 : f32 to vector<16x32xf32>
    %129 = arith.mulf %127, %128 : vector<16x32xf32>
    %130 = arith.mulf %125, %125 : vector<16x32xf32>
    %131 = arith.subf %129, %130 : vector<16x32xf32>
    %cst_50 = arith.constant 9.99999974E-6 : f32
    %132 = vector.broadcast %cst_50 : f32 to vector<16x32xf32>
    %133 = arith.addf %131, %132 : vector<16x32xf32>
    %134 = math.rsqrt %133 : vector<16x32xf32>
    %135 = arith.subf %120, %125 : vector<16x32xf32>
    %136 = arith.mulf %135, %134 : vector<16x32xf32>
    %137 = vector.broadcast %121 : vector<1x32xf32> to vector<16x32xf32>
    %138 = arith.mulf %136, %137 : vector<16x32xf32>
    %139 = vector.broadcast %122 : vector<1x32xf32> to vector<16x32xf32>
    %140 = arith.addf %138, %139 : vector<16x32xf32>
    %c1 = arith.constant 1 : index
    %c0_51 = arith.constant 0 : index
    %c0_52 = arith.constant 0 : index
    %c0_53 = arith.constant 0 : index
    %141 = vector.load %arg1[%c1, %c0_51, %c0_52, %c0_53] : memref<6x4x32x32xf32, #tpu.memory_space<vmem>>, vector<1x4x32x32xf32>
    %142 = vector.shape_cast %141 : vector<1x4x32x32xf32> to vector<4x32x32xf32>
    %c1_54 = arith.constant 1 : index
    %c0_55 = arith.constant 0 : index
    %c0_56 = arith.constant 0 : index
    %143 = vector.load %arg2[%c1_54, %c0_55, %c0_56] : memref<6x9x32xf32, #tpu.memory_space<vmem>>, vector<1x9x32xf32>
    %144 = vector.shape_cast %143 : vector<1x9x32xf32> to vector<9x32xf32>
    %145 = vector.extract_strided_slice %142 {offsets = [0, 0, 0], sizes = [1, 32, 32], strides = [1, 1, 1]} : vector<4x32x32xf32> to vector<1x32x32xf32>
    %146 = vector.shape_cast %145 : vector<1x32x32xf32> to vector<32x32xf32>
    %cst_57 = arith.constant dense<0.000000e+00> : vector<16x32xf32>
    %147 = tpu.matmul %140, %146, %cst_57 {dimension_numbers = #tpu.dot_dimension_numbers<[1], [0], [0], [1], [0, 0, 1, 1], [], []>} : vector<16x32xf32>, vector<32x32xf32>, vector<16x32xf32> -> vector<16x32xf32>
    %148 = vector.extract_strided_slice %144 {offsets = [0, 0], sizes = [1, 32], strides = [1, 1]} : vector<9x32xf32> to vector<1x32xf32>
    %149 = vector.broadcast %148 : vector<1x32xf32> to vector<16x32xf32>
    %150 = arith.addf %147, %149 : vector<16x32xf32>
    %151 = vector.extract_strided_slice %142 {offsets = [1, 0, 0], sizes = [1, 32, 32], strides = [1, 1, 1]} : vector<4x32x32xf32> to vector<1x32x32xf32>
    %152 = vector.shape_cast %151 : vector<1x32x32xf32> to vector<32x32xf32>
    %cst_58 = arith.constant dense<0.000000e+00> : vector<16x32xf32>
    %153 = tpu.matmul %140, %152, %cst_58 {dimension_numbers = #tpu.dot_dimension_numbers<[1], [0], [0], [1], [0, 0, 1, 1], [], []>} : vector<16x32xf32>, vector<32x32xf32>, vector<16x32xf32> -> vector<16x32xf32>
    %154 = vector.extract_strided_slice %144 {offsets = [1, 0], sizes = [1, 32], strides = [1, 1]} : vector<9x32xf32> to vector<1x32xf32>
    %155 = vector.broadcast %154 : vector<1x32xf32> to vector<16x32xf32>
    %156 = arith.addf %153, %155 : vector<16x32xf32>
    %157 = vector.extract_strided_slice %142 {offsets = [2, 0, 0], sizes = [1, 32, 32], strides = [1, 1, 1]} : vector<4x32x32xf32> to vector<1x32x32xf32>
    %158 = vector.shape_cast %157 : vector<1x32x32xf32> to vector<32x32xf32>
    %cst_59 = arith.constant dense<0.000000e+00> : vector<16x32xf32>
    %159 = tpu.matmul %140, %158, %cst_59 {dimension_numbers = #tpu.dot_dimension_numbers<[1], [0], [0], [1], [0, 0, 1, 1], [], []>} : vector<16x32xf32>, vector<32x32xf32>, vector<16x32xf32> -> vector<16x32xf32>
    %160 = vector.extract_strided_slice %144 {offsets = [2, 0], sizes = [1, 32], strides = [1, 1]} : vector<9x32xf32> to vector<1x32xf32>
    %161 = vector.broadcast %160 : vector<1x32xf32> to vector<16x32xf32>
    %162 = arith.addf %159, %161 : vector<16x32xf32>
    %163 = arith.mulf %156, %7 : vector<16x32xf32>
    %164 = arith.mulf %162, %7 : vector<16x32xf32>
    %cst_60 = arith.constant dense<0.000000e+00> : vector<16x16xf32>
    %165 = tpu.matmul %150, %163, %cst_60 {dimension_numbers = #tpu.dot_dimension_numbers<[1], [1], [0], [0], [0, 0, 1, 0], [], []>} : vector<16x32xf32>, vector<16x32xf32>, vector<16x16xf32> -> vector<16x16xf32>
    %166 = math.exp %165 : vector<16x16xf32>
    %167 = arith.mulf %166, %1 : vector<16x16xf32>
    %cst_61 = arith.constant dense<0.000000e+00> : vector<16x16xf32>
    %168 = tpu.matmul %167, %2, %cst_61 {dimension_numbers = #tpu.dot_dimension_numbers<[1], [0], [0], [1], [0, 0, 1, 1], [], []>} : vector<16x16xf32>, vector<16x16xf32>, vector<16x16xf32> -> vector<16x16xf32>
    %169 = tpu.reciprocal %168 : vector<16x16xf32> -> vector<16x16xf32>
    %170 = arith.mulf %167, %169 : vector<16x16xf32>
    %cst_62 = arith.constant dense<0.000000e+00> : vector<16x32xf32>
    %171 = tpu.matmul %170, %164, %cst_62 {dimension_numbers = #tpu.dot_dimension_numbers<[1], [0], [0], [1], [0, 0, 1, 1], [], []>} : vector<16x16xf32>, vector<16x32xf32>, vector<16x32xf32> -> vector<16x32xf32>
    %172 = arith.mulf %156, %10 : vector<16x32xf32>
    %173 = arith.mulf %162, %10 : vector<16x32xf32>
    %cst_63 = arith.constant dense<0.000000e+00> : vector<16x16xf32>
    %174 = tpu.matmul %150, %172, %cst_63 {dimension_numbers = #tpu.dot_dimension_numbers<[1], [1], [0], [0], [0, 0, 1, 0], [], []>} : vector<16x32xf32>, vector<16x32xf32>, vector<16x16xf32> -> vector<16x16xf32>
    %175 = math.exp %174 : vector<16x16xf32>
    %176 = arith.mulf %175, %1 : vector<16x16xf32>
    %cst_64 = arith.constant dense<0.000000e+00> : vector<16x16xf32>
    %177 = tpu.matmul %176, %2, %cst_64 {dimension_numbers = #tpu.dot_dimension_numbers<[1], [0], [0], [1], [0, 0, 1, 1], [], []>} : vector<16x16xf32>, vector<16x16xf32>, vector<16x16xf32> -> vector<16x16xf32>
    %178 = tpu.reciprocal %177 : vector<16x16xf32> -> vector<16x16xf32>
    %179 = arith.mulf %176, %178 : vector<16x16xf32>
    %cst_65 = arith.constant dense<0.000000e+00> : vector<16x32xf32>
    %180 = tpu.matmul %179, %173, %cst_65 {dimension_numbers = #tpu.dot_dimension_numbers<[1], [0], [0], [1], [0, 0, 1, 1], [], []>} : vector<16x16xf32>, vector<16x32xf32>, vector<16x32xf32> -> vector<16x32xf32>
    %181 = arith.addf %171, %180 : vector<16x32xf32>
    %182 = arith.mulf %156, %13 : vector<16x32xf32>
    %183 = arith.mulf %162, %13 : vector<16x32xf32>
    %cst_66 = arith.constant dense<0.000000e+00> : vector<16x16xf32>
    %184 = tpu.matmul %150, %182, %cst_66 {dimension_numbers = #tpu.dot_dimension_numbers<[1], [1], [0], [0], [0, 0, 1, 0], [], []>} : vector<16x32xf32>, vector<16x32xf32>, vector<16x16xf32> -> vector<16x16xf32>
    %185 = math.exp %184 : vector<16x16xf32>
    %186 = arith.mulf %185, %1 : vector<16x16xf32>
    %cst_67 = arith.constant dense<0.000000e+00> : vector<16x16xf32>
    %187 = tpu.matmul %186, %2, %cst_67 {dimension_numbers = #tpu.dot_dimension_numbers<[1], [0], [0], [1], [0, 0, 1, 1], [], []>} : vector<16x16xf32>, vector<16x16xf32>, vector<16x16xf32> -> vector<16x16xf32>
    %188 = tpu.reciprocal %187 : vector<16x16xf32> -> vector<16x16xf32>
    %189 = arith.mulf %186, %188 : vector<16x16xf32>
    %cst_68 = arith.constant dense<0.000000e+00> : vector<16x32xf32>
    %190 = tpu.matmul %189, %183, %cst_68 {dimension_numbers = #tpu.dot_dimension_numbers<[1], [0], [0], [1], [0, 0, 1, 1], [], []>} : vector<16x16xf32>, vector<16x32xf32>, vector<16x32xf32> -> vector<16x32xf32>
    %191 = arith.addf %181, %190 : vector<16x32xf32>
    %192 = arith.mulf %156, %16 : vector<16x32xf32>
    %193 = arith.mulf %162, %16 : vector<16x32xf32>
    %cst_69 = arith.constant dense<0.000000e+00> : vector<16x16xf32>
    %194 = tpu.matmul %150, %192, %cst_69 {dimension_numbers = #tpu.dot_dimension_numbers<[1], [1], [0], [0], [0, 0, 1, 0], [], []>} : vector<16x32xf32>, vector<16x32xf32>, vector<16x16xf32> -> vector<16x16xf32>
    %195 = math.exp %194 : vector<16x16xf32>
    %196 = arith.mulf %195, %1 : vector<16x16xf32>
    %cst_70 = arith.constant dense<0.000000e+00> : vector<16x16xf32>
    %197 = tpu.matmul %196, %2, %cst_70 {dimension_numbers = #tpu.dot_dimension_numbers<[1], [0], [0], [1], [0, 0, 1, 1], [], []>} : vector<16x16xf32>, vector<16x16xf32>, vector<16x16xf32> -> vector<16x16xf32>
    %198 = tpu.reciprocal %197 : vector<16x16xf32> -> vector<16x16xf32>
    %199 = arith.mulf %196, %198 : vector<16x16xf32>
    %cst_71 = arith.constant dense<0.000000e+00> : vector<16x32xf32>
    %200 = tpu.matmul %199, %193, %cst_71 {dimension_numbers = #tpu.dot_dimension_numbers<[1], [0], [0], [1], [0, 0, 1, 1], [], []>} : vector<16x16xf32>, vector<16x32xf32>, vector<16x32xf32> -> vector<16x32xf32>
    %201 = arith.addf %191, %200 : vector<16x32xf32>
    %202 = vector.extract_strided_slice %142 {offsets = [3, 0, 0], sizes = [1, 32, 32], strides = [1, 1, 1]} : vector<4x32x32xf32> to vector<1x32x32xf32>
    %203 = vector.shape_cast %202 : vector<1x32x32xf32> to vector<32x32xf32>
    %cst_72 = arith.constant dense<0.000000e+00> : vector<16x32xf32>
    %204 = tpu.matmul %201, %203, %cst_72 {dimension_numbers = #tpu.dot_dimension_numbers<[1], [0], [0], [1], [0, 0, 1, 1], [], []>} : vector<16x32xf32>, vector<32x32xf32>, vector<16x32xf32> -> vector<16x32xf32>
    %205 = vector.extract_strided_slice %144 {offsets = [3, 0], sizes = [1, 32], strides = [1, 1]} : vector<9x32xf32> to vector<1x32xf32>
    %206 = vector.broadcast %205 : vector<1x32xf32> to vector<16x32xf32>
    %207 = arith.addf %204, %206 : vector<16x32xf32>
    %208 = arith.addf %140, %207 : vector<16x32xf32>
    %209 = vector.extract_strided_slice %144 {offsets = [5, 0], sizes = [1, 32], strides = [1, 1]} : vector<9x32xf32> to vector<1x32xf32>
    %210 = vector.extract_strided_slice %144 {offsets = [6, 0], sizes = [1, 32], strides = [1, 1]} : vector<9x32xf32> to vector<1x32xf32>
    %cst_73 = arith.constant dense<0.000000e+00> : vector<16x32xf32>
    %211 = tpu.matmul %208, %3, %cst_73 {dimension_numbers = #tpu.dot_dimension_numbers<[1], [0], [0], [1], [0, 0, 1, 1], [], []>} : vector<16x32xf32>, vector<32x32xf32>, vector<16x32xf32> -> vector<16x32xf32>
    %cst_74 = arith.constant 3.125000e-02 : f32
    %212 = vector.broadcast %cst_74 : f32 to vector<16x32xf32>
    %213 = arith.mulf %211, %212 : vector<16x32xf32>
    %214 = arith.mulf %208, %208 : vector<16x32xf32>
    %cst_75 = arith.constant dense<0.000000e+00> : vector<16x32xf32>
    %215 = tpu.matmul %214, %3, %cst_75 {dimension_numbers = #tpu.dot_dimension_numbers<[1], [0], [0], [1], [0, 0, 1, 1], [], []>} : vector<16x32xf32>, vector<32x32xf32>, vector<16x32xf32> -> vector<16x32xf32>
    %cst_76 = arith.constant 3.125000e-02 : f32
    %216 = vector.broadcast %cst_76 : f32 to vector<16x32xf32>
    %217 = arith.mulf %215, %216 : vector<16x32xf32>
    %218 = arith.mulf %213, %213 : vector<16x32xf32>
    %219 = arith.subf %217, %218 : vector<16x32xf32>
    %cst_77 = arith.constant 9.99999974E-6 : f32
    %220 = vector.broadcast %cst_77 : f32 to vector<16x32xf32>
    %221 = arith.addf %219, %220 : vector<16x32xf32>
    %222 = math.rsqrt %221 : vector<16x32xf32>
    %223 = arith.subf %208, %213 : vector<16x32xf32>
    %224 = arith.mulf %223, %222 : vector<16x32xf32>
    %225 = vector.broadcast %209 : vector<1x32xf32> to vector<16x32xf32>
    %226 = arith.mulf %224, %225 : vector<16x32xf32>
    %227 = vector.broadcast %210 : vector<1x32xf32> to vector<16x32xf32>
    %228 = arith.addf %226, %227 : vector<16x32xf32>
    %c1_78 = arith.constant 1 : index
    %c0_79 = arith.constant 0 : index
    %c0_80 = arith.constant 0 : index
    %229 = vector.load %arg3[%c1_78, %c0_79, %c0_80] : memref<6x32x64xf32, #tpu.memory_space<vmem>>, vector<1x32x64xf32>
    %230 = vector.shape_cast %229 : vector<1x32x64xf32> to vector<32x64xf32>
    %cst_81 = arith.constant dense<0.000000e+00> : vector<16x64xf32>
    %231 = tpu.matmul %228, %230, %cst_81 {dimension_numbers = #tpu.dot_dimension_numbers<[1], [0], [0], [1], [0, 0, 1, 1], [], []>} : vector<16x32xf32>, vector<32x64xf32>, vector<16x64xf32> -> vector<16x64xf32>
    %c1_82 = arith.constant 1 : index
    %c0_83 = arith.constant 0 : index
    %c0_84 = arith.constant 0 : index
    %232 = vector.load %arg4[%c1_82, %c0_83, %c0_84] : memref<6x1x64xf32, #tpu.memory_space<vmem>>, vector<1x1x64xf32>
    %233 = vector.shape_cast %232 : vector<1x1x64xf32> to vector<1x64xf32>
    %234 = vector.broadcast %233 : vector<1x64xf32> to vector<16x64xf32>
    %235 = arith.addf %231, %234 : vector<16x64xf32>
    %cst_85 = arith.constant 0.000000e+00 : f32
    %236 = vector.broadcast %cst_85 : f32 to vector<16x64xf32>
    %237 = arith.maximumf %235, %236 : vector<16x64xf32>
    %c1_86 = arith.constant 1 : index
    %c0_87 = arith.constant 0 : index
    %c0_88 = arith.constant 0 : index
    %238 = vector.load %arg5[%c1_86, %c0_87, %c0_88] : memref<6x64x32xf32, #tpu.memory_space<vmem>>, vector<1x64x32xf32>
    %239 = vector.shape_cast %238 : vector<1x64x32xf32> to vector<64x32xf32>
    %cst_89 = arith.constant dense<0.000000e+00> : vector<16x32xf32>
    %240 = tpu.matmul %237, %239, %cst_89 {dimension_numbers = #tpu.dot_dimension_numbers<[1], [0], [0], [1], [0, 0, 1, 1], [], []>} : vector<16x64xf32>, vector<64x32xf32>, vector<16x32xf32> -> vector<16x32xf32>
    %241 = vector.extract_strided_slice %144 {offsets = [4, 0], sizes = [1, 32], strides = [1, 1]} : vector<9x32xf32> to vector<1x32xf32>
    %242 = vector.broadcast %241 : vector<1x32xf32> to vector<16x32xf32>
    %243 = arith.addf %240, %242 : vector<16x32xf32>
    %244 = arith.addf %228, %243 : vector<16x32xf32>
    %245 = vector.extract_strided_slice %144 {offsets = [7, 0], sizes = [1, 32], strides = [1, 1]} : vector<9x32xf32> to vector<1x32xf32>
    %246 = vector.extract_strided_slice %144 {offsets = [8, 0], sizes = [1, 32], strides = [1, 1]} : vector<9x32xf32> to vector<1x32xf32>
    %cst_90 = arith.constant dense<0.000000e+00> : vector<16x32xf32>
    %247 = tpu.matmul %244, %3, %cst_90 {dimension_numbers = #tpu.dot_dimension_numbers<[1], [0], [0], [1], [0, 0, 1, 1], [], []>} : vector<16x32xf32>, vector<32x32xf32>, vector<16x32xf32> -> vector<16x32xf32>
    %cst_91 = arith.constant 3.125000e-02 : f32
    %248 = vector.broadcast %cst_91 : f32 to vector<16x32xf32>
    %249 = arith.mulf %247, %248 : vector<16x32xf32>
    %250 = arith.mulf %244, %244 : vector<16x32xf32>
    %cst_92 = arith.constant dense<0.000000e+00> : vector<16x32xf32>
    %251 = tpu.matmul %250, %3, %cst_92 {dimension_numbers = #tpu.dot_dimension_numbers<[1], [0], [0], [1], [0, 0, 1, 1], [], []>} : vector<16x32xf32>, vector<32x32xf32>, vector<16x32xf32> -> vector<16x32xf32>
    %cst_93 = arith.constant 3.125000e-02 : f32
    %252 = vector.broadcast %cst_93 : f32 to vector<16x32xf32>
    %253 = arith.mulf %251, %252 : vector<16x32xf32>
    %254 = arith.mulf %249, %249 : vector<16x32xf32>
    %255 = arith.subf %253, %254 : vector<16x32xf32>
    %cst_94 = arith.constant 9.99999974E-6 : f32
    %256 = vector.broadcast %cst_94 : f32 to vector<16x32xf32>
    %257 = arith.addf %255, %256 : vector<16x32xf32>
    %258 = math.rsqrt %257 : vector<16x32xf32>
    %259 = arith.subf %244, %249 : vector<16x32xf32>
    %260 = arith.mulf %259, %258 : vector<16x32xf32>
    %261 = vector.broadcast %245 : vector<1x32xf32> to vector<16x32xf32>
    %262 = arith.mulf %260, %261 : vector<16x32xf32>
    %263 = vector.broadcast %246 : vector<1x32xf32> to vector<16x32xf32>
    %264 = arith.addf %262, %263 : vector<16x32xf32>
    %c2 = arith.constant 2 : index
    %c0_95 = arith.constant 0 : index
    %c0_96 = arith.constant 0 : index
    %c0_97 = arith.constant 0 : index
    %265 = vector.load %arg1[%c2, %c0_95, %c0_96, %c0_97] : memref<6x4x32x32xf32, #tpu.memory_space<vmem>>, vector<1x4x32x32xf32>
    %266 = vector.shape_cast %265 : vector<1x4x32x32xf32> to vector<4x32x32xf32>
    %c2_98 = arith.constant 2 : index
    %c0_99 = arith.constant 0 : index
    %c0_100 = arith.constant 0 : index
    %267 = vector.load %arg2[%c2_98, %c0_99, %c0_100] : memref<6x9x32xf32, #tpu.memory_space<vmem>>, vector<1x9x32xf32>
    %268 = vector.shape_cast %267 : vector<1x9x32xf32> to vector<9x32xf32>
    %269 = vector.extract_strided_slice %266 {offsets = [0, 0, 0], sizes = [1, 32, 32], strides = [1, 1, 1]} : vector<4x32x32xf32> to vector<1x32x32xf32>
    %270 = vector.shape_cast %269 : vector<1x32x32xf32> to vector<32x32xf32>
    %cst_101 = arith.constant dense<0.000000e+00> : vector<16x32xf32>
    %271 = tpu.matmul %264, %270, %cst_101 {dimension_numbers = #tpu.dot_dimension_numbers<[1], [0], [0], [1], [0, 0, 1, 1], [], []>} : vector<16x32xf32>, vector<32x32xf32>, vector<16x32xf32> -> vector<16x32xf32>
    %272 = vector.extract_strided_slice %268 {offsets = [0, 0], sizes = [1, 32], strides = [1, 1]} : vector<9x32xf32> to vector<1x32xf32>
    %273 = vector.broadcast %272 : vector<1x32xf32> to vector<16x32xf32>
    %274 = arith.addf %271, %273 : vector<16x32xf32>
    %275 = vector.extract_strided_slice %266 {offsets = [1, 0, 0], sizes = [1, 32, 32], strides = [1, 1, 1]} : vector<4x32x32xf32> to vector<1x32x32xf32>
    %276 = vector.shape_cast %275 : vector<1x32x32xf32> to vector<32x32xf32>
    %cst_102 = arith.constant dense<0.000000e+00> : vector<16x32xf32>
    %277 = tpu.matmul %264, %276, %cst_102 {dimension_numbers = #tpu.dot_dimension_numbers<[1], [0], [0], [1], [0, 0, 1, 1], [], []>} : vector<16x32xf32>, vector<32x32xf32>, vector<16x32xf32> -> vector<16x32xf32>
    %278 = vector.extract_strided_slice %268 {offsets = [1, 0], sizes = [1, 32], strides = [1, 1]} : vector<9x32xf32> to vector<1x32xf32>
    %279 = vector.broadcast %278 : vector<1x32xf32> to vector<16x32xf32>
    %280 = arith.addf %277, %279 : vector<16x32xf32>
    %281 = vector.extract_strided_slice %266 {offsets = [2, 0, 0], sizes = [1, 32, 32], strides = [1, 1, 1]} : vector<4x32x32xf32> to vector<1x32x32xf32>
    %282 = vector.shape_cast %281 : vector<1x32x32xf32> to vector<32x32xf32>
    %cst_103 = arith.constant dense<0.000000e+00> : vector<16x32xf32>
    %283 = tpu.matmul %264, %282, %cst_103 {dimension_numbers = #tpu.dot_dimension_numbers<[1], [0], [0], [1], [0, 0, 1, 1], [], []>} : vector<16x32xf32>, vector<32x32xf32>, vector<16x32xf32> -> vector<16x32xf32>
    %284 = vector.extract_strided_slice %268 {offsets = [2, 0], sizes = [1, 32], strides = [1, 1]} : vector<9x32xf32> to vector<1x32xf32>
    %285 = vector.broadcast %284 : vector<1x32xf32> to vector<16x32xf32>
    %286 = arith.addf %283, %285 : vector<16x32xf32>
    %287 = arith.mulf %280, %7 : vector<16x32xf32>
    %288 = arith.mulf %286, %7 : vector<16x32xf32>
    %cst_104 = arith.constant dense<0.000000e+00> : vector<16x16xf32>
    %289 = tpu.matmul %274, %287, %cst_104 {dimension_numbers = #tpu.dot_dimension_numbers<[1], [1], [0], [0], [0, 0, 1, 0], [], []>} : vector<16x32xf32>, vector<16x32xf32>, vector<16x16xf32> -> vector<16x16xf32>
    %290 = math.exp %289 : vector<16x16xf32>
    %291 = arith.mulf %290, %1 : vector<16x16xf32>
    %cst_105 = arith.constant dense<0.000000e+00> : vector<16x16xf32>
    %292 = tpu.matmul %291, %2, %cst_105 {dimension_numbers = #tpu.dot_dimension_numbers<[1], [0], [0], [1], [0, 0, 1, 1], [], []>} : vector<16x16xf32>, vector<16x16xf32>, vector<16x16xf32> -> vector<16x16xf32>
    %293 = tpu.reciprocal %292 : vector<16x16xf32> -> vector<16x16xf32>
    %294 = arith.mulf %291, %293 : vector<16x16xf32>
    %cst_106 = arith.constant dense<0.000000e+00> : vector<16x32xf32>
    %295 = tpu.matmul %294, %288, %cst_106 {dimension_numbers = #tpu.dot_dimension_numbers<[1], [0], [0], [1], [0, 0, 1, 1], [], []>} : vector<16x16xf32>, vector<16x32xf32>, vector<16x32xf32> -> vector<16x32xf32>
    %296 = arith.mulf %280, %10 : vector<16x32xf32>
    %297 = arith.mulf %286, %10 : vector<16x32xf32>
    %cst_107 = arith.constant dense<0.000000e+00> : vector<16x16xf32>
    %298 = tpu.matmul %274, %296, %cst_107 {dimension_numbers = #tpu.dot_dimension_numbers<[1], [1], [0], [0], [0, 0, 1, 0], [], []>} : vector<16x32xf32>, vector<16x32xf32>, vector<16x16xf32> -> vector<16x16xf32>
    %299 = math.exp %298 : vector<16x16xf32>
    %300 = arith.mulf %299, %1 : vector<16x16xf32>
    %cst_108 = arith.constant dense<0.000000e+00> : vector<16x16xf32>
    %301 = tpu.matmul %300, %2, %cst_108 {dimension_numbers = #tpu.dot_dimension_numbers<[1], [0], [0], [1], [0, 0, 1, 1], [], []>} : vector<16x16xf32>, vector<16x16xf32>, vector<16x16xf32> -> vector<16x16xf32>
    %302 = tpu.reciprocal %301 : vector<16x16xf32> -> vector<16x16xf32>
    %303 = arith.mulf %300, %302 : vector<16x16xf32>
    %cst_109 = arith.constant dense<0.000000e+00> : vector<16x32xf32>
    %304 = tpu.matmul %303, %297, %cst_109 {dimension_numbers = #tpu.dot_dimension_numbers<[1], [0], [0], [1], [0, 0, 1, 1], [], []>} : vector<16x16xf32>, vector<16x32xf32>, vector<16x32xf32> -> vector<16x32xf32>
    %305 = arith.addf %295, %304 : vector<16x32xf32>
    %306 = arith.mulf %280, %13 : vector<16x32xf32>
    %307 = arith.mulf %286, %13 : vector<16x32xf32>
    %cst_110 = arith.constant dense<0.000000e+00> : vector<16x16xf32>
    %308 = tpu.matmul %274, %306, %cst_110 {dimension_numbers = #tpu.dot_dimension_numbers<[1], [1], [0], [0], [0, 0, 1, 0], [], []>} : vector<16x32xf32>, vector<16x32xf32>, vector<16x16xf32> -> vector<16x16xf32>
    %309 = math.exp %308 : vector<16x16xf32>
    %310 = arith.mulf %309, %1 : vector<16x16xf32>
    %cst_111 = arith.constant dense<0.000000e+00> : vector<16x16xf32>
    %311 = tpu.matmul %310, %2, %cst_111 {dimension_numbers = #tpu.dot_dimension_numbers<[1], [0], [0], [1], [0, 0, 1, 1], [], []>} : vector<16x16xf32>, vector<16x16xf32>, vector<16x16xf32> -> vector<16x16xf32>
    %312 = tpu.reciprocal %311 : vector<16x16xf32> -> vector<16x16xf32>
    %313 = arith.mulf %310, %312 : vector<16x16xf32>
    %cst_112 = arith.constant dense<0.000000e+00> : vector<16x32xf32>
    %314 = tpu.matmul %313, %307, %cst_112 {dimension_numbers = #tpu.dot_dimension_numbers<[1], [0], [0], [1], [0, 0, 1, 1], [], []>} : vector<16x16xf32>, vector<16x32xf32>, vector<16x32xf32> -> vector<16x32xf32>
    %315 = arith.addf %305, %314 : vector<16x32xf32>
    %316 = arith.mulf %280, %16 : vector<16x32xf32>
    %317 = arith.mulf %286, %16 : vector<16x32xf32>
    %cst_113 = arith.constant dense<0.000000e+00> : vector<16x16xf32>
    %318 = tpu.matmul %274, %316, %cst_113 {dimension_numbers = #tpu.dot_dimension_numbers<[1], [1], [0], [0], [0, 0, 1, 0], [], []>} : vector<16x32xf32>, vector<16x32xf32>, vector<16x16xf32> -> vector<16x16xf32>
    %319 = math.exp %318 : vector<16x16xf32>
    %320 = arith.mulf %319, %1 : vector<16x16xf32>
    %cst_114 = arith.constant dense<0.000000e+00> : vector<16x16xf32>
    %321 = tpu.matmul %320, %2, %cst_114 {dimension_numbers = #tpu.dot_dimension_numbers<[1], [0], [0], [1], [0, 0, 1, 1], [], []>} : vector<16x16xf32>, vector<16x16xf32>, vector<16x16xf32> -> vector<16x16xf32>
    %322 = tpu.reciprocal %321 : vector<16x16xf32> -> vector<16x16xf32>
    %323 = arith.mulf %320, %322 : vector<16x16xf32>
    %cst_115 = arith.constant dense<0.000000e+00> : vector<16x32xf32>
    %324 = tpu.matmul %323, %317, %cst_115 {dimension_numbers = #tpu.dot_dimension_numbers<[1], [0], [0], [1], [0, 0, 1, 1], [], []>} : vector<16x16xf32>, vector<16x32xf32>, vector<16x32xf32> -> vector<16x32xf32>
    %325 = arith.addf %315, %324 : vector<16x32xf32>
    %326 = vector.extract_strided_slice %266 {offsets = [3, 0, 0], sizes = [1, 32, 32], strides = [1, 1, 1]} : vector<4x32x32xf32> to vector<1x32x32xf32>
    %327 = vector.shape_cast %326 : vector<1x32x32xf32> to vector<32x32xf32>
    %cst_116 = arith.constant dense<0.000000e+00> : vector<16x32xf32>
    %328 = tpu.matmul %325, %327, %cst_116 {dimension_numbers = #tpu.dot_dimension_numbers<[1], [0], [0], [1], [0, 0, 1, 1], [], []>} : vector<16x32xf32>, vector<32x32xf32>, vector<16x32xf32> -> vector<16x32xf32>
    %329 = vector.extract_strided_slice %268 {offsets = [3, 0], sizes = [1, 32], strides = [1, 1]} : vector<9x32xf32> to vector<1x32xf32>
    %330 = vector.broadcast %329 : vector<1x32xf32> to vector<16x32xf32>
    %331 = arith.addf %328, %330 : vector<16x32xf32>
    %332 = arith.addf %264, %331 : vector<16x32xf32>
    %333 = vector.extract_strided_slice %268 {offsets = [5, 0], sizes = [1, 32], strides = [1, 1]} : vector<9x32xf32> to vector<1x32xf32>
    %334 = vector.extract_strided_slice %268 {offsets = [6, 0], sizes = [1, 32], strides = [1, 1]} : vector<9x32xf32> to vector<1x32xf32>
    %cst_117 = arith.constant dense<0.000000e+00> : vector<16x32xf32>
    %335 = tpu.matmul %332, %3, %cst_117 {dimension_numbers = #tpu.dot_dimension_numbers<[1], [0], [0], [1], [0, 0, 1, 1], [], []>} : vector<16x32xf32>, vector<32x32xf32>, vector<16x32xf32> -> vector<16x32xf32>
    %cst_118 = arith.constant 3.125000e-02 : f32
    %336 = vector.broadcast %cst_118 : f32 to vector<16x32xf32>
    %337 = arith.mulf %335, %336 : vector<16x32xf32>
    %338 = arith.mulf %332, %332 : vector<16x32xf32>
    %cst_119 = arith.constant dense<0.000000e+00> : vector<16x32xf32>
    %339 = tpu.matmul %338, %3, %cst_119 {dimension_numbers = #tpu.dot_dimension_numbers<[1], [0], [0], [1], [0, 0, 1, 1], [], []>} : vector<16x32xf32>, vector<32x32xf32>, vector<16x32xf32> -> vector<16x32xf32>
    %cst_120 = arith.constant 3.125000e-02 : f32
    %340 = vector.broadcast %cst_120 : f32 to vector<16x32xf32>
    %341 = arith.mulf %339, %340 : vector<16x32xf32>
    %342 = arith.mulf %337, %337 : vector<16x32xf32>
    %343 = arith.subf %341, %342 : vector<16x32xf32>
    %cst_121 = arith.constant 9.99999974E-6 : f32
    %344 = vector.broadcast %cst_121 : f32 to vector<16x32xf32>
    %345 = arith.addf %343, %344 : vector<16x32xf32>
    %346 = math.rsqrt %345 : vector<16x32xf32>
    %347 = arith.subf %332, %337 : vector<16x32xf32>
    %348 = arith.mulf %347, %346 : vector<16x32xf32>
    %349 = vector.broadcast %333 : vector<1x32xf32> to vector<16x32xf32>
    %350 = arith.mulf %348, %349 : vector<16x32xf32>
    %351 = vector.broadcast %334 : vector<1x32xf32> to vector<16x32xf32>
    %352 = arith.addf %350, %351 : vector<16x32xf32>
    %c2_122 = arith.constant 2 : index
    %c0_123 = arith.constant 0 : index
    %c0_124 = arith.constant 0 : index
    %353 = vector.load %arg3[%c2_122, %c0_123, %c0_124] : memref<6x32x64xf32, #tpu.memory_space<vmem>>, vector<1x32x64xf32>
    %354 = vector.shape_cast %353 : vector<1x32x64xf32> to vector<32x64xf32>
    %cst_125 = arith.constant dense<0.000000e+00> : vector<16x64xf32>
    %355 = tpu.matmul %352, %354, %cst_125 {dimension_numbers = #tpu.dot_dimension_numbers<[1], [0], [0], [1], [0, 0, 1, 1], [], []>} : vector<16x32xf32>, vector<32x64xf32>, vector<16x64xf32> -> vector<16x64xf32>
    %c2_126 = arith.constant 2 : index
    %c0_127 = arith.constant 0 : index
    %c0_128 = arith.constant 0 : index
    %356 = vector.load %arg4[%c2_126, %c0_127, %c0_128] : memref<6x1x64xf32, #tpu.memory_space<vmem>>, vector<1x1x64xf32>
    %357 = vector.shape_cast %356 : vector<1x1x64xf32> to vector<1x64xf32>
    %358 = vector.broadcast %357 : vector<1x64xf32> to vector<16x64xf32>
    %359 = arith.addf %355, %358 : vector<16x64xf32>
    %cst_129 = arith.constant 0.000000e+00 : f32
    %360 = vector.broadcast %cst_129 : f32 to vector<16x64xf32>
    %361 = arith.maximumf %359, %360 : vector<16x64xf32>
    %c2_130 = arith.constant 2 : index
    %c0_131 = arith.constant 0 : index
    %c0_132 = arith.constant 0 : index
    %362 = vector.load %arg5[%c2_130, %c0_131, %c0_132] : memref<6x64x32xf32, #tpu.memory_space<vmem>>, vector<1x64x32xf32>
    %363 = vector.shape_cast %362 : vector<1x64x32xf32> to vector<64x32xf32>
    %cst_133 = arith.constant dense<0.000000e+00> : vector<16x32xf32>
    %364 = tpu.matmul %361, %363, %cst_133 {dimension_numbers = #tpu.dot_dimension_numbers<[1], [0], [0], [1], [0, 0, 1, 1], [], []>} : vector<16x64xf32>, vector<64x32xf32>, vector<16x32xf32> -> vector<16x32xf32>
    %365 = vector.extract_strided_slice %268 {offsets = [4, 0], sizes = [1, 32], strides = [1, 1]} : vector<9x32xf32> to vector<1x32xf32>
    %366 = vector.broadcast %365 : vector<1x32xf32> to vector<16x32xf32>
    %367 = arith.addf %364, %366 : vector<16x32xf32>
    %368 = arith.addf %352, %367 : vector<16x32xf32>
    %369 = vector.extract_strided_slice %268 {offsets = [7, 0], sizes = [1, 32], strides = [1, 1]} : vector<9x32xf32> to vector<1x32xf32>
    %370 = vector.extract_strided_slice %268 {offsets = [8, 0], sizes = [1, 32], strides = [1, 1]} : vector<9x32xf32> to vector<1x32xf32>
    %cst_134 = arith.constant dense<0.000000e+00> : vector<16x32xf32>
    %371 = tpu.matmul %368, %3, %cst_134 {dimension_numbers = #tpu.dot_dimension_numbers<[1], [0], [0], [1], [0, 0, 1, 1], [], []>} : vector<16x32xf32>, vector<32x32xf32>, vector<16x32xf32> -> vector<16x32xf32>
    %cst_135 = arith.constant 3.125000e-02 : f32
    %372 = vector.broadcast %cst_135 : f32 to vector<16x32xf32>
    %373 = arith.mulf %371, %372 : vector<16x32xf32>
    %374 = arith.mulf %368, %368 : vector<16x32xf32>
    %cst_136 = arith.constant dense<0.000000e+00> : vector<16x32xf32>
    %375 = tpu.matmul %374, %3, %cst_136 {dimension_numbers = #tpu.dot_dimension_numbers<[1], [0], [0], [1], [0, 0, 1, 1], [], []>} : vector<16x32xf32>, vector<32x32xf32>, vector<16x32xf32> -> vector<16x32xf32>
    %cst_137 = arith.constant 3.125000e-02 : f32
    %376 = vector.broadcast %cst_137 : f32 to vector<16x32xf32>
    %377 = arith.mulf %375, %376 : vector<16x32xf32>
    %378 = arith.mulf %373, %373 : vector<16x32xf32>
    %379 = arith.subf %377, %378 : vector<16x32xf32>
    %cst_138 = arith.constant 9.99999974E-6 : f32
    %380 = vector.broadcast %cst_138 : f32 to vector<16x32xf32>
    %381 = arith.addf %379, %380 : vector<16x32xf32>
    %382 = math.rsqrt %381 : vector<16x32xf32>
    %383 = arith.subf %368, %373 : vector<16x32xf32>
    %384 = arith.mulf %383, %382 : vector<16x32xf32>
    %385 = vector.broadcast %369 : vector<1x32xf32> to vector<16x32xf32>
    %386 = arith.mulf %384, %385 : vector<16x32xf32>
    %387 = vector.broadcast %370 : vector<1x32xf32> to vector<16x32xf32>
    %388 = arith.addf %386, %387 : vector<16x32xf32>
    %c3 = arith.constant 3 : index
    %c0_139 = arith.constant 0 : index
    %c0_140 = arith.constant 0 : index
    %c0_141 = arith.constant 0 : index
    %389 = vector.load %arg1[%c3, %c0_139, %c0_140, %c0_141] : memref<6x4x32x32xf32, #tpu.memory_space<vmem>>, vector<1x4x32x32xf32>
    %390 = vector.shape_cast %389 : vector<1x4x32x32xf32> to vector<4x32x32xf32>
    %c3_142 = arith.constant 3 : index
    %c0_143 = arith.constant 0 : index
    %c0_144 = arith.constant 0 : index
    %391 = vector.load %arg2[%c3_142, %c0_143, %c0_144] : memref<6x9x32xf32, #tpu.memory_space<vmem>>, vector<1x9x32xf32>
    %392 = vector.shape_cast %391 : vector<1x9x32xf32> to vector<9x32xf32>
    %393 = vector.extract_strided_slice %390 {offsets = [0, 0, 0], sizes = [1, 32, 32], strides = [1, 1, 1]} : vector<4x32x32xf32> to vector<1x32x32xf32>
    %394 = vector.shape_cast %393 : vector<1x32x32xf32> to vector<32x32xf32>
    %cst_145 = arith.constant dense<0.000000e+00> : vector<16x32xf32>
    %395 = tpu.matmul %388, %394, %cst_145 {dimension_numbers = #tpu.dot_dimension_numbers<[1], [0], [0], [1], [0, 0, 1, 1], [], []>} : vector<16x32xf32>, vector<32x32xf32>, vector<16x32xf32> -> vector<16x32xf32>
    %396 = vector.extract_strided_slice %392 {offsets = [0, 0], sizes = [1, 32], strides = [1, 1]} : vector<9x32xf32> to vector<1x32xf32>
    %397 = vector.broadcast %396 : vector<1x32xf32> to vector<16x32xf32>
    %398 = arith.addf %395, %397 : vector<16x32xf32>
    %399 = vector.extract_strided_slice %390 {offsets = [1, 0, 0], sizes = [1, 32, 32], strides = [1, 1, 1]} : vector<4x32x32xf32> to vector<1x32x32xf32>
    %400 = vector.shape_cast %399 : vector<1x32x32xf32> to vector<32x32xf32>
    %cst_146 = arith.constant dense<0.000000e+00> : vector<16x32xf32>
    %401 = tpu.matmul %388, %400, %cst_146 {dimension_numbers = #tpu.dot_dimension_numbers<[1], [0], [0], [1], [0, 0, 1, 1], [], []>} : vector<16x32xf32>, vector<32x32xf32>, vector<16x32xf32> -> vector<16x32xf32>
    %402 = vector.extract_strided_slice %392 {offsets = [1, 0], sizes = [1, 32], strides = [1, 1]} : vector<9x32xf32> to vector<1x32xf32>
    %403 = vector.broadcast %402 : vector<1x32xf32> to vector<16x32xf32>
    %404 = arith.addf %401, %403 : vector<16x32xf32>
    %405 = vector.extract_strided_slice %390 {offsets = [2, 0, 0], sizes = [1, 32, 32], strides = [1, 1, 1]} : vector<4x32x32xf32> to vector<1x32x32xf32>
    %406 = vector.shape_cast %405 : vector<1x32x32xf32> to vector<32x32xf32>
    %cst_147 = arith.constant dense<0.000000e+00> : vector<16x32xf32>
    %407 = tpu.matmul %388, %406, %cst_147 {dimension_numbers = #tpu.dot_dimension_numbers<[1], [0], [0], [1], [0, 0, 1, 1], [], []>} : vector<16x32xf32>, vector<32x32xf32>, vector<16x32xf32> -> vector<16x32xf32>
    %408 = vector.extract_strided_slice %392 {offsets = [2, 0], sizes = [1, 32], strides = [1, 1]} : vector<9x32xf32> to vector<1x32xf32>
    %409 = vector.broadcast %408 : vector<1x32xf32> to vector<16x32xf32>
    %410 = arith.addf %407, %409 : vector<16x32xf32>
    %411 = arith.mulf %404, %7 : vector<16x32xf32>
    %412 = arith.mulf %410, %7 : vector<16x32xf32>
    %cst_148 = arith.constant dense<0.000000e+00> : vector<16x16xf32>
    %413 = tpu.matmul %398, %411, %cst_148 {dimension_numbers = #tpu.dot_dimension_numbers<[1], [1], [0], [0], [0, 0, 1, 0], [], []>} : vector<16x32xf32>, vector<16x32xf32>, vector<16x16xf32> -> vector<16x16xf32>
    %414 = math.exp %413 : vector<16x16xf32>
    %415 = arith.mulf %414, %1 : vector<16x16xf32>
    %cst_149 = arith.constant dense<0.000000e+00> : vector<16x16xf32>
    %416 = tpu.matmul %415, %2, %cst_149 {dimension_numbers = #tpu.dot_dimension_numbers<[1], [0], [0], [1], [0, 0, 1, 1], [], []>} : vector<16x16xf32>, vector<16x16xf32>, vector<16x16xf32> -> vector<16x16xf32>
    %417 = tpu.reciprocal %416 : vector<16x16xf32> -> vector<16x16xf32>
    %418 = arith.mulf %415, %417 : vector<16x16xf32>
    %cst_150 = arith.constant dense<0.000000e+00> : vector<16x32xf32>
    %419 = tpu.matmul %418, %412, %cst_150 {dimension_numbers = #tpu.dot_dimension_numbers<[1], [0], [0], [1], [0, 0, 1, 1], [], []>} : vector<16x16xf32>, vector<16x32xf32>, vector<16x32xf32> -> vector<16x32xf32>
    %420 = arith.mulf %404, %10 : vector<16x32xf32>
    %421 = arith.mulf %410, %10 : vector<16x32xf32>
    %cst_151 = arith.constant dense<0.000000e+00> : vector<16x16xf32>
    %422 = tpu.matmul %398, %420, %cst_151 {dimension_numbers = #tpu.dot_dimension_numbers<[1], [1], [0], [0], [0, 0, 1, 0], [], []>} : vector<16x32xf32>, vector<16x32xf32>, vector<16x16xf32> -> vector<16x16xf32>
    %423 = math.exp %422 : vector<16x16xf32>
    %424 = arith.mulf %423, %1 : vector<16x16xf32>
    %cst_152 = arith.constant dense<0.000000e+00> : vector<16x16xf32>
    %425 = tpu.matmul %424, %2, %cst_152 {dimension_numbers = #tpu.dot_dimension_numbers<[1], [0], [0], [1], [0, 0, 1, 1], [], []>} : vector<16x16xf32>, vector<16x16xf32>, vector<16x16xf32> -> vector<16x16xf32>
    %426 = tpu.reciprocal %425 : vector<16x16xf32> -> vector<16x16xf32>
    %427 = arith.mulf %424, %426 : vector<16x16xf32>
    %cst_153 = arith.constant dense<0.000000e+00> : vector<16x32xf32>
    %428 = tpu.matmul %427, %421, %cst_153 {dimension_numbers = #tpu.dot_dimension_numbers<[1], [0], [0], [1], [0, 0, 1, 1], [], []>} : vector<16x16xf32>, vector<16x32xf32>, vector<16x32xf32> -> vector<16x32xf32>
    %429 = arith.addf %419, %428 : vector<16x32xf32>
    %430 = arith.mulf %404, %13 : vector<16x32xf32>
    %431 = arith.mulf %410, %13 : vector<16x32xf32>
    %cst_154 = arith.constant dense<0.000000e+00> : vector<16x16xf32>
    %432 = tpu.matmul %398, %430, %cst_154 {dimension_numbers = #tpu.dot_dimension_numbers<[1], [1], [0], [0], [0, 0, 1, 0], [], []>} : vector<16x32xf32>, vector<16x32xf32>, vector<16x16xf32> -> vector<16x16xf32>
    %433 = math.exp %432 : vector<16x16xf32>
    %434 = arith.mulf %433, %1 : vector<16x16xf32>
    %cst_155 = arith.constant dense<0.000000e+00> : vector<16x16xf32>
    %435 = tpu.matmul %434, %2, %cst_155 {dimension_numbers = #tpu.dot_dimension_numbers<[1], [0], [0], [1], [0, 0, 1, 1], [], []>} : vector<16x16xf32>, vector<16x16xf32>, vector<16x16xf32> -> vector<16x16xf32>
    %436 = tpu.reciprocal %435 : vector<16x16xf32> -> vector<16x16xf32>
    %437 = arith.mulf %434, %436 : vector<16x16xf32>
    %cst_156 = arith.constant dense<0.000000e+00> : vector<16x32xf32>
    %438 = tpu.matmul %437, %431, %cst_156 {dimension_numbers = #tpu.dot_dimension_numbers<[1], [0], [0], [1], [0, 0, 1, 1], [], []>} : vector<16x16xf32>, vector<16x32xf32>, vector<16x32xf32> -> vector<16x32xf32>
    %439 = arith.addf %429, %438 : vector<16x32xf32>
    %440 = arith.mulf %404, %16 : vector<16x32xf32>
    %441 = arith.mulf %410, %16 : vector<16x32xf32>
    %cst_157 = arith.constant dense<0.000000e+00> : vector<16x16xf32>
    %442 = tpu.matmul %398, %440, %cst_157 {dimension_numbers = #tpu.dot_dimension_numbers<[1], [1], [0], [0], [0, 0, 1, 0], [], []>} : vector<16x32xf32>, vector<16x32xf32>, vector<16x16xf32> -> vector<16x16xf32>
    %443 = math.exp %442 : vector<16x16xf32>
    %444 = arith.mulf %443, %1 : vector<16x16xf32>
    %cst_158 = arith.constant dense<0.000000e+00> : vector<16x16xf32>
    %445 = tpu.matmul %444, %2, %cst_158 {dimension_numbers = #tpu.dot_dimension_numbers<[1], [0], [0], [1], [0, 0, 1, 1], [], []>} : vector<16x16xf32>, vector<16x16xf32>, vector<16x16xf32> -> vector<16x16xf32>
    %446 = tpu.reciprocal %445 : vector<16x16xf32> -> vector<16x16xf32>
    %447 = arith.mulf %444, %446 : vector<16x16xf32>
    %cst_159 = arith.constant dense<0.000000e+00> : vector<16x32xf32>
    %448 = tpu.matmul %447, %441, %cst_159 {dimension_numbers = #tpu.dot_dimension_numbers<[1], [0], [0], [1], [0, 0, 1, 1], [], []>} : vector<16x16xf32>, vector<16x32xf32>, vector<16x32xf32> -> vector<16x32xf32>
    %449 = arith.addf %439, %448 : vector<16x32xf32>
    %450 = vector.extract_strided_slice %390 {offsets = [3, 0, 0], sizes = [1, 32, 32], strides = [1, 1, 1]} : vector<4x32x32xf32> to vector<1x32x32xf32>
    %451 = vector.shape_cast %450 : vector<1x32x32xf32> to vector<32x32xf32>
    %cst_160 = arith.constant dense<0.000000e+00> : vector<16x32xf32>
    %452 = tpu.matmul %449, %451, %cst_160 {dimension_numbers = #tpu.dot_dimension_numbers<[1], [0], [0], [1], [0, 0, 1, 1], [], []>} : vector<16x32xf32>, vector<32x32xf32>, vector<16x32xf32> -> vector<16x32xf32>
    %453 = vector.extract_strided_slice %392 {offsets = [3, 0], sizes = [1, 32], strides = [1, 1]} : vector<9x32xf32> to vector<1x32xf32>
    %454 = vector.broadcast %453 : vector<1x32xf32> to vector<16x32xf32>
    %455 = arith.addf %452, %454 : vector<16x32xf32>
    %456 = arith.addf %388, %455 : vector<16x32xf32>
    %457 = vector.extract_strided_slice %392 {offsets = [5, 0], sizes = [1, 32], strides = [1, 1]} : vector<9x32xf32> to vector<1x32xf32>
    %458 = vector.extract_strided_slice %392 {offsets = [6, 0], sizes = [1, 32], strides = [1, 1]} : vector<9x32xf32> to vector<1x32xf32>
    %cst_161 = arith.constant dense<0.000000e+00> : vector<16x32xf32>
    %459 = tpu.matmul %456, %3, %cst_161 {dimension_numbers = #tpu.dot_dimension_numbers<[1], [0], [0], [1], [0, 0, 1, 1], [], []>} : vector<16x32xf32>, vector<32x32xf32>, vector<16x32xf32> -> vector<16x32xf32>
    %cst_162 = arith.constant 3.125000e-02 : f32
    %460 = vector.broadcast %cst_162 : f32 to vector<16x32xf32>
    %461 = arith.mulf %459, %460 : vector<16x32xf32>
    %462 = arith.mulf %456, %456 : vector<16x32xf32>
    %cst_163 = arith.constant dense<0.000000e+00> : vector<16x32xf32>
    %463 = tpu.matmul %462, %3, %cst_163 {dimension_numbers = #tpu.dot_dimension_numbers<[1], [0], [0], [1], [0, 0, 1, 1], [], []>} : vector<16x32xf32>, vector<32x32xf32>, vector<16x32xf32> -> vector<16x32xf32>
    %cst_164 = arith.constant 3.125000e-02 : f32
    %464 = vector.broadcast %cst_164 : f32 to vector<16x32xf32>
    %465 = arith.mulf %463, %464 : vector<16x32xf32>
    %466 = arith.mulf %461, %461 : vector<16x32xf32>
    %467 = arith.subf %465, %466 : vector<16x32xf32>
    %cst_165 = arith.constant 9.99999974E-6 : f32
    %468 = vector.broadcast %cst_165 : f32 to vector<16x32xf32>
    %469 = arith.addf %467, %468 : vector<16x32xf32>
    %470 = math.rsqrt %469 : vector<16x32xf32>
    %471 = arith.subf %456, %461 : vector<16x32xf32>
    %472 = arith.mulf %471, %470 : vector<16x32xf32>
    %473 = vector.broadcast %457 : vector<1x32xf32> to vector<16x32xf32>
    %474 = arith.mulf %472, %473 : vector<16x32xf32>
    %475 = vector.broadcast %458 : vector<1x32xf32> to vector<16x32xf32>
    %476 = arith.addf %474, %475 : vector<16x32xf32>
    %c3_166 = arith.constant 3 : index
    %c0_167 = arith.constant 0 : index
    %c0_168 = arith.constant 0 : index
    %477 = vector.load %arg3[%c3_166, %c0_167, %c0_168] : memref<6x32x64xf32, #tpu.memory_space<vmem>>, vector<1x32x64xf32>
    %478 = vector.shape_cast %477 : vector<1x32x64xf32> to vector<32x64xf32>
    %cst_169 = arith.constant dense<0.000000e+00> : vector<16x64xf32>
    %479 = tpu.matmul %476, %478, %cst_169 {dimension_numbers = #tpu.dot_dimension_numbers<[1], [0], [0], [1], [0, 0, 1, 1], [], []>} : vector<16x32xf32>, vector<32x64xf32>, vector<16x64xf32> -> vector<16x64xf32>
    %c3_170 = arith.constant 3 : index
    %c0_171 = arith.constant 0 : index
    %c0_172 = arith.constant 0 : index
    %480 = vector.load %arg4[%c3_170, %c0_171, %c0_172] : memref<6x1x64xf32, #tpu.memory_space<vmem>>, vector<1x1x64xf32>
    %481 = vector.shape_cast %480 : vector<1x1x64xf32> to vector<1x64xf32>
    %482 = vector.broadcast %481 : vector<1x64xf32> to vector<16x64xf32>
    %483 = arith.addf %479, %482 : vector<16x64xf32>
    %cst_173 = arith.constant 0.000000e+00 : f32
    %484 = vector.broadcast %cst_173 : f32 to vector<16x64xf32>
    %485 = arith.maximumf %483, %484 : vector<16x64xf32>
    %c3_174 = arith.constant 3 : index
    %c0_175 = arith.constant 0 : index
    %c0_176 = arith.constant 0 : index
    %486 = vector.load %arg5[%c3_174, %c0_175, %c0_176] : memref<6x64x32xf32, #tpu.memory_space<vmem>>, vector<1x64x32xf32>
    %487 = vector.shape_cast %486 : vector<1x64x32xf32> to vector<64x32xf32>
    %cst_177 = arith.constant dense<0.000000e+00> : vector<16x32xf32>
    %488 = tpu.matmul %485, %487, %cst_177 {dimension_numbers = #tpu.dot_dimension_numbers<[1], [0], [0], [1], [0, 0, 1, 1], [], []>} : vector<16x64xf32>, vector<64x32xf32>, vector<16x32xf32> -> vector<16x32xf32>
    %489 = vector.extract_strided_slice %392 {offsets = [4, 0], sizes = [1, 32], strides = [1, 1]} : vector<9x32xf32> to vector<1x32xf32>
    %490 = vector.broadcast %489 : vector<1x32xf32> to vector<16x32xf32>
    %491 = arith.addf %488, %490 : vector<16x32xf32>
    %492 = arith.addf %476, %491 : vector<16x32xf32>
    %493 = vector.extract_strided_slice %392 {offsets = [7, 0], sizes = [1, 32], strides = [1, 1]} : vector<9x32xf32> to vector<1x32xf32>
    %494 = vector.extract_strided_slice %392 {offsets = [8, 0], sizes = [1, 32], strides = [1, 1]} : vector<9x32xf32> to vector<1x32xf32>
    %cst_178 = arith.constant dense<0.000000e+00> : vector<16x32xf32>
    %495 = tpu.matmul %492, %3, %cst_178 {dimension_numbers = #tpu.dot_dimension_numbers<[1], [0], [0], [1], [0, 0, 1, 1], [], []>} : vector<16x32xf32>, vector<32x32xf32>, vector<16x32xf32> -> vector<16x32xf32>
    %cst_179 = arith.constant 3.125000e-02 : f32
    %496 = vector.broadcast %cst_179 : f32 to vector<16x32xf32>
    %497 = arith.mulf %495, %496 : vector<16x32xf32>
    %498 = arith.mulf %492, %492 : vector<16x32xf32>
    %cst_180 = arith.constant dense<0.000000e+00> : vector<16x32xf32>
    %499 = tpu.matmul %498, %3, %cst_180 {dimension_numbers = #tpu.dot_dimension_numbers<[1], [0], [0], [1], [0, 0, 1, 1], [], []>} : vector<16x32xf32>, vector<32x32xf32>, vector<16x32xf32> -> vector<16x32xf32>
    %cst_181 = arith.constant 3.125000e-02 : f32
    %500 = vector.broadcast %cst_181 : f32 to vector<16x32xf32>
    %501 = arith.mulf %499, %500 : vector<16x32xf32>
    %502 = arith.mulf %497, %497 : vector<16x32xf32>
    %503 = arith.subf %501, %502 : vector<16x32xf32>
    %cst_182 = arith.constant 9.99999974E-6 : f32
    %504 = vector.broadcast %cst_182 : f32 to vector<16x32xf32>
    %505 = arith.addf %503, %504 : vector<16x32xf32>
    %506 = math.rsqrt %505 : vector<16x32xf32>
    %507 = arith.subf %492, %497 : vector<16x32xf32>
    %508 = arith.mulf %507, %506 : vector<16x32xf32>
    %509 = vector.broadcast %493 : vector<1x32xf32> to vector<16x32xf32>
    %510 = arith.mulf %508, %509 : vector<16x32xf32>
    %511 = vector.broadcast %494 : vector<1x32xf32> to vector<16x32xf32>
    %512 = arith.addf %510, %511 : vector<16x32xf32>
    %c4 = arith.constant 4 : index
    %c0_183 = arith.constant 0 : index
    %c0_184 = arith.constant 0 : index
    %c0_185 = arith.constant 0 : index
    %513 = vector.load %arg1[%c4, %c0_183, %c0_184, %c0_185] : memref<6x4x32x32xf32, #tpu.memory_space<vmem>>, vector<1x4x32x32xf32>
    %514 = vector.shape_cast %513 : vector<1x4x32x32xf32> to vector<4x32x32xf32>
    %c4_186 = arith.constant 4 : index
    %c0_187 = arith.constant 0 : index
    %c0_188 = arith.constant 0 : index
    %515 = vector.load %arg2[%c4_186, %c0_187, %c0_188] : memref<6x9x32xf32, #tpu.memory_space<vmem>>, vector<1x9x32xf32>
    %516 = vector.shape_cast %515 : vector<1x9x32xf32> to vector<9x32xf32>
    %517 = vector.extract_strided_slice %514 {offsets = [0, 0, 0], sizes = [1, 32, 32], strides = [1, 1, 1]} : vector<4x32x32xf32> to vector<1x32x32xf32>
    %518 = vector.shape_cast %517 : vector<1x32x32xf32> to vector<32x32xf32>
    %cst_189 = arith.constant dense<0.000000e+00> : vector<16x32xf32>
    %519 = tpu.matmul %512, %518, %cst_189 {dimension_numbers = #tpu.dot_dimension_numbers<[1], [0], [0], [1], [0, 0, 1, 1], [], []>} : vector<16x32xf32>, vector<32x32xf32>, vector<16x32xf32> -> vector<16x32xf32>
    %520 = vector.extract_strided_slice %516 {offsets = [0, 0], sizes = [1, 32], strides = [1, 1]} : vector<9x32xf32> to vector<1x32xf32>
    %521 = vector.broadcast %520 : vector<1x32xf32> to vector<16x32xf32>
    %522 = arith.addf %519, %521 : vector<16x32xf32>
    %523 = vector.extract_strided_slice %514 {offsets = [1, 0, 0], sizes = [1, 32, 32], strides = [1, 1, 1]} : vector<4x32x32xf32> to vector<1x32x32xf32>
    %524 = vector.shape_cast %523 : vector<1x32x32xf32> to vector<32x32xf32>
    %cst_190 = arith.constant dense<0.000000e+00> : vector<16x32xf32>
    %525 = tpu.matmul %512, %524, %cst_190 {dimension_numbers = #tpu.dot_dimension_numbers<[1], [0], [0], [1], [0, 0, 1, 1], [], []>} : vector<16x32xf32>, vector<32x32xf32>, vector<16x32xf32> -> vector<16x32xf32>
    %526 = vector.extract_strided_slice %516 {offsets = [1, 0], sizes = [1, 32], strides = [1, 1]} : vector<9x32xf32> to vector<1x32xf32>
    %527 = vector.broadcast %526 : vector<1x32xf32> to vector<16x32xf32>
    %528 = arith.addf %525, %527 : vector<16x32xf32>
    %529 = vector.extract_strided_slice %514 {offsets = [2, 0, 0], sizes = [1, 32, 32], strides = [1, 1, 1]} : vector<4x32x32xf32> to vector<1x32x32xf32>
    %530 = vector.shape_cast %529 : vector<1x32x32xf32> to vector<32x32xf32>
    %cst_191 = arith.constant dense<0.000000e+00> : vector<16x32xf32>
    %531 = tpu.matmul %512, %530, %cst_191 {dimension_numbers = #tpu.dot_dimension_numbers<[1], [0], [0], [1], [0, 0, 1, 1], [], []>} : vector<16x32xf32>, vector<32x32xf32>, vector<16x32xf32> -> vector<16x32xf32>
    %532 = vector.extract_strided_slice %516 {offsets = [2, 0], sizes = [1, 32], strides = [1, 1]} : vector<9x32xf32> to vector<1x32xf32>
    %533 = vector.broadcast %532 : vector<1x32xf32> to vector<16x32xf32>
    %534 = arith.addf %531, %533 : vector<16x32xf32>
    %535 = arith.mulf %528, %7 : vector<16x32xf32>
    %536 = arith.mulf %534, %7 : vector<16x32xf32>
    %cst_192 = arith.constant dense<0.000000e+00> : vector<16x16xf32>
    %537 = tpu.matmul %522, %535, %cst_192 {dimension_numbers = #tpu.dot_dimension_numbers<[1], [1], [0], [0], [0, 0, 1, 0], [], []>} : vector<16x32xf32>, vector<16x32xf32>, vector<16x16xf32> -> vector<16x16xf32>
    %538 = math.exp %537 : vector<16x16xf32>
    %539 = arith.mulf %538, %1 : vector<16x16xf32>
    %cst_193 = arith.constant dense<0.000000e+00> : vector<16x16xf32>
    %540 = tpu.matmul %539, %2, %cst_193 {dimension_numbers = #tpu.dot_dimension_numbers<[1], [0], [0], [1], [0, 0, 1, 1], [], []>} : vector<16x16xf32>, vector<16x16xf32>, vector<16x16xf32> -> vector<16x16xf32>
    %541 = tpu.reciprocal %540 : vector<16x16xf32> -> vector<16x16xf32>
    %542 = arith.mulf %539, %541 : vector<16x16xf32>
    %cst_194 = arith.constant dense<0.000000e+00> : vector<16x32xf32>
    %543 = tpu.matmul %542, %536, %cst_194 {dimension_numbers = #tpu.dot_dimension_numbers<[1], [0], [0], [1], [0, 0, 1, 1], [], []>} : vector<16x16xf32>, vector<16x32xf32>, vector<16x32xf32> -> vector<16x32xf32>
    %544 = arith.mulf %528, %10 : vector<16x32xf32>
    %545 = arith.mulf %534, %10 : vector<16x32xf32>
    %cst_195 = arith.constant dense<0.000000e+00> : vector<16x16xf32>
    %546 = tpu.matmul %522, %544, %cst_195 {dimension_numbers = #tpu.dot_dimension_numbers<[1], [1], [0], [0], [0, 0, 1, 0], [], []>} : vector<16x32xf32>, vector<16x32xf32>, vector<16x16xf32> -> vector<16x16xf32>
    %547 = math.exp %546 : vector<16x16xf32>
    %548 = arith.mulf %547, %1 : vector<16x16xf32>
    %cst_196 = arith.constant dense<0.000000e+00> : vector<16x16xf32>
    %549 = tpu.matmul %548, %2, %cst_196 {dimension_numbers = #tpu.dot_dimension_numbers<[1], [0], [0], [1], [0, 0, 1, 1], [], []>} : vector<16x16xf32>, vector<16x16xf32>, vector<16x16xf32> -> vector<16x16xf32>
    %550 = tpu.reciprocal %549 : vector<16x16xf32> -> vector<16x16xf32>
    %551 = arith.mulf %548, %550 : vector<16x16xf32>
    %cst_197 = arith.constant dense<0.000000e+00> : vector<16x32xf32>
    %552 = tpu.matmul %551, %545, %cst_197 {dimension_numbers = #tpu.dot_dimension_numbers<[1], [0], [0], [1], [0, 0, 1, 1], [], []>} : vector<16x16xf32>, vector<16x32xf32>, vector<16x32xf32> -> vector<16x32xf32>
    %553 = arith.addf %543, %552 : vector<16x32xf32>
    %554 = arith.mulf %528, %13 : vector<16x32xf32>
    %555 = arith.mulf %534, %13 : vector<16x32xf32>
    %cst_198 = arith.constant dense<0.000000e+00> : vector<16x16xf32>
    %556 = tpu.matmul %522, %554, %cst_198 {dimension_numbers = #tpu.dot_dimension_numbers<[1], [1], [0], [0], [0, 0, 1, 0], [], []>} : vector<16x32xf32>, vector<16x32xf32>, vector<16x16xf32> -> vector<16x16xf32>
    %557 = math.exp %556 : vector<16x16xf32>
    %558 = arith.mulf %557, %1 : vector<16x16xf32>
    %cst_199 = arith.constant dense<0.000000e+00> : vector<16x16xf32>
    %559 = tpu.matmul %558, %2, %cst_199 {dimension_numbers = #tpu.dot_dimension_numbers<[1], [0], [0], [1], [0, 0, 1, 1], [], []>} : vector<16x16xf32>, vector<16x16xf32>, vector<16x16xf32> -> vector<16x16xf32>
    %560 = tpu.reciprocal %559 : vector<16x16xf32> -> vector<16x16xf32>
    %561 = arith.mulf %558, %560 : vector<16x16xf32>
    %cst_200 = arith.constant dense<0.000000e+00> : vector<16x32xf32>
    %562 = tpu.matmul %561, %555, %cst_200 {dimension_numbers = #tpu.dot_dimension_numbers<[1], [0], [0], [1], [0, 0, 1, 1], [], []>} : vector<16x16xf32>, vector<16x32xf32>, vector<16x32xf32> -> vector<16x32xf32>
    %563 = arith.addf %553, %562 : vector<16x32xf32>
    %564 = arith.mulf %528, %16 : vector<16x32xf32>
    %565 = arith.mulf %534, %16 : vector<16x32xf32>
    %cst_201 = arith.constant dense<0.000000e+00> : vector<16x16xf32>
    %566 = tpu.matmul %522, %564, %cst_201 {dimension_numbers = #tpu.dot_dimension_numbers<[1], [1], [0], [0], [0, 0, 1, 0], [], []>} : vector<16x32xf32>, vector<16x32xf32>, vector<16x16xf32> -> vector<16x16xf32>
    %567 = math.exp %566 : vector<16x16xf32>
    %568 = arith.mulf %567, %1 : vector<16x16xf32>
    %cst_202 = arith.constant dense<0.000000e+00> : vector<16x16xf32>
    %569 = tpu.matmul %568, %2, %cst_202 {dimension_numbers = #tpu.dot_dimension_numbers<[1], [0], [0], [1], [0, 0, 1, 1], [], []>} : vector<16x16xf32>, vector<16x16xf32>, vector<16x16xf32> -> vector<16x16xf32>
    %570 = tpu.reciprocal %569 : vector<16x16xf32> -> vector<16x16xf32>
    %571 = arith.mulf %568, %570 : vector<16x16xf32>
    %cst_203 = arith.constant dense<0.000000e+00> : vector<16x32xf32>
    %572 = tpu.matmul %571, %565, %cst_203 {dimension_numbers = #tpu.dot_dimension_numbers<[1], [0], [0], [1], [0, 0, 1, 1], [], []>} : vector<16x16xf32>, vector<16x32xf32>, vector<16x32xf32> -> vector<16x32xf32>
    %573 = arith.addf %563, %572 : vector<16x32xf32>
    %574 = vector.extract_strided_slice %514 {offsets = [3, 0, 0], sizes = [1, 32, 32], strides = [1, 1, 1]} : vector<4x32x32xf32> to vector<1x32x32xf32>
    %575 = vector.shape_cast %574 : vector<1x32x32xf32> to vector<32x32xf32>
    %cst_204 = arith.constant dense<0.000000e+00> : vector<16x32xf32>
    %576 = tpu.matmul %573, %575, %cst_204 {dimension_numbers = #tpu.dot_dimension_numbers<[1], [0], [0], [1], [0, 0, 1, 1], [], []>} : vector<16x32xf32>, vector<32x32xf32>, vector<16x32xf32> -> vector<16x32xf32>
    %577 = vector.extract_strided_slice %516 {offsets = [3, 0], sizes = [1, 32], strides = [1, 1]} : vector<9x32xf32> to vector<1x32xf32>
    %578 = vector.broadcast %577 : vector<1x32xf32> to vector<16x32xf32>
    %579 = arith.addf %576, %578 : vector<16x32xf32>
    %580 = arith.addf %512, %579 : vector<16x32xf32>
    %581 = vector.extract_strided_slice %516 {offsets = [5, 0], sizes = [1, 32], strides = [1, 1]} : vector<9x32xf32> to vector<1x32xf32>
    %582 = vector.extract_strided_slice %516 {offsets = [6, 0], sizes = [1, 32], strides = [1, 1]} : vector<9x32xf32> to vector<1x32xf32>
    %cst_205 = arith.constant dense<0.000000e+00> : vector<16x32xf32>
    %583 = tpu.matmul %580, %3, %cst_205 {dimension_numbers = #tpu.dot_dimension_numbers<[1], [0], [0], [1], [0, 0, 1, 1], [], []>} : vector<16x32xf32>, vector<32x32xf32>, vector<16x32xf32> -> vector<16x32xf32>
    %cst_206 = arith.constant 3.125000e-02 : f32
    %584 = vector.broadcast %cst_206 : f32 to vector<16x32xf32>
    %585 = arith.mulf %583, %584 : vector<16x32xf32>
    %586 = arith.mulf %580, %580 : vector<16x32xf32>
    %cst_207 = arith.constant dense<0.000000e+00> : vector<16x32xf32>
    %587 = tpu.matmul %586, %3, %cst_207 {dimension_numbers = #tpu.dot_dimension_numbers<[1], [0], [0], [1], [0, 0, 1, 1], [], []>} : vector<16x32xf32>, vector<32x32xf32>, vector<16x32xf32> -> vector<16x32xf32>
    %cst_208 = arith.constant 3.125000e-02 : f32
    %588 = vector.broadcast %cst_208 : f32 to vector<16x32xf32>
    %589 = arith.mulf %587, %588 : vector<16x32xf32>
    %590 = arith.mulf %585, %585 : vector<16x32xf32>
    %591 = arith.subf %589, %590 : vector<16x32xf32>
    %cst_209 = arith.constant 9.99999974E-6 : f32
    %592 = vector.broadcast %cst_209 : f32 to vector<16x32xf32>
    %593 = arith.addf %591, %592 : vector<16x32xf32>
    %594 = math.rsqrt %593 : vector<16x32xf32>
    %595 = arith.subf %580, %585 : vector<16x32xf32>
    %596 = arith.mulf %595, %594 : vector<16x32xf32>
    %597 = vector.broadcast %581 : vector<1x32xf32> to vector<16x32xf32>
    %598 = arith.mulf %596, %597 : vector<16x32xf32>
    %599 = vector.broadcast %582 : vector<1x32xf32> to vector<16x32xf32>
    %600 = arith.addf %598, %599 : vector<16x32xf32>
    %c4_210 = arith.constant 4 : index
    %c0_211 = arith.constant 0 : index
    %c0_212 = arith.constant 0 : index
    %601 = vector.load %arg3[%c4_210, %c0_211, %c0_212] : memref<6x32x64xf32, #tpu.memory_space<vmem>>, vector<1x32x64xf32>
    %602 = vector.shape_cast %601 : vector<1x32x64xf32> to vector<32x64xf32>
    %cst_213 = arith.constant dense<0.000000e+00> : vector<16x64xf32>
    %603 = tpu.matmul %600, %602, %cst_213 {dimension_numbers = #tpu.dot_dimension_numbers<[1], [0], [0], [1], [0, 0, 1, 1], [], []>} : vector<16x32xf32>, vector<32x64xf32>, vector<16x64xf32> -> vector<16x64xf32>
    %c4_214 = arith.constant 4 : index
    %c0_215 = arith.constant 0 : index
    %c0_216 = arith.constant 0 : index
    %604 = vector.load %arg4[%c4_214, %c0_215, %c0_216] : memref<6x1x64xf32, #tpu.memory_space<vmem>>, vector<1x1x64xf32>
    %605 = vector.shape_cast %604 : vector<1x1x64xf32> to vector<1x64xf32>
    %606 = vector.broadcast %605 : vector<1x64xf32> to vector<16x64xf32>
    %607 = arith.addf %603, %606 : vector<16x64xf32>
    %cst_217 = arith.constant 0.000000e+00 : f32
    %608 = vector.broadcast %cst_217 : f32 to vector<16x64xf32>
    %609 = arith.maximumf %607, %608 : vector<16x64xf32>
    %c4_218 = arith.constant 4 : index
    %c0_219 = arith.constant 0 : index
    %c0_220 = arith.constant 0 : index
    %610 = vector.load %arg5[%c4_218, %c0_219, %c0_220] : memref<6x64x32xf32, #tpu.memory_space<vmem>>, vector<1x64x32xf32>
    %611 = vector.shape_cast %610 : vector<1x64x32xf32> to vector<64x32xf32>
    %cst_221 = arith.constant dense<0.000000e+00> : vector<16x32xf32>
    %612 = tpu.matmul %609, %611, %cst_221 {dimension_numbers = #tpu.dot_dimension_numbers<[1], [0], [0], [1], [0, 0, 1, 1], [], []>} : vector<16x64xf32>, vector<64x32xf32>, vector<16x32xf32> -> vector<16x32xf32>
    %613 = vector.extract_strided_slice %516 {offsets = [4, 0], sizes = [1, 32], strides = [1, 1]} : vector<9x32xf32> to vector<1x32xf32>
    %614 = vector.broadcast %613 : vector<1x32xf32> to vector<16x32xf32>
    %615 = arith.addf %612, %614 : vector<16x32xf32>
    %616 = arith.addf %600, %615 : vector<16x32xf32>
    %617 = vector.extract_strided_slice %516 {offsets = [7, 0], sizes = [1, 32], strides = [1, 1]} : vector<9x32xf32> to vector<1x32xf32>
    %618 = vector.extract_strided_slice %516 {offsets = [8, 0], sizes = [1, 32], strides = [1, 1]} : vector<9x32xf32> to vector<1x32xf32>
    %cst_222 = arith.constant dense<0.000000e+00> : vector<16x32xf32>
    %619 = tpu.matmul %616, %3, %cst_222 {dimension_numbers = #tpu.dot_dimension_numbers<[1], [0], [0], [1], [0, 0, 1, 1], [], []>} : vector<16x32xf32>, vector<32x32xf32>, vector<16x32xf32> -> vector<16x32xf32>
    %cst_223 = arith.constant 3.125000e-02 : f32
    %620 = vector.broadcast %cst_223 : f32 to vector<16x32xf32>
    %621 = arith.mulf %619, %620 : vector<16x32xf32>
    %622 = arith.mulf %616, %616 : vector<16x32xf32>
    %cst_224 = arith.constant dense<0.000000e+00> : vector<16x32xf32>
    %623 = tpu.matmul %622, %3, %cst_224 {dimension_numbers = #tpu.dot_dimension_numbers<[1], [0], [0], [1], [0, 0, 1, 1], [], []>} : vector<16x32xf32>, vector<32x32xf32>, vector<16x32xf32> -> vector<16x32xf32>
    %cst_225 = arith.constant 3.125000e-02 : f32
    %624 = vector.broadcast %cst_225 : f32 to vector<16x32xf32>
    %625 = arith.mulf %623, %624 : vector<16x32xf32>
    %626 = arith.mulf %621, %621 : vector<16x32xf32>
    %627 = arith.subf %625, %626 : vector<16x32xf32>
    %cst_226 = arith.constant 9.99999974E-6 : f32
    %628 = vector.broadcast %cst_226 : f32 to vector<16x32xf32>
    %629 = arith.addf %627, %628 : vector<16x32xf32>
    %630 = math.rsqrt %629 : vector<16x32xf32>
    %631 = arith.subf %616, %621 : vector<16x32xf32>
    %632 = arith.mulf %631, %630 : vector<16x32xf32>
    %633 = vector.broadcast %617 : vector<1x32xf32> to vector<16x32xf32>
    %634 = arith.mulf %632, %633 : vector<16x32xf32>
    %635 = vector.broadcast %618 : vector<1x32xf32> to vector<16x32xf32>
    %636 = arith.addf %634, %635 : vector<16x32xf32>
    %c5 = arith.constant 5 : index
    %c0_227 = arith.constant 0 : index
    %c0_228 = arith.constant 0 : index
    %c0_229 = arith.constant 0 : index
    %637 = vector.load %arg1[%c5, %c0_227, %c0_228, %c0_229] : memref<6x4x32x32xf32, #tpu.memory_space<vmem>>, vector<1x4x32x32xf32>
    %638 = vector.shape_cast %637 : vector<1x4x32x32xf32> to vector<4x32x32xf32>
    %c5_230 = arith.constant 5 : index
    %c0_231 = arith.constant 0 : index
    %c0_232 = arith.constant 0 : index
    %639 = vector.load %arg2[%c5_230, %c0_231, %c0_232] : memref<6x9x32xf32, #tpu.memory_space<vmem>>, vector<1x9x32xf32>
    %640 = vector.shape_cast %639 : vector<1x9x32xf32> to vector<9x32xf32>
    %641 = vector.extract_strided_slice %638 {offsets = [0, 0, 0], sizes = [1, 32, 32], strides = [1, 1, 1]} : vector<4x32x32xf32> to vector<1x32x32xf32>
    %642 = vector.shape_cast %641 : vector<1x32x32xf32> to vector<32x32xf32>
    %cst_233 = arith.constant dense<0.000000e+00> : vector<16x32xf32>
    %643 = tpu.matmul %636, %642, %cst_233 {dimension_numbers = #tpu.dot_dimension_numbers<[1], [0], [0], [1], [0, 0, 1, 1], [], []>} : vector<16x32xf32>, vector<32x32xf32>, vector<16x32xf32> -> vector<16x32xf32>
    %644 = vector.extract_strided_slice %640 {offsets = [0, 0], sizes = [1, 32], strides = [1, 1]} : vector<9x32xf32> to vector<1x32xf32>
    %645 = vector.broadcast %644 : vector<1x32xf32> to vector<16x32xf32>
    %646 = arith.addf %643, %645 : vector<16x32xf32>
    %647 = vector.extract_strided_slice %638 {offsets = [1, 0, 0], sizes = [1, 32, 32], strides = [1, 1, 1]} : vector<4x32x32xf32> to vector<1x32x32xf32>
    %648 = vector.shape_cast %647 : vector<1x32x32xf32> to vector<32x32xf32>
    %cst_234 = arith.constant dense<0.000000e+00> : vector<16x32xf32>
    %649 = tpu.matmul %636, %648, %cst_234 {dimension_numbers = #tpu.dot_dimension_numbers<[1], [0], [0], [1], [0, 0, 1, 1], [], []>} : vector<16x32xf32>, vector<32x32xf32>, vector<16x32xf32> -> vector<16x32xf32>
    %650 = vector.extract_strided_slice %640 {offsets = [1, 0], sizes = [1, 32], strides = [1, 1]} : vector<9x32xf32> to vector<1x32xf32>
    %651 = vector.broadcast %650 : vector<1x32xf32> to vector<16x32xf32>
    %652 = arith.addf %649, %651 : vector<16x32xf32>
    %653 = vector.extract_strided_slice %638 {offsets = [2, 0, 0], sizes = [1, 32, 32], strides = [1, 1, 1]} : vector<4x32x32xf32> to vector<1x32x32xf32>
    %654 = vector.shape_cast %653 : vector<1x32x32xf32> to vector<32x32xf32>
    %cst_235 = arith.constant dense<0.000000e+00> : vector<16x32xf32>
    %655 = tpu.matmul %636, %654, %cst_235 {dimension_numbers = #tpu.dot_dimension_numbers<[1], [0], [0], [1], [0, 0, 1, 1], [], []>} : vector<16x32xf32>, vector<32x32xf32>, vector<16x32xf32> -> vector<16x32xf32>
    %656 = vector.extract_strided_slice %640 {offsets = [2, 0], sizes = [1, 32], strides = [1, 1]} : vector<9x32xf32> to vector<1x32xf32>
    %657 = vector.broadcast %656 : vector<1x32xf32> to vector<16x32xf32>
    %658 = arith.addf %655, %657 : vector<16x32xf32>
    %659 = arith.mulf %652, %7 : vector<16x32xf32>
    %660 = arith.mulf %658, %7 : vector<16x32xf32>
    %cst_236 = arith.constant dense<0.000000e+00> : vector<16x16xf32>
    %661 = tpu.matmul %646, %659, %cst_236 {dimension_numbers = #tpu.dot_dimension_numbers<[1], [1], [0], [0], [0, 0, 1, 0], [], []>} : vector<16x32xf32>, vector<16x32xf32>, vector<16x16xf32> -> vector<16x16xf32>
    %662 = math.exp %661 : vector<16x16xf32>
    %663 = arith.mulf %662, %1 : vector<16x16xf32>
    %cst_237 = arith.constant dense<0.000000e+00> : vector<16x16xf32>
    %664 = tpu.matmul %663, %2, %cst_237 {dimension_numbers = #tpu.dot_dimension_numbers<[1], [0], [0], [1], [0, 0, 1, 1], [], []>} : vector<16x16xf32>, vector<16x16xf32>, vector<16x16xf32> -> vector<16x16xf32>
    %665 = tpu.reciprocal %664 : vector<16x16xf32> -> vector<16x16xf32>
    %666 = arith.mulf %663, %665 : vector<16x16xf32>
    %cst_238 = arith.constant dense<0.000000e+00> : vector<16x32xf32>
    %667 = tpu.matmul %666, %660, %cst_238 {dimension_numbers = #tpu.dot_dimension_numbers<[1], [0], [0], [1], [0, 0, 1, 1], [], []>} : vector<16x16xf32>, vector<16x32xf32>, vector<16x32xf32> -> vector<16x32xf32>
    %668 = arith.mulf %652, %10 : vector<16x32xf32>
    %669 = arith.mulf %658, %10 : vector<16x32xf32>
    %cst_239 = arith.constant dense<0.000000e+00> : vector<16x16xf32>
    %670 = tpu.matmul %646, %668, %cst_239 {dimension_numbers = #tpu.dot_dimension_numbers<[1], [1], [0], [0], [0, 0, 1, 0], [], []>} : vector<16x32xf32>, vector<16x32xf32>, vector<16x16xf32> -> vector<16x16xf32>
    %671 = math.exp %670 : vector<16x16xf32>
    %672 = arith.mulf %671, %1 : vector<16x16xf32>
    %cst_240 = arith.constant dense<0.000000e+00> : vector<16x16xf32>
    %673 = tpu.matmul %672, %2, %cst_240 {dimension_numbers = #tpu.dot_dimension_numbers<[1], [0], [0], [1], [0, 0, 1, 1], [], []>} : vector<16x16xf32>, vector<16x16xf32>, vector<16x16xf32> -> vector<16x16xf32>
    %674 = tpu.reciprocal %673 : vector<16x16xf32> -> vector<16x16xf32>
    %675 = arith.mulf %672, %674 : vector<16x16xf32>
    %cst_241 = arith.constant dense<0.000000e+00> : vector<16x32xf32>
    %676 = tpu.matmul %675, %669, %cst_241 {dimension_numbers = #tpu.dot_dimension_numbers<[1], [0], [0], [1], [0, 0, 1, 1], [], []>} : vector<16x16xf32>, vector<16x32xf32>, vector<16x32xf32> -> vector<16x32xf32>
    %677 = arith.addf %667, %676 : vector<16x32xf32>
    %678 = arith.mulf %652, %13 : vector<16x32xf32>
    %679 = arith.mulf %658, %13 : vector<16x32xf32>
    %cst_242 = arith.constant dense<0.000000e+00> : vector<16x16xf32>
    %680 = tpu.matmul %646, %678, %cst_242 {dimension_numbers = #tpu.dot_dimension_numbers<[1], [1], [0], [0], [0, 0, 1, 0], [], []>} : vector<16x32xf32>, vector<16x32xf32>, vector<16x16xf32> -> vector<16x16xf32>
    %681 = math.exp %680 : vector<16x16xf32>
    %682 = arith.mulf %681, %1 : vector<16x16xf32>
    %cst_243 = arith.constant dense<0.000000e+00> : vector<16x16xf32>
    %683 = tpu.matmul %682, %2, %cst_243 {dimension_numbers = #tpu.dot_dimension_numbers<[1], [0], [0], [1], [0, 0, 1, 1], [], []>} : vector<16x16xf32>, vector<16x16xf32>, vector<16x16xf32> -> vector<16x16xf32>
    %684 = tpu.reciprocal %683 : vector<16x16xf32> -> vector<16x16xf32>
    %685 = arith.mulf %682, %684 : vector<16x16xf32>
    %cst_244 = arith.constant dense<0.000000e+00> : vector<16x32xf32>
    %686 = tpu.matmul %685, %679, %cst_244 {dimension_numbers = #tpu.dot_dimension_numbers<[1], [0], [0], [1], [0, 0, 1, 1], [], []>} : vector<16x16xf32>, vector<16x32xf32>, vector<16x32xf32> -> vector<16x32xf32>
    %687 = arith.addf %677, %686 : vector<16x32xf32>
    %688 = arith.mulf %652, %16 : vector<16x32xf32>
    %689 = arith.mulf %658, %16 : vector<16x32xf32>
    %cst_245 = arith.constant dense<0.000000e+00> : vector<16x16xf32>
    %690 = tpu.matmul %646, %688, %cst_245 {dimension_numbers = #tpu.dot_dimension_numbers<[1], [1], [0], [0], [0, 0, 1, 0], [], []>} : vector<16x32xf32>, vector<16x32xf32>, vector<16x16xf32> -> vector<16x16xf32>
    %691 = math.exp %690 : vector<16x16xf32>
    %692 = arith.mulf %691, %1 : vector<16x16xf32>
    %cst_246 = arith.constant dense<0.000000e+00> : vector<16x16xf32>
    %693 = tpu.matmul %692, %2, %cst_246 {dimension_numbers = #tpu.dot_dimension_numbers<[1], [0], [0], [1], [0, 0, 1, 1], [], []>} : vector<16x16xf32>, vector<16x16xf32>, vector<16x16xf32> -> vector<16x16xf32>
    %694 = tpu.reciprocal %693 : vector<16x16xf32> -> vector<16x16xf32>
    %695 = arith.mulf %692, %694 : vector<16x16xf32>
    %cst_247 = arith.constant dense<0.000000e+00> : vector<16x32xf32>
    %696 = tpu.matmul %695, %689, %cst_247 {dimension_numbers = #tpu.dot_dimension_numbers<[1], [0], [0], [1], [0, 0, 1, 1], [], []>} : vector<16x16xf32>, vector<16x32xf32>, vector<16x32xf32> -> vector<16x32xf32>
    %697 = arith.addf %687, %696 : vector<16x32xf32>
    %698 = vector.extract_strided_slice %638 {offsets = [3, 0, 0], sizes = [1, 32, 32], strides = [1, 1, 1]} : vector<4x32x32xf32> to vector<1x32x32xf32>
    %699 = vector.shape_cast %698 : vector<1x32x32xf32> to vector<32x32xf32>
    %cst_248 = arith.constant dense<0.000000e+00> : vector<16x32xf32>
    %700 = tpu.matmul %697, %699, %cst_248 {dimension_numbers = #tpu.dot_dimension_numbers<[1], [0], [0], [1], [0, 0, 1, 1], [], []>} : vector<16x32xf32>, vector<32x32xf32>, vector<16x32xf32> -> vector<16x32xf32>
    %701 = vector.extract_strided_slice %640 {offsets = [3, 0], sizes = [1, 32], strides = [1, 1]} : vector<9x32xf32> to vector<1x32xf32>
    %702 = vector.broadcast %701 : vector<1x32xf32> to vector<16x32xf32>
    %703 = arith.addf %700, %702 : vector<16x32xf32>
    %704 = arith.addf %636, %703 : vector<16x32xf32>
    %705 = vector.extract_strided_slice %640 {offsets = [5, 0], sizes = [1, 32], strides = [1, 1]} : vector<9x32xf32> to vector<1x32xf32>
    %706 = vector.extract_strided_slice %640 {offsets = [6, 0], sizes = [1, 32], strides = [1, 1]} : vector<9x32xf32> to vector<1x32xf32>
    %cst_249 = arith.constant dense<0.000000e+00> : vector<16x32xf32>
    %707 = tpu.matmul %704, %3, %cst_249 {dimension_numbers = #tpu.dot_dimension_numbers<[1], [0], [0], [1], [0, 0, 1, 1], [], []>} : vector<16x32xf32>, vector<32x32xf32>, vector<16x32xf32> -> vector<16x32xf32>
    %cst_250 = arith.constant 3.125000e-02 : f32
    %708 = vector.broadcast %cst_250 : f32 to vector<16x32xf32>
    %709 = arith.mulf %707, %708 : vector<16x32xf32>
    %710 = arith.mulf %704, %704 : vector<16x32xf32>
    %cst_251 = arith.constant dense<0.000000e+00> : vector<16x32xf32>
    %711 = tpu.matmul %710, %3, %cst_251 {dimension_numbers = #tpu.dot_dimension_numbers<[1], [0], [0], [1], [0, 0, 1, 1], [], []>} : vector<16x32xf32>, vector<32x32xf32>, vector<16x32xf32> -> vector<16x32xf32>
    %cst_252 = arith.constant 3.125000e-02 : f32
    %712 = vector.broadcast %cst_252 : f32 to vector<16x32xf32>
    %713 = arith.mulf %711, %712 : vector<16x32xf32>
    %714 = arith.mulf %709, %709 : vector<16x32xf32>
    %715 = arith.subf %713, %714 : vector<16x32xf32>
    %cst_253 = arith.constant 9.99999974E-6 : f32
    %716 = vector.broadcast %cst_253 : f32 to vector<16x32xf32>
    %717 = arith.addf %715, %716 : vector<16x32xf32>
    %718 = math.rsqrt %717 : vector<16x32xf32>
    %719 = arith.subf %704, %709 : vector<16x32xf32>
    %720 = arith.mulf %719, %718 : vector<16x32xf32>
    %721 = vector.broadcast %705 : vector<1x32xf32> to vector<16x32xf32>
    %722 = arith.mulf %720, %721 : vector<16x32xf32>
    %723 = vector.broadcast %706 : vector<1x32xf32> to vector<16x32xf32>
    %724 = arith.addf %722, %723 : vector<16x32xf32>
    %c5_254 = arith.constant 5 : index
    %c0_255 = arith.constant 0 : index
    %c0_256 = arith.constant 0 : index
    %725 = vector.load %arg3[%c5_254, %c0_255, %c0_256] : memref<6x32x64xf32, #tpu.memory_space<vmem>>, vector<1x32x64xf32>
    %726 = vector.shape_cast %725 : vector<1x32x64xf32> to vector<32x64xf32>
    %cst_257 = arith.constant dense<0.000000e+00> : vector<16x64xf32>
    %727 = tpu.matmul %724, %726, %cst_257 {dimension_numbers = #tpu.dot_dimension_numbers<[1], [0], [0], [1], [0, 0, 1, 1], [], []>} : vector<16x32xf32>, vector<32x64xf32>, vector<16x64xf32> -> vector<16x64xf32>
    %c5_258 = arith.constant 5 : index
    %c0_259 = arith.constant 0 : index
    %c0_260 = arith.constant 0 : index
    %728 = vector.load %arg4[%c5_258, %c0_259, %c0_260] : memref<6x1x64xf32, #tpu.memory_space<vmem>>, vector<1x1x64xf32>
    %729 = vector.shape_cast %728 : vector<1x1x64xf32> to vector<1x64xf32>
    %730 = vector.broadcast %729 : vector<1x64xf32> to vector<16x64xf32>
    %731 = arith.addf %727, %730 : vector<16x64xf32>
    %cst_261 = arith.constant 0.000000e+00 : f32
    %732 = vector.broadcast %cst_261 : f32 to vector<16x64xf32>
    %733 = arith.maximumf %731, %732 : vector<16x64xf32>
    %c5_262 = arith.constant 5 : index
    %c0_263 = arith.constant 0 : index
    %c0_264 = arith.constant 0 : index
    %734 = vector.load %arg5[%c5_262, %c0_263, %c0_264] : memref<6x64x32xf32, #tpu.memory_space<vmem>>, vector<1x64x32xf32>
    %735 = vector.shape_cast %734 : vector<1x64x32xf32> to vector<64x32xf32>
    %cst_265 = arith.constant dense<0.000000e+00> : vector<16x32xf32>
    %736 = tpu.matmul %733, %735, %cst_265 {dimension_numbers = #tpu.dot_dimension_numbers<[1], [0], [0], [1], [0, 0, 1, 1], [], []>} : vector<16x64xf32>, vector<64x32xf32>, vector<16x32xf32> -> vector<16x32xf32>
    %737 = vector.extract_strided_slice %640 {offsets = [4, 0], sizes = [1, 32], strides = [1, 1]} : vector<9x32xf32> to vector<1x32xf32>
    %738 = vector.broadcast %737 : vector<1x32xf32> to vector<16x32xf32>
    %739 = arith.addf %736, %738 : vector<16x32xf32>
    %740 = arith.addf %724, %739 : vector<16x32xf32>
    %741 = vector.extract_strided_slice %640 {offsets = [7, 0], sizes = [1, 32], strides = [1, 1]} : vector<9x32xf32> to vector<1x32xf32>
    %742 = vector.extract_strided_slice %640 {offsets = [8, 0], sizes = [1, 32], strides = [1, 1]} : vector<9x32xf32> to vector<1x32xf32>
    %cst_266 = arith.constant dense<0.000000e+00> : vector<16x32xf32>
    %743 = tpu.matmul %740, %3, %cst_266 {dimension_numbers = #tpu.dot_dimension_numbers<[1], [0], [0], [1], [0, 0, 1, 1], [], []>} : vector<16x32xf32>, vector<32x32xf32>, vector<16x32xf32> -> vector<16x32xf32>
    %cst_267 = arith.constant 3.125000e-02 : f32
    %744 = vector.broadcast %cst_267 : f32 to vector<16x32xf32>
    %745 = arith.mulf %743, %744 : vector<16x32xf32>
    %746 = arith.mulf %740, %740 : vector<16x32xf32>
    %cst_268 = arith.constant dense<0.000000e+00> : vector<16x32xf32>
    %747 = tpu.matmul %746, %3, %cst_268 {dimension_numbers = #tpu.dot_dimension_numbers<[1], [0], [0], [1], [0, 0, 1, 1], [], []>} : vector<16x32xf32>, vector<32x32xf32>, vector<16x32xf32> -> vector<16x32xf32>
    %cst_269 = arith.constant 3.125000e-02 : f32
    %748 = vector.broadcast %cst_269 : f32 to vector<16x32xf32>
    %749 = arith.mulf %747, %748 : vector<16x32xf32>
    %750 = arith.mulf %745, %745 : vector<16x32xf32>
    %751 = arith.subf %749, %750 : vector<16x32xf32>
    %cst_270 = arith.constant 9.99999974E-6 : f32
    %752 = vector.broadcast %cst_270 : f32 to vector<16x32xf32>
    %753 = arith.addf %751, %752 : vector<16x32xf32>
    %754 = math.rsqrt %753 : vector<16x32xf32>
    %755 = arith.subf %740, %745 : vector<16x32xf32>
    %756 = arith.mulf %755, %754 : vector<16x32xf32>
    %757 = vector.broadcast %741 : vector<1x32xf32> to vector<16x32xf32>
    %758 = arith.mulf %756, %757 : vector<16x32xf32>
    %759 = vector.broadcast %742 : vector<1x32xf32> to vector<16x32xf32>
    %760 = arith.addf %758, %759 : vector<16x32xf32>
    %c0_271 = arith.constant 0 : index
    %c0_272 = arith.constant 0 : index
    %761 = vector.load %arg8[%c0_271, %c0_272] : memref<16x32xf32, #tpu.memory_space<vmem>>, vector<16x32xf32>
    tpu.vector_store %arg8[%c0_271, %c0_272], %760 {strides = array<i32>} : memref<16x32xf32, #tpu.memory_space<vmem>>, vector<16x32xf32>,
    return
  }
}

</mosaic_0001>

<bundles_post_ra>
// kernel: perception_transformer_forward.1
= control target key start
LH: loop header
LB: loop body
LE: loop exit
PB: predicated region body
PF: predicated region fallthrough
CT: control target
= control target key end

     0   :  { %13 = vsyncpa [#allocation3], 0  ;;  %s16967_s0 = inlined_call_operand.hbm [shape: f32[16,32], index: 0, kind: input, shape index: {}]   ;;  %s16968_s1 = inlined_call_operand.vmem [shape: f32[6,4,32,32], index: 1, kind: input, shape index: {}]   ;;  %s16969_s2 = inlined_call_operand.vmem [shape: f32[6,9,32], index: 2, kind: input, shape index: {}]   ;;  %s16970_s3 = inlined_call_operand.hbm [shape: f32[6,32,64], index: 3, kind: input, shape index: {}]   ;;  %s16971_s4 = inlined_call_operand.vmem [shape: f32[6,1,64], index: 4, kind: input, shape index: {}]   ;;  %s16972_s5 = inlined_call_operand.vmem [shape: f32[6,64,32], index: 5, kind: input, shape index: {}]   ;;  %s16973_s6 = inlined_call_operand.hbm [shape: f32[4,32], index: 6, kind: input, shape index: {}]   ;;  %s16974_s7 = inlined_call_operand.hbm [shape: f32[16,16], index: 7, kind: input, shape index: {}]   ;;  %s16975_s8 = inlined_call_operand.hbm [shape: f32[16,32], index: 8, kind: output, shape index: {}]  }
   0x1   :  { %14 = vsyncpa [#allocation6], 0 }
   0x2   :  { %15 = vsyncpa [#allocation9], 0 }
   0x3   :  { %16 = vsyncpa [#allocation4], 0  ;;  %s15376_s27 = smov [#allocation5]   ;;  %s15377_s29 = smov [#allocation2]  }
   0x4   :  { %s38_s28 = sshll.u32 %s15376_s27, 4  ;;  %s22_s30 = sshll.u32 %s15377_s29, 4  ;;  %s39_s28 = int_to_ptr.vmem [resolvable:$true] %s38_s28  ;;  %s15429_s30 = int_to_ptr.vmem [resolvable:$true] %s22_s30 }
   0x5   :  { %s15258_s11 = scalar_lea.hbm %s16970_s3, 3072 }
   0x6   :  { %p15259_p0 = scmp.ne.s32.totalorder %s16970_s3, %s15258_s11  ;;  %p15262_p1 = scmp.lt.u32.totalorder %s15258_s11, %s16970_s3 }
   0x8   :  { %p15264_p2 = pnand %p15262_p1, %p15259_p0 }
   0xa   :  { %15267 = shalt.err (!%p15264_p2)
}
   0xb   :  { %s15268_s16 = scalar_lea.vmem %s39_s28, 3072  ;;  %p15273_p4 = scmp.lt.s32.totalorder %s39_s28, %s39_s28 }
   0xc   :  { %p15269_p3 = scmp.ne.s32.totalorder %s39_s28, %s15268_s16  ;;  %p15274_p5 = scmp.lt.s32.totalorder %s15268_s16, %s15268_s16 }
   0xe   :  { %p15275_p6 = por %p15274_p5, %p15273_p4 }
  0x10   :  { %p15276_p7 = pnand %p15275_p6, %p15269_p3 }
  0x12   :  { %15279 = shalt.err (!%p15276_p7)
}
  0x13   :  { %s15378_s17 = smov 128   ;;  %s15379_s18 = smov 8  }
  0x14   :  { %44 = dma.hbm_to_vmem [thread:$0]  %s16970_s3, 3072, %s39_s28, [#allocation6], %s15378_s17, %s15378_s17, %s15379_s18  }
  0x15   :  { %s15280_s23 = scalar_lea.hbm %s16967_s0, 256 }
  0x16   :  { %p15281_p8 = scmp.ne.s32.totalorder %s16967_s0, %s15280_s23  ;;  %p15284_p9 = scmp.lt.u32.totalorder %s15280_s23, %s16967_s0 }
  0x18   :  { %p15286_p10 = pnand %p15284_p9, %p15281_p8 }
  0x1a   :  { %15289 = shalt.err (!%p15286_p10)
}
  0x1b   :  { %s15290_s29 = scalar_lea.vmem %s15429_s30, 256  ;;  %p15295_p12 = scmp.lt.s32.totalorder %s15429_s30, %s15429_s30 }
  0x1c   :  { %p15291_p11 = scmp.ne.s32.totalorder %s15429_s30, %s15290_s29  ;;  %p15296_p13 = scmp.lt.s32.totalorder %s15290_s29, %s15290_s29 }
  0x1e   :  { %p15297_p0 = por %p15296_p13, %p15295_p12 }
  0x20   :  { %p15298_p1 = pnand %p15297_p0, %p15291_p11 }
  0x22   :  { %15301 = shalt.err (!%p15298_p1)
}
  0x23   :  { %28 = dma.hbm_to_vmem [thread:$0]  %s16967_s0, 256, %s15429_s30, [#allocation3], %s15378_s17, %s15378_s17, %s15379_s18  }
  0x24   :  { %s15380_s9 = smov [#allocation7]   ;;  %s15381_s11 = smov [#allocation8]  }
  0x25   :  { %s55_s10 = sshll.u32 %s15380_s9, 4  ;;  %s64_s12 = sshll.u32 %s15381_s11, 4  ;;  %s56_s10 = int_to_ptr.vmem [resolvable:$true] %s55_s10  ;;  %s15466_s12 = int_to_ptr.vmem [resolvable:$true] %s64_s12 }
  0x26   :  { %s15302_s15 = scalar_lea.hbm %s16973_s6, 64 }
  0x27   :  { %p15303_p2 = scmp.ne.s32.totalorder %s16973_s6, %s15302_s15  ;;  %p15306_p3 = scmp.lt.u32.totalorder %s15302_s15, %s16973_s6 }
  0x29   :  { %p15308_p4 = pnand %p15306_p3, %p15303_p2 }
  0x2b   :  { %15311 = shalt.err (!%p15308_p4)
}
  0x2c   :  { %s15312_s0 = scalar_lea.vmem %s56_s10, 64  ;;  %p15317_p6 = scmp.lt.s32.totalorder %s56_s10, %s56_s10 }
  0x2d   :  { %p15313_p5 = scmp.ne.s32.totalorder %s56_s10, %s15312_s0  ;;  %p15318_p7 = scmp.lt.s32.totalorder %s15312_s0, %s15312_s0 }
  0x2f   :  { %p15319_p8 = por %p15318_p7, %p15317_p6 }
  0x31   :  { %p15320_p9 = pnand %p15319_p8, %p15313_p5 }
  0x33   :  { %15323 = shalt.err (!%p15320_p9)
}
  0x34   :  { %58 = dma.hbm_to_vmem [thread:$0]  %s16973_s6, 64, %s56_s10, [#allocation6]  }
  0x35   :  { %s15324_s25 = scalar_lea.hbm %s16974_s7, 256 }
  0x36   :  { %p15325_p10 = scmp.ne.s32.totalorder %s16974_s7, %s15324_s25  ;;  %p15328_p11 = scmp.lt.u32.totalorder %s15324_s25, %s16974_s7 }
  0x38   :  { %p15330_p12 = pnand %p15328_p11, %p15325_p10 }
  0x3a   :  { %15333 = shalt.err (!%p15330_p12)
}
  0x3b   :  { %s15334_s28 = scalar_lea.vmem %s15466_s12, 256  ;;  %p15339_p0 = scmp.lt.s32.totalorder %s15466_s12, %s15466_s12 }
  0x3c   :  { %p15335_p13 = scmp.ne.s32.totalorder %s15466_s12, %s15334_s28  ;;  %p15340_p1 = scmp.lt.s32.totalorder %s15334_s28, %s15334_s28 }
  0x3e   :  { %p15341_p2 = por %p15340_p1, %p15339_p0 }
  0x40   :  { %p15342_p3 = pnand %p15341_p2, %p15335_p13 }
  0x42   :  { %15345 = shalt.err (!%p15342_p3)
}
  0x43   :  { %70 = dma.hbm_to_vmem [thread:$0]  %s16974_s7, 256, %s15466_s12, [#allocation9], %s15378_s17, %s15378_s17, %s15379_s18  }
  0x44   :  { %15368 = dma.done.wait [#allocation3], 256  }
  0x45   :  { %15369 = vsyncadd [#allocation3], 4294967040 }
  0x46   :  { %15370 = dma.done.wait [#allocation6], 3136  }
  0x47   :  { %15371 = vsyncadd [#allocation6], 4294964160 }
  0x48   :  { %15372 = dma.done.wait [#allocation9], 256  }
  0x49   :  { %15373 = vsyncadd [#allocation9], 4294967040  ;;  %vm126_vm0 = vcmask 261120   ;;  %v108_v0 = vld [vmem:[%s16968_s1 + $0x20] sm:$0xff]  ;;  %v109_v1 = vld [vmem:[%s16968_s1 + $0x28] sm:$0xff]  ;;  %v88_v14 = vlaneseq  ;;  %vm463_vm2 = vcmask 130048  }
  0x4a   :  { %v110_v2 = vld [vmem:[%s16968_s1 + $0x30] sm:$0xff]  ;;  %v14258_v3 = vpack.c.bf16 %v109_v1, %v108_v0  ;;  %v111_v4 = vld [vmem:[%s16968_s1 + $0x38] sm:$0xff]  ;;  %v15512_v5 = vld [vmem:[#allocation2] sm:$0xff]  ;;  %v15382_v48 = vmov 1.0|1.0   ;;  %vm1790_vm3 = vcmask 523264  }
  0x4b   :  { %v14262_v6 = vpack.c.bf16 %v111_v4, %v110_v2  ;;  %13057 = vmatprep.mubr.msk.f32.mxu1 %vm126_vm0, %v15512_v5  ;;  %v104_v7 = vld [vmem:[%s16968_s1] sm:$0xff]  ;;  %v105_v8 = vld [vmem:[%s16968_s1 + $0x8] sm:$0xff]  ;;  %v106_v9 = vld [vmem:[%s16968_s1 + $0x10] sm:$0xff]  ;;  %13046 = vmatprep.mubr.msk.f32.mxu0 %vm126_vm0, %v15512_v5  ;;  %v15538_v15 = vshrl.u32 %v88_v14, 7  ;;  %s15383_s20 = smov [#allocation10]  }
  0x4c   :  { %14259 = vmatprep.subr.bf16.mxu1 %v14258_v3  ;;  %v14250_v10 = vpack.c.bf16 %v105_v8, %v104_v7  ;;  %v107_v11 = vld [vmem:[%s16968_s1 + $0x18] sm:$0xff]  ;;  %v15530_v13 = vld [vmem:[#allocation2 + $0x8] sm:$0xff]  ;;  %v15546_v17 = vld [vmem:[%s16969_s2] sm:$0xff]  ;;  %s11893_s21 = sshll.u32 %s15383_s20, 4  ;;  %s11894_s21 = int_to_ptr.vmem [resolvable:$true] %s11893_s21 }
  0x4d   :  { %14261 = vmatpush3.bf16.msra.mxu1 %v14258_v3  ;;  %v14254_v12 = vpack.c.bf16 %v107_v11, %v106_v9  ;;  %v15541_v16 = vsub.s32 1, %v15538_v15  ;;  %v15549_v18 = vsub.s32 0, %v15538_v15  ;;  %v15552_v19 = vsub.s32 2, %v15538_v15  ;;  %v87_v21 = vld [vmem:[#allocation7] sm:$0xf]  ;;  %vm15583_vm1 = vmpackc.low %vm126_vm0, %vm126_vm0  ;;  %v15597_v54 = vld [vmem:[#allocation8] sm:$0xff]  ;;  %p15351_p5 = scmp.lt.s32.totalorder %s11894_s21, %s11894_s21 }
  0x4e   :  { %14263 = vmatprep.subr.bf16.mxu1 %v14262_v6  ;;  %14251 = vmatprep.subr.bf16.mxu0 %v14250_v10  ;;  %v15555_v20 = vsub.s32 3, %v15538_v15  ;;  %v15599_v56 = vld [vmem:[#allocation8 + $0x8] sm:$0xff]  ;;  %v113_v61 = vld [vmem:[%s16968_s1 + $0x48] sm:$0xff]  ;;  %v114_v63 = vld [vmem:[%s16968_s1 + $0x50] sm:$0xff]  ;;  %s15346_s0 = scalar_lea.vmem %s11894_s21, 256 }
  0x4f   :  { %14253 = vmatpush3.bf16.msra.mxu0 %v14250_v10  ;;  %v211_v22 = vrot.slane %v15546_v17, %v15541_v16  ;;  %v15560_v23 = vrot.slane %v87_v21, %v15549_v18  ;;  %v15563_v24 = vrot.slane %v87_v21, %v15541_v16  ;;  %v15566_v25 = vrot.slane %v87_v21, %v15552_v19  ;;  %v112_v60 = vld [vmem:[%s16968_s1 + $0x40] sm:$0xff]  ;;  %v115_v0 = vld [vmem:[%s16968_s1 + $0x58] sm:$0xff]  ;;  %p15347_p4 = scmp.ne.s32.totalorder %s11894_s21, %s15346_s0  ;;  %p15352_p6 = scmp.lt.s32.totalorder %s15346_s0, %s15346_s0 }
  0x50   :  { %14255 = vmatprep.subr.bf16.mxu0 %v14254_v12  ;;  %v15569_v26 = vrot.slane %v87_v21, %v15555_v20  ;;  %v125_v30 = vrot.slane %v15546_v17, %v15549_v18  ;;  %v14266_v62 = vpack.c.bf16 %v113_v61, %v112_v60  ;;  %v14270_v1 = vpack.c.bf16 %v115_v0, %v114_v63 }
  0x51   :  { %14265 = vmatpush3.bf16.msra.mxu1 %v14262_v6  ;;  %p15353_p7 = por %p15352_p6, %p15351_p5 }
  0x53   :  { %14257 = vmatpush3.bf16.msra.mxu0 %v14254_v12  ;;  %p15354_p8 = pnand %p15353_p7, %p15347_p4 }
  0x54   :  { %13058 = vmatmul.mubr.msk.f32.vlgmr.msra.gmra.mrb[0].mxu1 %vm126_vm0, %v15530_v13  ;;  %14267 = vmatprep.subr.bf16.mxu0 %v14266_v62 }
  0x56   :  { %13047 = vmatmul.mubr.msk.f32.vlgmr.msra.gmra.mrb[0].mxu0 %vm126_vm0, %v15530_v13 }
  0x57   :  { %13068 = vmatprep.mubr.msk.f32.mxu0 %vm126_vm0, %v15512_v5  ;;  %14269 = vmatpush3.bf16.msra.mxu0 %v14266_v62 }
  0x58   :  { %14271 = vmatprep.subr.bf16.mxu0 %v14270_v1 }
  0x5b   :  { %14273 = vmatpush3.bf16.msra.mxu0 %v14270_v1 }
  0x5c   :  { %14288 = vmatprep.subr.bf16.mxu0 %v15382_v48 }
  0x5e   :  { %13069 = vmatmul.mubr.msk.f32.vlgmr.msra.gmra.mrb[2].mxu0 %vm126_vm0, %v15530_v13 }
  0x5f   :  { %14289 = vmatpush3.bf16.msra.mxu0 %v15382_v48 }
 0x127   :  { %v13059_v27 = vpop.f32.mrb[0].mxu1 }
 0x128   :  { %v284_v28 = vadd.f32 %v13059_v27, %v211_v22  ;;  %v278_v29 = vpop.f32.mrb[1].mxu1 }
 0x129   :  { %v279_v31 = vadd.f32 %v278_v29, %v211_v22  ;;  %v13048_v32 = vpop.f32.mrb[0].mxu0 }
 0x12a   :  { %v367_v33 = vmul.f32 %v284_v28, %v15560_v23  ;;  %v550_v34 = vmul.f32 %v284_v28, %v15563_v24  ;;  %v888_v35 = vmul.f32 %v284_v28, %v15566_v25  ;;  %v1147_v36 = vmul.f32 %v284_v28, %v15569_v26  ;;  %v199_v37 = vpop.f32.mrb[1].mxu0 }
 0x12b   :  { %v366_v38 = vmul.f32 %v279_v31, %v15560_v23  ;;  %v549_v39 = vmul.f32 %v279_v31, %v15563_v24  ;;  %v887_v40 = vmul.f32 %v279_v31, %v15566_v25  ;;  %v1146_v41 = vmul.f32 %v279_v31, %v15569_v26 }
 0x12c   :  { %v200_v43 = vadd.f32 %v199_v37, %v125_v30  ;;  %v205_v49 = vadd.f32 %v13048_v32, %v125_v30  ;;  %v290_v28 = vrot.slane %v15546_v17, %v15552_v19 }
 0x12d   :  { %v14274_v44 = vpack.c.bf16 %v367_v33, %v366_v38  ;;  %v14282_v45 = vpack.c.bf16 %v550_v34, %v549_v39  ;;  %v14298_v46 = vpack.c.bf16 %v888_v35, %v887_v40  ;;  %v14310_v47 = vpack.c.bf16 %v1147_v36, %v1146_v41 }
 0x12e   :  { %13075 = vmatprep.mubr.msk.f32.mxu1 %vm126_vm0, %v200_v43 }
 0x12f   :  { %14276 = vmatprep.subr.msk.bf16.mxu1 %vm15583_vm1, %v14274_v44 }
 0x130   :  { %14279 = vmatpush3.bf16.xpose.msk.msra.mxu1 %vm15583_vm1, %v14274_v44 }
 0x131   :  { %14280 = vmatprep.subr.bf16.mxu1 %v15382_v48  ;;  %v13070_v29 = vpop.f32.mrb[2].mxu0 }
 0x132   :  { %v363_v30 = vadd.f32 %v13070_v29, %v290_v28  ;;  %v357_v31 = vpop.f32.mrb[3].mxu0  ;;  %v119_v29 = vld [vmem:[%s16968_s1 + $0x78] sm:$0xff] }
 0x133   :  { %v358_v32 = vadd.f32 %v357_v31, %v290_v28 }
 0x134   :  { %v552_v34 = vmul.f32 %v363_v30, %v15563_v24  ;;  %v369_v37 = vmul.f32 %v363_v30, %v15560_v23  ;;  %v890_v39 = vmul.f32 %v363_v30, %v15566_v25  ;;  %v1149_v41 = vmul.f32 %v363_v30, %v15569_v26 }
 0x135   :  { %v551_v33 = vmul.f32 %v358_v32, %v15563_v24  ;;  %v368_v36 = vmul.f32 %v358_v32, %v15560_v23  ;;  %v889_v38 = vmul.f32 %v358_v32, %v15566_v25  ;;  %v1148_v40 = vmul.f32 %v358_v32, %v15569_v26 }
 0x137   :  { %13076 = vmatmul.mubr.msk.f32.vlgmr.msra.gmra.mrb[2].mxu1 %vm126_vm0, %v205_v49  ;;  %v14290_v35 = vpack.c.bf16 %v552_v34, %v551_v33  ;;  %v14306_v44 = vpack.c.bf16 %v890_v39, %v889_v38  ;;  %v1408_v39 = vrot.slane %v15546_v17, %v15555_v20 }
 0x138   :  { %14281 = vmatpush3.bf16.msra.mxu1 %v15382_v48 }
 0x139   :  { %14284 = vmatprep.subr.msk.bf16.mxu1 %vm15583_vm1, %v14282_v45  ;;  %14291 = vmatprep.subr.bf16.mxu0 %v14290_v35 }
 0x20a   :  { %v13077_v50 = vpop.f32.mrb[2].mxu1 }
 0x20b   :  { %v459_v51 = vmul.f32 1.442695, %v13077_v50  ;;  %v448_v52 = vpop.f32.mrb[3].mxu1 }
 0x20c   :  { %v457_v53 = vmul.f32 1.442695, %v448_v52 }
 0x20d   :  { %15014 = vpow2.f32 %v459_v51 }
 0x20e   :  { %15016 = vpow2.f32 %v457_v53 }
 0x217   :  { %v15015_v55 = vpop.eup %15014 }
 0x218   :  { %v15017_v57 = vpop.eup %15016  ;;  %v15605_v59 = vmul.f32 %v15015_v55, %v15599_v56 }
 0x219   :  { %v15602_v58 = vmul.f32 %v15017_v57, %v15597_v54 }
 0x21b   :  { %13082 = vmatprep.mubr.msk.f32.mxu1 %vm463_vm2, %v15602_v58 }
 0x21c   :  { %13083 = vmatmul.mubr.msk.f32.vlgmr.msra.gmra.mrb[4].mxu1 %vm463_vm2, %v15605_v59 }
 0x21d   :  { %14287 = vmatpush3.bf16.xpose.msk.msra.mxu1 %vm15583_vm1, %v14282_v45  ;;  %13089 = vmatprep.mubr.msk.f32.mxu1 %vm126_vm0, %v200_v43  ;;  %v14318_v45 = vpack.c.bf16 %v1149_v41, %v1148_v40 }
 0x21e   :  { %14300 = vmatprep.subr.msk.bf16.mxu1 %vm15583_vm1, %v14298_v46 }
 0x224   :  { %13090 = vmatmul.mubr.msk.f32.vlgmr.msra.gmra.mrb[6].mxu1 %vm126_vm0, %v205_v49 }
 0x225   :  { %14303 = vmatpush3.bf16.xpose.msk.msra.mxu1 %vm15583_vm1, %v14298_v46  ;;  %13117 = vmatprep.mubr.msk.f32.mxu1 %vm126_vm0, %v200_v43 }
 0x226   :  { %14312 = vmatprep.subr.msk.bf16.mxu1 %vm15583_vm1, %v14310_v47 }
 0x22c   :  { %13118 = vmatmul.mubr.msk.f32.vlgmr.msra.gmra.mrb[8].mxu1 %vm126_vm0, %v205_v49 }
 0x22d   :  { %14315 = vmatpush3.bf16.xpose.msk.msra.mxu1 %vm15583_vm1, %v14310_v47  ;;  %13138 = vmatprep.mubr.msk.f32.mxu1 %vm126_vm0, %v200_v43  ;;  %v14294_v43 = vpack.c.bf16 %v369_v37, %v368_v36 }
 0x234   :  { %13139 = vmatmul.mubr.msk.f32.vlgmr.msra.gmra.mrb[10].mxu1 %vm126_vm0, %v205_v49 }
 0x2ef   :  { %v13084_v2 = vpop.f32.mrb[4].mxu1 }
 0x2f0   :  { %v536_v3 = vpop.f32.mrb[5].mxu1 }
 0x2f7   :  { %v13091_v4 = vpop.f32.mrb[6].mxu1 }
 0x2f8   :  { %v636_v6 = vmul.f32 1.442695, %v13091_v4  ;;  %v625_v7 = vpop.f32.mrb[7].mxu1 }
 0x2f9   :  { %v634_v8 = vmul.f32 1.442695, %v625_v7 }
 0x2fa   :  { %15018 = vpow2.f32 %v636_v6 }
 0x2fb   :  { %15020 = vpow2.f32 %v634_v8 }
 0x2fc   :  { %15022 = vrcp.f32 %v536_v3 }
 0x2ff   :  { %v13119_v9 = vpop.f32.mrb[8].mxu1 }
 0x300   :  { %v963_v10 = vpop.f32.mrb[9].mxu1  ;;  %v974_v50 = vmul.f32 1.442695, %v13119_v9 }
 0x301   :  { %v972_v49 = vmul.f32 1.442695, %v963_v10 }
 0x304   :  { %v15019_v11 = vpop.eup %15018 }
 0x305   :  { %v15021_v12 = vpop.eup %15020  ;;  %v639_v22 = vmul.f32 %v15019_v11, %v15599_v56 }
 0x306   :  { %v638_v14 = vmul.f32 %v15021_v12, %v15597_v54  ;;  %v15023_v51 = vpop.eup %15022 }
 0x307   :  { %v13140_v21 = vpop.f32.mrb[10].mxu1  ;;  %v547_v60 = vmul.f32 %v15023_v51, %v15602_v58  ;;  %v1685_v51 = vld [vmem:[#allocation5 + $0x8] sm:$0xff] }
 0x308   :  { %13096 = vmatprep.mubr.msk.f32.mxu0 %vm463_vm2, %v638_v14  ;;  %v1222_v27 = vpop.f32.mrb[11].mxu1  ;;  %v1233_v3 = vmul.f32 1.442695, %v13140_v21  ;;  %v116_v21 = vld [vmem:[%s16968_s1 + $0x60] sm:$0xff] }
 0x309   :  { %13097 = vmatmul.mubr.msk.f32.vlgmr.msra.gmra.mrb[4].mxu0 %vm463_vm2, %v639_v22 }
 0x30a   :  { %14293 = vmatpush3.bf16.msra.mxu0 %v14290_v35 }
 0x30b   :  { %14295 = vmatprep.subr.bf16.mxu0 %v14294_v43 }
 0x3dc   :  { %v13098_v46 = vpop.f32.mrb[4].mxu0 }
 0x3dd   :  { %15024 = vrcp.f32 %v13098_v46  ;;  %v712_v47 = vpop.f32.mrb[5].mxu0 }
 0x3de   :  { %15026 = vrcp.f32 %v712_v47 }
 0x3df   :  { %15028 = vrcp.f32 %v13084_v2  ;;  %v1231_v2 = vmul.f32 1.442695, %v1222_v27  ;;  %v118_v27 = vld [vmem:[%s16968_s1 + $0x70] sm:$0xff] }
 0x3e0   :  { %15030 = vpow2.f32 %v972_v49  ;;  %v14326_v30 = vpack.c.bf16 %v119_v29, %v118_v27  ;;  %v15729_v27 = vsub.s32 5, %v15538_v15 }
 0x3e1   :  { %15032 = vpow2.f32 %v974_v50  ;;  %v1684_v50 = vld [vmem:[#allocation5] sm:$0xff] }
 0x3e2   :  { %15034 = vpow2.f32 %v1231_v2 }
 0x3e7   :  { %v15025_v52 = vpop.eup %15024 }
 0x3e8   :  { %v15027_v53 = vpop.eup %15026  ;;  %v724_v57 = vmul.f32 %v15025_v52, %v639_v22  ;;  %v117_v22 = vld [vmem:[%s16968_s1 + $0x68] sm:$0xff]  ;;  %v14338_v52 = vpack.c.bf16 %v1685_v51, %v1684_v50 }
 0x3e9   :  { %v723_v55 = vmul.f32 %v15027_v53, %v638_v14  ;;  %v15029_v61 = vpop.eup %15028  ;;  %v14322_v28 = vpack.c.bf16 %v117_v22, %v116_v21  ;;  %v1686_v53 = vld [vmem:[#allocation5 + $0x10] sm:$0xff] }
 0x3ea   :  { %v15031_v62 = vpop.eup %15030  ;;  %v548_v63 = vmul.f32 %v15029_v61, %v15605_v59 }
 0x3eb   :  { %13103 = vmatprep.mubr.msk.f32.mxu0 %vm463_vm2, %v723_v55  ;;  %v15033_v0 = vpop.eup %15032  ;;  %v976_v1 = vmul.f32 %v15031_v62, %v15597_v54  ;;  %14323 = vmatprep.subr.bf16.mxu1 %v14322_v28  ;;  %v1687_v55 = vld [vmem:[#allocation5 + $0x18] sm:$0xff]  ;;  %v1781_v62 = vld [vmem:[%s16972_s5 + $0x18] sm:$0xff] }
 0x3ec   :  { %13104 = vmatmul.mubr.msk.f32.vlgmr.msra.gmra.mrb[6].mxu0 %vm463_vm2, %v724_v57  ;;  %v977_v58 = vmul.f32 %v15033_v0, %v15599_v56  ;;  %v15035_v6 = vpop.eup %15034  ;;  %14325 = vmatpush3.bf16.msra.mxu1 %v14322_v28  ;;  %v14342_v57 = vpack.c.bf16 %v1687_v55, %v1686_v53  ;;  %v1782_v0 = vld [vmem:[%s16972_s5 + $0x20] sm:$0xff]  ;;  %v15732_v28 = vsub.s32 6, %v15538_v15  ;;  %v15756_v53 = vsub.s32 4, %v15538_v15 }
 0x3ed   :  { %14297 = vmatpush3.bf16.msra.mxu0 %v14294_v43  ;;  %13110 = vmatprep.mubr.msk.f32.mxu0 %vm463_vm2, %v547_v60  ;;  %v1235_v12 = vmul.f32 %v15035_v6, %v15597_v54  ;;  %v1780_v60 = vld [vmem:[%s16972_s5 + $0x10] sm:$0xff] }
 0x3ee   :  { %14304 = vmatprep.subr.bf16.mxu0 %v15382_v48  ;;  %14327 = vmatprep.subr.bf16.mxu1 %v14326_v30  ;;  %v1789_v55 = vrot.slane %v15546_v17, %v15756_v53 }
 0x3f0   :  { %14329 = vmatpush3.bf16.msra.mxu1 %v14326_v30  ;;  %v1675_v30 = vrot.slane %v15546_v17, %v15729_v27 }
 0x3f1   :  { %14334 = vmatprep.subr.bf16.mxu1 %v15382_v48 }
 0x3f4   :  { %13111 = vmatmul.mubr.msk.f32.vlgmr.msra.gmra.mrb[6].mxu0 %vm463_vm2, %v548_v63  ;;  %v14350_v63 = vpack.c.bf16 %v1781_v62, %v1780_v60 }
 0x3f5   :  { %14305 = vmatpush3.bf16.msra.mxu0 %v15382_v48  ;;  %13124 = vmatprep.mubr.msk.f32.mxu0 %vm463_vm2, %v976_v1 }
 0x3f6   :  { %14307 = vmatprep.subr.bf16.mxu0 %v14306_v44 }
 0x3f8   :  { %13125 = vmatmul.mubr.msk.f32.vlgmr.msra.gmra.mrb[8].mxu0 %vm463_vm2, %v977_v58 }
 0x3f9   :  { %14309 = vmatpush3.bf16.msra.mxu0 %v14306_v44 }
 0x3fa   :  { %14316 = vmatprep.subr.bf16.mxu0 %v15382_v48 }
 0x4cb   :  { %v13126_v59 = vpop.f32.mrb[8].mxu0 }
 0x4cc   :  { %15036 = vrcp.f32 %v13126_v59  ;;  %v1050_v4 = vpop.f32.mrb[9].mxu0 }
 0x4cd   :  { %15038 = vrcp.f32 %v1050_v4 }
 0x4ce   :  { %15040 = vpow2.f32 %v1233_v3 }
 0x4d6   :  { %v15037_v7 = vpop.eup %15036 }
 0x4d7   :  { %v15039_v8 = vpop.eup %15038  ;;  %v1062_v10 = vmul.f32 %v15037_v7, %v977_v58 }
 0x4d8   :  { %v1061_v9 = vmul.f32 %v15039_v8, %v976_v1  ;;  %v15041_v11 = vpop.eup %15040  ;;  %v1783_v1 = vld [vmem:[%s16972_s5 + $0x28] sm:$0xff] }
 0x4d9   :  { %v1236_v14 = vmul.f32 %v15041_v11, %v15599_v56  ;;  %v14354_v58 = vpack.c.bf16 %v1783_v1, %v1782_v0  ;;  %v11961_v1 = vld [vmem:[%s16968_s1 + $0x80] sm:$0xff] }
 0x4da   :  { %13131 = vmatprep.mubr.msk.f32.mxu0 %vm463_vm2, %v1061_v9 }
 0x4db   :  { %13132 = vmatmul.mubr.msk.f32.vlgmr.msra.gmra.mrb[6].mxu0 %vm463_vm2, %v1062_v10 }
 0x4dc   :  { %14317 = vmatpush3.bf16.msra.mxu0 %v15382_v48  ;;  %13145 = vmatprep.mubr.msk.f32.mxu0 %vm463_vm2, %v1235_v12 }
 0x4dd   :  { %14319 = vmatprep.subr.bf16.mxu0 %v14318_v45 }
 0x4df   :  { %13146 = vmatmul.mubr.msk.f32.vlgmr.msra.gmra.mrb[10].mxu0 %vm463_vm2, %v1236_v14 }
 0x4e0   :  { %14321 = vmatpush3.bf16.msra.mxu0 %v14318_v45 }
 0x4e1   :  { %14330 = vmatprep.subr.bf16.mxu0 %v15382_v48 }
 0x5b2   :  { %v13147_v31 = vpop.f32.mrb[10].mxu0 }
 0x5b3   :  { %15042 = vrcp.f32 %v13147_v31  ;;  %v1309_v32 = vpop.f32.mrb[11].mxu0 }
 0x5b4   :  { %15044 = vrcp.f32 %v1309_v32 }
 0x5bd   :  { %v15043_v33 = vpop.eup %15042 }
 0x5be   :  { %v15045_v34 = vpop.eup %15044  ;;  %v1321_v36 = vmul.f32 %v15043_v33, %v1236_v14 }
 0x5bf   :  { %v1320_v35 = vmul.f32 %v15045_v34, %v1235_v12 }
 0x5c1   :  { %13152 = vmatprep.mubr.msk.f32.mxu0 %vm463_vm2, %v1320_v35 }
 0x5c2   :  { %13153 = vmatmul.mubr.msk.f32.vlgmr.msra.gmra.mrb[6].mxu0 %vm463_vm2, %v1321_v36  ;;  %v1681_v36 = vrot.slane %v15546_v17, %v15732_v28 }
 0x5c3   :  { %14331 = vmatpush3.bf16.msra.mxu0 %v15382_v48 }
 0x5c4   :  { %14332 = vmatprep.subr.bf16.mxu0 %v15382_v48 }
 0x5c7   :  { %14333 = vmatpush3.bf16.msra.mxu0 %v15382_v48 }
 0x5c8   :  { %14339 = vmatprep.subr.bf16.mxu0 %v14338_v52 }
 0x695   :  { %v13154_v37 = vpop.f32.mrb[6].mxu0 }
 0x696   :  { %v1394_v38 = vpop.f32.mrb[7].mxu0 }
 0x697   :  { %13163 = vmatprep.mubr.msk.f32.mxu1 %vm126_vm0, %v1394_v38 }
 0x698   :  { %13164 = vmatmul.mubr.msk.f32.vlgmr.msra.gmra.mrb[12].mxu1 %vm126_vm0, %v13154_v37 }
 0x699   :  { %14335 = vmatpush3.bf16.msra.mxu1 %v15382_v48 }
 0x69a   :  { %14336 = vmatprep.subr.bf16.mxu1 %v15382_v48 }
 0x69d   :  { %14337 = vmatpush3.bf16.msra.mxu1 %v15382_v48 }
 0x76b   :  { %v13165_v40 = vpop.f32.mrb[12].mxu1 }
 0x76c   :  { %v1487_v41 = vadd.f32 %v13165_v40, %v1408_v39  ;;  %v1481_v43 = vpop.f32.mrb[13].mxu1 }
 0x76d   :  { %v1482_v44 = vadd.f32 %v1481_v43, %v1408_v39  ;;  %v1785_v43 = vld [vmem:[%s16972_s5 + $0x38] sm:$0xff] }
 0x76e   :  { %v1491_v45 = vadd.f32 %v1487_v41, %v15530_v13  ;;  %v1779_v13 = vld [vmem:[%s16972_s5 + $0x8] sm:$0xff]  ;;  %v1784_v41 = vld [vmem:[%s16972_s5 + $0x30] sm:$0xff] }
 0x76f   :  { %v1490_v46 = vadd.f32 %v1482_v44, %v15512_v5  ;;  %v1778_v5 = vld [vmem:[%s16972_s5] sm:$0xff]  ;;  %v14358_v44 = vpack.c.bf16 %v1785_v43, %v1784_v41  ;;  %v15798_v43 = vsub.s32 7, %v15538_v15  ;;  %v11971_v15 = vld [vmem:[%s16968_s1 + $0xd0] sm:$0xff] }
 0x770   :  { %v1576_v49 = vmul.f32 %v1491_v45, %v1491_v45  ;;  %v14346_v61 = vpack.c.bf16 %v1779_v13, %v1778_v5 }
 0x771   :  { %v1575_v47 = vmul.f32 %v1490_v46, %v1490_v46  ;;  %13174 = vmatprep.mubr.msk.f32.mxu0 %vm126_vm0, %v1490_v46 }
 0x772   :  { %13175 = vmatmul.mubr.msk.f32.vlgmr.msra.gmra.mrb[12].mxu0 %vm126_vm0, %v1491_v45  ;;  %14347 = vmatprep.subr.bf16.mxu1 %v14346_v61 }
 0x773   :  { %13185 = vmatprep.mubr.msk.f32.mxu1 %vm126_vm0, %v1575_v47  ;;  %14341 = vmatpush3.bf16.msra.mxu0 %v14338_v52 }
 0x774   :  { %13186 = vmatmul.mubr.msk.f32.vlgmr.msra.gmra.mrb[14].mxu1 %vm126_vm0, %v1576_v49  ;;  %14343 = vmatprep.subr.bf16.mxu0 %v14342_v57 }
 0x775   :  { %14349 = vmatpush3.bf16.msra.mxu1 %v14346_v61 }
 0x776   :  { %14351 = vmatprep.subr.bf16.mxu1 %v14350_v63 }
 0x777   :  { %14345 = vmatpush3.bf16.msra.mxu0 %v14342_v57 }
 0x778   :  { %14362 = vmatprep.subr.bf16.mxu0 %v15382_v48 }
 0x779   :  { %14353 = vmatpush3.bf16.msra.mxu1 %v14350_v63 }
 0x77a   :  { %14355 = vmatprep.subr.bf16.mxu1 %v14354_v58 }
 0x77d   :  { %14357 = vmatpush3.bf16.msra.mxu1 %v14354_v58  ;;  %v11962_v58 = vld [vmem:[%s16968_s1 + $0x88] sm:$0xff] }
 0x77e   :  { %14359 = vmatprep.subr.bf16.mxu1 %v14358_v44 }
 0x781   :  { %14361 = vmatpush3.bf16.msra.mxu1 %v14358_v44 }
 0x845   :  { %v13176_v2 = vpop.f32.mrb[12].mxu0 }
 0x846   :  { %v1574_v59 = vmul.f32 0.03125, %v13176_v2  ;;  %v1564_v3 = vpop.f32.mrb[13].mxu0  ;;  %v11965_v2 = vld [vmem:[%s16968_s1 + $0xa0] sm:$0xff] }
 0x847   :  { %v1573_v4 = vmul.f32 0.03125, %v1564_v3  ;;  %v13187_v6 = vpop.f32.mrb[14].mxu1  ;;  %v11966_v3 = vld [vmem:[%s16968_s1 + $0xa8] sm:$0xff] }
 0x848   :  { %v1661_v7 = vmul.f32 %v1574_v59, %v1574_v59  ;;  %v1659_v8 = vmul.f32 0.03125, %v13187_v6  ;;  %v1649_v9 = vpop.f32.mrb[15].mxu1  ;;  %v1669_v29 = vsub.f32 %v1491_v45, %v1574_v59  ;;  %v11951_v45 = vld [vmem:[%s16971_s4] ss:$0 sm:$0xff]  ;;  %v14370_v59 = vpack.c.bf16 %v11962_v58, %v11961_v1  ;;  %v11964_v6 = vld [vmem:[%s16968_s1 + $0x98] sm:$0xff] }
 0x849   :  { %v1660_v10 = vmul.f32 %v1573_v4, %v1573_v4  ;;  %v1658_v11 = vmul.f32 0.03125, %v1649_v9  ;;  %v1668_v32 = vsub.f32 %v1490_v46, %v1573_v4  ;;  %v11963_v4 = vld [vmem:[%s16968_s1 + $0x90] sm:$0xff] }
 0x84a   :  { %v1663_v12 = vsub.f32 %v1659_v8, %v1661_v7  ;;  %v14378_v7 = vpack.c.bf16 %v11966_v3, %v11965_v2  ;;  %v14374_v8 = vpack.c.bf16 %v11964_v6, %v11963_v4  ;;  %v11967_v9 = vld [vmem:[%s16968_s1 + $0xb0] sm:$0xff]  ;;  %14371 = vmatprep.subr.bf16.mxu1 %v14370_v59 }
 0x84b   :  { %v1662_v14 = vsub.f32 %v1658_v11, %v1660_v10  ;;  %v11968_v10 = vld [vmem:[%s16968_s1 + $0xb8] sm:$0xff] }
 0x84c   :  { %v1665_v21 = vadd.f32 1e-05, %v1663_v12  ;;  %v14382_v11 = vpack.c.bf16 %v11968_v10, %v11967_v9  ;;  %v11969_v12 = vld [vmem:[%s16968_s1 + $0xc0] sm:$0xff] }
 0x84d   :  { %v1664_v22 = vadd.f32 1e-05, %v1662_v14  ;;  %v11970_v14 = vld [vmem:[%s16968_s1 + $0xc8] sm:$0xff] }
 0x84e   :  { %15046 = vrsqrt.f32 %v1665_v21  ;;  %v14386_v21 = vpack.c.bf16 %v11970_v14, %v11969_v12 }
 0x84f   :  { %15048 = vrsqrt.f32 %v1664_v22 }
 0x858   :  { %v15047_v31 = vpop.eup %15046 }
 0x859   :  { %v15049_v33 = vpop.eup %15048  ;;  %v1671_v34 = vmul.f32 %v15047_v31, %v1669_v29 }
 0x85a   :  { %v1670_v35 = vmul.f32 %v15049_v33, %v1668_v32 }
 0x85b   :  { %v1677_v37 = vmul.f32 %v1675_v30, %v1671_v34 }
 0x85c   :  { %v1676_v38 = vmul.f32 %v1675_v30, %v1670_v35 }
 0x85d   :  { %v1683_v40 = vadd.f32 %v1681_v36, %v1677_v37 }
 0x85e   :  { %v1682_v39 = vadd.f32 %v1681_v36, %v1676_v38 }
 0x860   :  { %13196 = vmatprep.mubr.msk.f32.mxu0 %vm126_vm0, %v1682_v39 }
 0x861   :  { %13197 = vmatmul.mubr.msk.f32.vlgmr.msra.gmra.mrb[14].mxu0 %vm126_vm0, %v1683_v40 }
 0x862   :  { %14363 = vmatpush3.bf16.msra.mxu0 %v15382_v48 }
 0x863   :  { %14364 = vmatprep.subr.bf16.mxu0 %v15382_v48 }
 0x866   :  { %14365 = vmatpush3.bf16.msra.mxu0 %v15382_v48 }
 0x867   :  { %14366 = vmatprep.subr.bf16.mxu0 %v15382_v48 }
 0x934   :  { %v13198_v46 = vpop.f32.mrb[14].mxu0 }
 0x935   :  { %v1773_v47 = vadd.f32 %v13198_v46, %v11951_v45  ;;  %v1767_v49 = vpop.f32.mrb[15].mxu0 }
 0x936   :  { %v1768_v50 = vadd.f32 %v11951_v45, %v1767_v49  ;;  %v2057_v45 = vrot.slane %v15546_v17, %v15798_v43 }
 0x937   :  { %v1777_v52 = vmax.f32 %v1773_v47, 0.0 }
 0x938   :  { %v1776_v51 = vmax.f32 %v1768_v50, 0.0 }
 0x93a   :  { %13215 = vmatprep.mubr.msk.f32.mxu1 %vm1790_vm3, %v1776_v51 }
 0x93b   :  { %13216 = vmatmul.mubr.msk.f32.vlgmr.msra.gmra.mrb[16].mxu1 %vm1790_vm3, %v1777_v52  ;;  %v11960_v52 = vld [vmem:[%s16969_s2 + $0x8] ss:$0 sm:$0xff] }
 0x93c   :  { %14373 = vmatpush3.bf16.msra.mxu1 %v14370_v59 }
 0x93d   :  { %14375 = vmatprep.subr.bf16.mxu1 %v14374_v8 }
 0x940   :  { %14377 = vmatpush3.bf16.msra.mxu1 %v14374_v8 }
 0x941   :  { %14387 = vmatprep.subr.bf16.mxu1 %v14386_v21 }
 0xa0e   :  { %v13217_v57 = vpop.f32.mrb[16].mxu1 }
 0xa0f   :  { %v1869_v5 = vadd.f32 %v13217_v57, %v1789_v55  ;;  %v1863_v13 = vpop.f32.mrb[17].mxu1 }
 0xa10   :  { %v1864_v60 = vadd.f32 %v1863_v13, %v1789_v55 }
 0xa11   :  { %v1873_v62 = vadd.f32 %v1869_v5, %v1683_v40  ;;  %v11972_v5 = vld [vmem:[%s16968_s1 + $0xd8] sm:$0xff] }
 0xa12   :  { %v1872_v61 = vadd.f32 %v1864_v60, %v1682_v39  ;;  %v14390_v60 = vpack.c.bf16 %v11972_v5, %v11971_v15 }
 0xa13   :  { %v1958_v0 = vmul.f32 %v1873_v62, %v1873_v62 }
 0xa14   :  { %v1957_v63 = vmul.f32 %v1872_v61, %v1872_v61  ;;  %13226 = vmatprep.mubr.msk.f32.mxu0 %vm126_vm0, %v1872_v61 }
 0xa15   :  { %13227 = vmatmul.mubr.msk.f32.vlgmr.msra.gmra.mrb[16].mxu0 %vm126_vm0, %v1873_v62 }
 0xa16   :  { %14367 = vmatpush3.bf16.msra.mxu0 %v15382_v48  ;;  %13237 = vmatprep.mubr.msk.f32.mxu0 %vm126_vm0, %v1957_v63 }
 0xa17   :  { %14368 = vmatprep.subr.bf16.mxu0 %v15382_v48 }
 0xa1a   :  { %14369 = vmatpush3.bf16.msra.mxu0 %v15382_v48 }
 0xa1b   :  { %14379 = vmatprep.subr.bf16.mxu0 %v14378_v7 }
 0xa1d   :  { %13238 = vmatmul.mubr.msk.f32.vlgmr.msra.gmra.mrb[18].mxu0 %vm126_vm0, %v1958_v0 }
 0xa1e   :  { %14381 = vmatpush3.bf16.msra.mxu0 %v14378_v7 }
 0xa1f   :  { %14383 = vmatprep.subr.bf16.mxu0 %v14382_v11 }
 0xa22   :  { %14385 = vmatpush3.bf16.msra.mxu0 %v14382_v11 }
 0xae8   :  { %v13228_v22 = vpop.f32.mrb[16].mxu0 }
 0xae9   :  { %v1946_v29 = vpop.f32.mrb[17].mxu0  ;;  %v1956_v30 = vmul.f32 0.03125, %v13228_v22 }
 0xaea   :  { %v1955_v31 = vmul.f32 0.03125, %v1946_v29 }
 0xaeb   :  { %v2043_v33 = vmul.f32 %v1956_v30, %v1956_v30  ;;  %v2051_v44 = vsub.f32 %v1873_v62, %v1956_v30 }
 0xaec   :  { %v2042_v36 = vmul.f32 %v1955_v31, %v1955_v31  ;;  %v2050_v47 = vsub.f32 %v1872_v61, %v1955_v31  ;;  %v15832_v61 = vld [vmem:[%s16969_s2 + $0x10] sm:$0xff] }
 0xaed   :  { %v2174_v62 = vrot.slane %v15832_v61, %v15541_v16  ;;  %v2089_v63 = vrot.slane %v15832_v61, %v15549_v18 }
 0xaf0   :  { %v13239_v32 = vpop.f32.mrb[18].mxu0 }
 0xaf1   :  { %v2041_v34 = vmul.f32 0.03125, %v13239_v32  ;;  %v2031_v35 = vpop.f32.mrb[19].mxu0 }
 0xaf2   :  { %v2040_v37 = vmul.f32 0.03125, %v2031_v35 }
 0xaf3   :  { %v2045_v38 = vsub.f32 %v2041_v34, %v2043_v33 }
 0xaf4   :  { %v2044_v39 = vsub.f32 %v2040_v37, %v2042_v36 }
 0xaf5   :  { %v2047_v40 = vadd.f32 1e-05, %v2045_v38 }
 0xaf6   :  { %v2046_v41 = vadd.f32 1e-05, %v2044_v39 }
 0xaf7   :  { %15050 = vrsqrt.f32 %v2047_v40 }
 0xaf8   :  { %15052 = vrsqrt.f32 %v2046_v41 }
 0xb01   :  { %v15051_v46 = vpop.eup %15050 }
 0xb02   :  { %v15053_v49 = vpop.eup %15052  ;;  %v2053_v50 = vmul.f32 %v15051_v46, %v2051_v44 }
 0xb03   :  { %v2052_v51 = vmul.f32 %v15053_v49, %v2050_v47 }
 0xb04   :  { %v2059_v55 = vmul.f32 %v2057_v45, %v2053_v50 }
 0xb05   :  { %v2058_v57 = vmul.f32 %v2057_v45, %v2052_v51 }
 0xb06   :  { %v15813_v13 = vadd.f32 %v11960_v52, %v2059_v55 }
 0xb07   :  { %v15811_v17 = vadd.f32 %v11960_v52, %v2058_v57 }
 0xb09   :  { %13248 = vmatprep.mubr.msk.f32.mxu1 %vm126_vm0, %v15811_v17  ;;  %13259 = vmatprep.mubr.msk.f32.mxu0 %vm126_vm0, %v15811_v17 }
 0xb0a   :  { %13249 = vmatmul.mubr.msk.f32.vlgmr.msra.gmra.mrb[18].mxu1 %vm126_vm0, %v15813_v13  ;;  %13260 = vmatmul.mubr.msk.f32.vlgmr.msra.gmra.mrb[20].mxu0 %vm126_vm0, %v15813_v13 }
 0xb0b   :  { %14389 = vmatpush3.bf16.msra.mxu1 %v14386_v21  ;;  %13270 = vmatprep.mubr.msk.f32.mxu1 %vm126_vm0, %v15811_v17  ;;  %v2253_v21 = vrot.slane %v15832_v61, %v15552_v19 }
 0xb0c   :  { %14391 = vmatprep.subr.bf16.mxu1 %v14390_v60 }
 0xb0f   :  { %14393 = vmatpush3.bf16.msra.mxu1 %v14390_v60 }
 0xb10   :  { %14400 = vmatprep.subr.bf16.mxu1 %v15382_v48 }
 0xb12   :  { %13271 = vmatmul.mubr.msk.f32.vlgmr.msra.gmra.mrb[20].mxu1 %vm126_vm0, %v15813_v13 }
 0xb13   :  { %14401 = vmatpush3.bf16.msra.mxu1 %v15382_v48 }
 0xbdd   :  { %v13250_v0 = vpop.f32.mrb[18].mxu1  ;;  %v13261_v1 = vpop.f32.mrb[20].mxu0 }
 0xbde   :  { %v2247_v58 = vadd.f32 %v13261_v1, %v2174_v62  ;;  %v2162_v2 = vpop.f32.mrb[19].mxu1  ;;  %v2241_v59 = vpop.f32.mrb[21].mxu0  ;;  %v2168_v46 = vadd.f32 %v13250_v0, %v2089_v63 }
 0xbdf   :  { %v2163_v3 = vadd.f32 %v2162_v2, %v2089_v63  ;;  %v2242_v4 = vadd.f32 %v2241_v59, %v2174_v62 }
 0xbe0   :  { %v2330_v6 = vmul.f32 %v2247_v58, %v15560_v23  ;;  %v2512_v7 = vmul.f32 %v2247_v58, %v15563_v24  ;;  %v2850_v8 = vmul.f32 %v2247_v58, %v15566_v25  ;;  %v3109_v9 = vmul.f32 %v2247_v58, %v15569_v26 }
 0xbe1   :  { %v2329_v10 = vmul.f32 %v2242_v4, %v15560_v23  ;;  %v2511_v11 = vmul.f32 %v2242_v4, %v15563_v24  ;;  %v2849_v12 = vmul.f32 %v2242_v4, %v15566_v25  ;;  %v3108_v14 = vmul.f32 %v2242_v4, %v15569_v26  ;;  %13277 = vmatprep.mubr.msk.f32.mxu0 %vm126_vm0, %v2163_v3 }
 0xbe3   :  { %v14394_v22 = vpack.c.bf16 %v2330_v6, %v2329_v10  ;;  %v14402_v29 = vpack.c.bf16 %v2512_v7, %v2511_v11  ;;  %v14418_v30 = vpack.c.bf16 %v2850_v8, %v2849_v12  ;;  %v14430_v31 = vpack.c.bf16 %v3109_v9, %v3108_v14 }
 0xbe5   :  { %v13272_v32 = vpop.f32.mrb[20].mxu1  ;;  %14396 = vmatprep.subr.msk.bf16.mxu0 %vm15583_vm1, %v14394_v22  ;;  %14404 = vmatprep.subr.msk.bf16.mxu1 %vm15583_vm1, %v14402_v29 }
 0xbe6   :  { %v2326_v33 = vadd.f32 %v13272_v32, %v2253_v21  ;;  %v2320_v34 = vpop.f32.mrb[21].mxu1  ;;  %14399 = vmatpush3.bf16.xpose.msk.msra.mxu0 %vm15583_vm1, %v14394_v22 }
 0xbe7   :  { %v2321_v35 = vadd.f32 %v2320_v34, %v2253_v21  ;;  %14408 = vmatprep.subr.bf16.mxu0 %v15382_v48 }
 0xbe8   :  { %v2514_v36 = vmul.f32 %v2326_v33, %v15563_v24  ;;  %v2332_v37 = vmul.f32 %v2326_v33, %v15560_v23  ;;  %v2852_v38 = vmul.f32 %v2326_v33, %v15566_v25  ;;  %v3111_v39 = vmul.f32 %v2326_v33, %v15569_v26 }
 0xbe9   :  { %v2513_v40 = vmul.f32 %v2321_v35, %v15563_v24  ;;  %v2331_v41 = vmul.f32 %v2321_v35, %v15560_v23  ;;  %v2851_v44 = vmul.f32 %v2321_v35, %v15566_v25  ;;  %v3110_v45 = vmul.f32 %v2321_v35, %v15569_v26 }
 0xbeb   :  { %v14410_v47 = vpack.c.bf16 %v2514_v36, %v2513_v40  ;;  %v15864_v49 = vpack.c.bf16 %v2332_v37, %v2331_v41  ;;  %v15866_v50 = vpack.c.bf16 %v2852_v38, %v2851_v44  ;;  %v15868_v51 = vpack.c.bf16 %v3111_v39, %v3110_v45 }
 0xbed   :  { %13278 = vmatmul.mubr.msk.f32.vlgmr.msra.gmra.mrb[22].mxu0 %vm126_vm0, %v2168_v46 }
 0xbee   :  { %14409 = vmatpush3.bf16.msra.mxu0 %v15382_v48 }
 0xbef   :  { %14411 = vmatprep.subr.bf16.mxu0 %v14410_v47 }
 0xcc0   :  { %v13279_v52 = vpop.f32.mrb[22].mxu0 }
 0xcc1   :  { %v2422_v55 = vmul.f32 1.442695, %v13279_v52  ;;  %v2411_v57 = vpop.f32.mrb[23].mxu0 }
 0xcc2   :  { %v2420_v15 = vmul.f32 1.442695, %v2411_v57 }
 0xcc3   :  { %15054 = vpow2.f32 %v2422_v55 }
 0xcc4   :  { %15056 = vpow2.f32 %v2420_v15 }
 0xccd   :  { %v15055_v5 = vpop.eup %15054 }
 0xcce   :  { %v15057_v60 = vpop.eup %15056  ;;  %v2425_v63 = vmul.f32 %v15055_v5, %v15599_v56 }
 0xccf   :  { %v2424_v62 = vmul.f32 %v15057_v60, %v15597_v54 }
 0xcd1   :  { %13284 = vmatprep.mubr.msk.f32.mxu1 %vm463_vm2, %v2424_v62 }
 0xcd2   :  { %13285 = vmatmul.mubr.msk.f32.vlgmr.msra.gmra.mrb[22].mxu1 %vm463_vm2, %v2425_v63 }
 0xcd3   :  { %14407 = vmatpush3.bf16.xpose.msk.msra.mxu1 %vm15583_vm1, %v14402_v29  ;;  %13291 = vmatprep.mubr.msk.f32.mxu1 %vm126_vm0, %v2163_v3 }
 0xcd4   :  { %14420 = vmatprep.subr.msk.bf16.mxu1 %vm15583_vm1, %v14418_v30 }
 0xcda   :  { %13292 = vmatmul.mubr.msk.f32.vlgmr.msra.gmra.mrb[24].mxu1 %vm126_vm0, %v2168_v46 }
 0xcdb   :  { %14423 = vmatpush3.bf16.xpose.msk.msra.mxu1 %vm15583_vm1, %v14418_v30  ;;  %13319 = vmatprep.mubr.msk.f32.mxu1 %vm126_vm0, %v2163_v3 }
 0xcdc   :  { %14432 = vmatprep.subr.msk.bf16.mxu1 %vm15583_vm1, %v14430_v31 }
 0xce2   :  { %13320 = vmatmul.mubr.msk.f32.vlgmr.msra.gmra.mrb[26].mxu1 %vm126_vm0, %v2168_v46 }
 0xce3   :  { %14435 = vmatpush3.bf16.xpose.msk.msra.mxu1 %vm15583_vm1, %v14430_v31  ;;  %13340 = vmatprep.mubr.msk.f32.mxu1 %vm126_vm0, %v2163_v3 }
 0xcea   :  { %13341 = vmatmul.mubr.msk.f32.vlgmr.msra.gmra.mrb[28].mxu1 %vm126_vm0, %v2168_v46 }
 0xda5   :  { %v13286_v0 = vpop.f32.mrb[22].mxu1 }
 0xda6   :  { %v2498_v1 = vpop.f32.mrb[23].mxu1 }
 0xdad   :  { %v13293_v58 = vpop.f32.mrb[24].mxu1 }
 0xdae   :  { %v2598_v2 = vmul.f32 1.442695, %v13293_v58  ;;  %v2587_v59 = vpop.f32.mrb[25].mxu1 }
 0xdaf   :  { %v2596_v4 = vmul.f32 1.442695, %v2587_v59 }
 0xdb0   :  { %15058 = vpow2.f32 %v2598_v2 }
 0xdb1   :  { %15060 = vpow2.f32 %v2596_v4 }
 0xdb2   :  { %15062 = vrcp.f32 %v2498_v1 }
 0xdb5   :  { %v13321_v6 = vpop.f32.mrb[26].mxu1 }
 0xdb6   :  { %v2925_v7 = vpop.f32.mrb[27].mxu1  ;;  %v2936_v29 = vmul.f32 1.442695, %v13321_v6 }
 0xdb7   :  { %v2934_v22 = vmul.f32 1.442695, %v2925_v7 }
 0xdba   :  { %v15059_v8 = vpop.eup %15058 }
 0xdbb   :  { %v15061_v9 = vpop.eup %15060  ;;  %v2601_v12 = vmul.f32 %v15059_v8, %v15599_v56 }
 0xdbc   :  { %v2600_v10 = vmul.f32 %v15061_v9, %v15597_v54  ;;  %v15063_v30 = vpop.eup %15062  ;;  %v3370_v9 = vrot.slane %v15832_v61, %v15555_v20 }
 0xdbd   :  { %v13342_v11 = vpop.f32.mrb[28].mxu1  ;;  %v2509_v35 = vmul.f32 %v15063_v30, %v2424_v62  ;;  %v11974_v62 = vld [vmem:[%s16968_s1 + $0xe8] sm:$0xff]  ;;  %v3647_v30 = vld [vmem:[#allocation5 + $0x20] sm:$0xff] }
 0xdbe   :  { %13298 = vmatprep.mubr.msk.f32.mxu0 %vm463_vm2, %v2600_v10  ;;  %v3184_v3 = vpop.f32.mrb[29].mxu1  ;;  %v3195_v46 = vmul.f32 1.442695, %v13342_v11 }
 0xdbf   :  { %13299 = vmatmul.mubr.msk.f32.vlgmr.msra.gmra.mrb[24].mxu0 %vm463_vm2, %v2601_v12  ;;  %v3193_v44 = vmul.f32 1.442695, %v3184_v3 }
 0xdc0   :  { %14413 = vmatpush3.bf16.msra.mxu0 %v14410_v47 }
 0xdc1   :  { %14415 = vmatprep.subr.bf16.mxu0 %v15864_v49 }
 0xe92   :  { %v13300_v14 = vpop.f32.mrb[24].mxu0 }
 0xe93   :  { %15064 = vrcp.f32 %v13300_v14  ;;  %v2674_v21 = vpop.f32.mrb[25].mxu0 }
 0xe94   :  { %15066 = vrcp.f32 %v2674_v21 }
 0xe95   :  { %15068 = vrcp.f32 %v13286_v0 }
 0xe96   :  { %15070 = vpow2.f32 %v2934_v22 }
 0xe97   :  { %15072 = vpow2.f32 %v2936_v29 }
 0xe98   :  { %15074 = vpow2.f32 %v3193_v44 }
 0xe9d   :  { %v15065_v31 = vpop.eup %15064 }
 0xe9e   :  { %v15067_v32 = vpop.eup %15066  ;;  %v2686_v34 = vmul.f32 %v15065_v31, %v2601_v12  ;;  %v3648_v31 = vld [vmem:[#allocation5 + $0x28] sm:$0xff] }
 0xe9f   :  { %v2685_v33 = vmul.f32 %v15067_v32, %v2600_v10  ;;  %v15069_v36 = vpop.eup %15068  ;;  %v14458_v32 = vpack.c.bf16 %v3648_v31, %v3647_v30 }
 0xea0   :  { %v15071_v37 = vpop.eup %15070  ;;  %v2510_v38 = vmul.f32 %v15069_v36, %v2425_v63  ;;  %v11975_v63 = vld [vmem:[%s16968_s1 + $0xf0] sm:$0xff] }
 0xea1   :  { %13305 = vmatprep.mubr.msk.f32.mxu0 %vm463_vm2, %v2685_v33  ;;  %v15073_v39 = vpop.eup %15072  ;;  %v2938_v40 = vmul.f32 %v15071_v37, %v15597_v54  ;;  %v3649_v33 = vld [vmem:[#allocation5 + $0x30] sm:$0xff]  ;;  %v12029_v36 = vld [vmem:[%s16972_s5 + $0x50] sm:$0xff] }
 0xea2   :  { %13306 = vmatmul.mubr.msk.f32.vlgmr.msra.gmra.mrb[26].mxu0 %vm463_vm2, %v2686_v34  ;;  %v2939_v41 = vmul.f32 %v15073_v39, %v15599_v56  ;;  %v3650_v34 = vld [vmem:[#allocation5 + $0x38] sm:$0xff] }
 0xea3   :  { %14417 = vmatpush3.bf16.msra.mxu0 %v15864_v49  ;;  %13312 = vmatprep.mubr.msk.f32.mxu0 %vm463_vm2, %v2509_v35  ;;  %v15075_v49 = vpop.eup %15074  ;;  %v14462_v35 = vpack.c.bf16 %v3650_v34, %v3649_v33 }
 0xea4   :  { %14424 = vmatprep.subr.bf16.mxu0 %v15382_v48 }
 0xeaa   :  { %13313 = vmatmul.mubr.msk.f32.vlgmr.msra.gmra.mrb[26].mxu0 %vm463_vm2, %v2510_v38  ;;  %v12030_v38 = vld [vmem:[%s16972_s5 + $0x58] sm:$0xff] }
 0xeab   :  { %14425 = vmatpush3.bf16.msra.mxu0 %v15382_v48  ;;  %13326 = vmatprep.mubr.msk.f32.mxu0 %vm463_vm2, %v2938_v40  ;;  %v14470_v39 = vpack.c.bf16 %v12030_v38, %v12029_v36 }
 0xeac   :  { %14427 = vmatprep.subr.bf16.mxu0 %v15866_v50 }
 0xeae   :  { %13327 = vmatmul.mubr.msk.f32.vlgmr.msra.gmra.mrb[28].mxu0 %vm463_vm2, %v2939_v41 }
 0xeaf   :  { %14429 = vmatpush3.bf16.msra.mxu0 %v15866_v50  ;;  %v3197_v50 = vmul.f32 %v15075_v49, %v15597_v54  ;;  %v11973_v54 = vld [vmem:[%s16968_s1 + $0xe0] sm:$0xff] }
 0xeb0   :  { %14436 = vmatprep.subr.bf16.mxu0 %v15382_v48  ;;  %v14442_v0 = vpack.c.bf16 %v11974_v62, %v11973_v54 }
 0xeb2   :  { %14443 = vmatprep.subr.bf16.mxu1 %v14442_v0 }
 0xeb3   :  { %14445 = vmatpush3.bf16.msra.mxu1 %v14442_v0 }
 0xf81   :  { %v13328_v45 = vpop.f32.mrb[28].mxu0 }
 0xf82   :  { %15076 = vrcp.f32 %v13328_v45  ;;  %v3012_v47 = vpop.f32.mrb[29].mxu0 }
 0xf83   :  { %15078 = vrcp.f32 %v3012_v47 }
 0xf84   :  { %15080 = vpow2.f32 %v3195_v46 }
 0xf8c   :  { %v15077_v52 = vpop.eup %15076 }
 0xf8d   :  { %v15079_v55 = vpop.eup %15078  ;;  %v3024_v15 = vmul.f32 %v15077_v52, %v2939_v41  ;;  %v12032_v41 = vld [vmem:[%s16972_s5 + $0x68] sm:$0xff] }
 0xf8e   :  { %v3023_v57 = vmul.f32 %v15079_v55, %v2938_v40  ;;  %v15081_v5 = vpop.eup %15080  ;;  %v12031_v40 = vld [vmem:[%s16972_s5 + $0x60] sm:$0xff] }
 0xf8f   :  { %v3198_v60 = vmul.f32 %v15081_v5, %v15599_v56  ;;  %v11976_v56 = vld [vmem:[%s16968_s1 + $0xf8] sm:$0xff]  ;;  %v14474_v44 = vpack.c.bf16 %v12032_v41, %v12031_v40  ;;  %v12043_v40 = vld [vmem:[%s16968_s1 + $0x108] sm:$0xff]  ;;  %v12046_v41 = vld [vmem:[%s16968_s1 + $0x120] sm:$0xff] }
 0xf90   :  { %13333 = vmatprep.mubr.msk.f32.mxu0 %vm463_vm2, %v3023_v57 }
 0xf91   :  { %13334 = vmatmul.mubr.msk.f32.vlgmr.msra.gmra.mrb[26].mxu0 %vm463_vm2, %v3024_v15 }
 0xf92   :  { %14437 = vmatpush3.bf16.msra.mxu0 %v15382_v48  ;;  %13347 = vmatprep.mubr.msk.f32.mxu0 %vm463_vm2, %v3197_v50 }
 0xf93   :  { %14439 = vmatprep.subr.bf16.mxu0 %v15868_v51 }
 0xf95   :  { %13348 = vmatmul.mubr.msk.f32.vlgmr.msra.gmra.mrb[30].mxu0 %vm463_vm2, %v3198_v60 }
 0xf96   :  { %14441 = vmatpush3.bf16.msra.mxu0 %v15868_v51  ;;  %v14446_v51 = vpack.c.bf16 %v11976_v56, %v11975_v63  ;;  %v3637_v56 = vrot.slane %v15832_v61, %v15729_v27 }
 0xf97   :  { %14450 = vmatprep.subr.bf16.mxu0 %v15382_v48 }
 0xf98   :  { %14447 = vmatprep.subr.bf16.mxu1 %v14446_v51 }
 0xf99   :  { %14449 = vmatpush3.bf16.msra.mxu1 %v14446_v51 }
 0xf9a   :  { %14454 = vmatprep.subr.bf16.mxu1 %v15382_v48 }
0x1068   :  { %v13349_v1 = vpop.f32.mrb[30].mxu0 }
0x1069   :  { %15082 = vrcp.f32 %v13349_v1  ;;  %v3271_v58 = vpop.f32.mrb[31].mxu0 }
0x106a   :  { %15084 = vrcp.f32 %v3271_v58 }
0x1073   :  { %v15083_v2 = vpop.eup %15082 }
0x1074   :  { %v15085_v59 = vpop.eup %15084  ;;  %v3283_v6 = vmul.f32 %v15083_v2, %v3198_v60 }
0x1075   :  { %v3282_v4 = vmul.f32 %v15085_v59, %v3197_v50 }
0x1077   :  { %13354 = vmatprep.mubr.msk.f32.mxu0 %vm463_vm2, %v3282_v4  ;;  %v3643_v4 = vrot.slane %v15832_v61, %v15732_v28 }
0x1078   :  { %13355 = vmatmul.mubr.msk.f32.vlgmr.msra.gmra.mrb[26].mxu0 %vm463_vm2, %v3283_v6 }
0x1079   :  { %14451 = vmatpush3.bf16.msra.mxu0 %v15382_v48 }
0x107a   :  { %14452 = vmatprep.subr.bf16.mxu0 %v15382_v48 }
0x107d   :  { %14453 = vmatpush3.bf16.msra.mxu0 %v15382_v48 }
0x107e   :  { %14459 = vmatprep.subr.bf16.mxu0 %v14458_v32 }
0x114b   :  { %v13356_v7 = vpop.f32.mrb[26].mxu0 }
0x114c   :  { %v3356_v8 = vpop.f32.mrb[27].mxu0 }
0x114d   :  { %13365 = vmatprep.mubr.msk.f32.mxu1 %vm126_vm0, %v3356_v8 }
0x114e   :  { %13366 = vmatmul.mubr.msk.f32.vlgmr.msra.gmra.mrb[30].mxu1 %vm126_vm0, %v13356_v7 }
0x114f   :  { %14455 = vmatpush3.bf16.msra.mxu1 %v15382_v48 }
0x1150   :  { %14456 = vmatprep.subr.bf16.mxu1 %v15382_v48 }
0x1153   :  { %14457 = vmatpush3.bf16.msra.mxu1 %v15382_v48 }
0x1221   :  { %v13367_v10 = vpop.f32.mrb[30].mxu1 }
0x1222   :  { %v3449_v11 = vadd.f32 %v13367_v10, %v3370_v9  ;;  %v3443_v12 = vpop.f32.mrb[31].mxu1  ;;  %v12033_v10 = vld [vmem:[%s16972_s5 + $0x70] sm:$0xff] }
0x1223   :  { %v3444_v3 = vadd.f32 %v3443_v12, %v3370_v9 }
0x1224   :  { %v3453_v14 = vadd.f32 %v3449_v11, %v15813_v13  ;;  %v12028_v13 = vld [vmem:[%s16972_s5 + $0x48] sm:$0xff]  ;;  %v12034_v11 = vld [vmem:[%s16972_s5 + $0x78] sm:$0xff] }
0x1225   :  { %v3452_v21 = vadd.f32 %v3444_v3, %v15811_v17  ;;  %v12027_v17 = vld [vmem:[%s16972_s5 + $0x40] sm:$0xff]  ;;  %v14478_v12 = vpack.c.bf16 %v12034_v11, %v12033_v10  ;;  %v4021_v10 = vrot.slane %v15832_v61, %v15798_v43 }
0x1226   :  { %v3538_v29 = vmul.f32 %v3453_v14, %v3453_v14  ;;  %v14466_v37 = vpack.c.bf16 %v12028_v13, %v12027_v17  ;;  %v12024_v3 = vld [vmem:[%s16971_s4 + $0x1] ss:$0 sm:$0xff] }
0x1227   :  { %v3537_v22 = vmul.f32 %v3452_v21, %v3452_v21  ;;  %13376 = vmatprep.mubr.msk.f32.mxu0 %vm126_vm0, %v3452_v21 }
0x1228   :  { %13377 = vmatmul.mubr.msk.f32.vlgmr.msra.gmra.mrb[32].mxu0 %vm126_vm0, %v3453_v14  ;;  %14467 = vmatprep.subr.bf16.mxu1 %v14466_v37 }
0x1229   :  { %13387 = vmatprep.mubr.msk.f32.mxu1 %vm126_vm0, %v3537_v22  ;;  %14461 = vmatpush3.bf16.msra.mxu0 %v14458_v32  ;;  %v3754_v32 = vrot.slane %v15832_v61, %v15756_v53 }
0x122a   :  { %13388 = vmatmul.mubr.msk.f32.vlgmr.msra.gmra.mrb[32].mxu1 %vm126_vm0, %v3538_v29  ;;  %14463 = vmatprep.subr.bf16.mxu0 %v14462_v35 }
0x122b   :  { %14469 = vmatpush3.bf16.msra.mxu1 %v14466_v37 }
0x122c   :  { %14471 = vmatprep.subr.bf16.mxu1 %v14470_v39 }
0x122d   :  { %14465 = vmatpush3.bf16.msra.mxu0 %v14462_v35 }
0x122e   :  { %14482 = vmatprep.subr.bf16.mxu0 %v15382_v48 }
0x122f   :  { %14473 = vmatpush3.bf16.msra.mxu1 %v14470_v39  ;;  %v12042_v39 = vld [vmem:[%s16968_s1 + $0x100] sm:$0xff] }
0x1230   :  { %14475 = vmatprep.subr.bf16.mxu1 %v14474_v44 }
0x1233   :  { %14477 = vmatpush3.bf16.msra.mxu1 %v14474_v44  ;;  %v14490_v44 = vpack.c.bf16 %v12043_v40, %v12042_v39 }
0x1234   :  { %14479 = vmatprep.subr.bf16.mxu1 %v14478_v12 }
0x1237   :  { %14481 = vmatpush3.bf16.msra.mxu1 %v14478_v12 }
0x1238   :  { %14491 = vmatprep.subr.bf16.mxu1 %v14490_v44 }
0x12fb   :  { %v13378_v45 = vpop.f32.mrb[32].mxu0 }
0x12fc   :  { %v3536_v46 = vmul.f32 0.03125, %v13378_v45  ;;  %v3526_v47 = vpop.f32.mrb[33].mxu0  ;;  %v12047_v45 = vld [vmem:[%s16968_s1 + $0x128] sm:$0xff] }
0x12fd   :  { %v3535_v49 = vmul.f32 0.03125, %v3526_v47  ;;  %v13389_v52 = vpop.f32.mrb[32].mxu1  ;;  %v12045_v47 = vld [vmem:[%s16968_s1 + $0x118] sm:$0xff] }
0x12fe   :  { %v3623_v55 = vmul.f32 %v3536_v46, %v3536_v46  ;;  %v3621_v57 = vmul.f32 0.03125, %v13389_v52  ;;  %v3611_v15 = vpop.f32.mrb[33].mxu1  ;;  %v3631_v0 = vsub.f32 %v3453_v14, %v3536_v46  ;;  %v12044_v46 = vld [vmem:[%s16968_s1 + $0x110] sm:$0xff] }
0x12ff   :  { %v3622_v5 = vmul.f32 %v3535_v49, %v3535_v49  ;;  %v3620_v50 = vmul.f32 0.03125, %v3611_v15  ;;  %v3630_v1 = vsub.f32 %v3452_v21, %v3535_v49  ;;  %v14498_v49 = vpack.c.bf16 %v12047_v45, %v12046_v41 }
0x1300   :  { %v3625_v60 = vsub.f32 %v3621_v57, %v3623_v55  ;;  %v14494_v52 = vpack.c.bf16 %v12045_v47, %v12044_v46  ;;  %v12048_v55 = vld [vmem:[%s16968_s1 + $0x130] sm:$0xff]  ;;  %v12049_v57 = vld [vmem:[%s16968_s1 + $0x138] sm:$0xff] }
0x1301   :  { %v3624_v54 = vsub.f32 %v3620_v50, %v3622_v5  ;;  %v14502_v15 = vpack.c.bf16 %v12049_v57, %v12048_v55  ;;  %v12050_v5 = vld [vmem:[%s16968_s1 + $0x140] sm:$0xff]  ;;  %v12051_v50 = vld [vmem:[%s16968_s1 + $0x148] sm:$0xff] }
0x1302   :  { %v3627_v62 = vadd.f32 1e-05, %v3625_v60  ;;  %v14506_v60 = vpack.c.bf16 %v12051_v50, %v12050_v5 }
0x1303   :  { %v3626_v63 = vadd.f32 1e-05, %v3624_v54 }
0x1304   :  { %15086 = vrsqrt.f32 %v3627_v62 }
0x1305   :  { %15088 = vrsqrt.f32 %v3626_v63 }
0x130e   :  { %v15087_v51 = vpop.eup %15086 }
0x130f   :  { %v15089_v58 = vpop.eup %15088  ;;  %v3633_v2 = vmul.f32 %v15087_v51, %v3631_v0 }
0x1310   :  { %v3632_v59 = vmul.f32 %v15089_v58, %v3630_v1 }
0x1311   :  { %v3639_v6 = vmul.f32 %v3637_v56, %v3633_v2 }
0x1312   :  { %v3638_v7 = vmul.f32 %v3637_v56, %v3632_v59 }
0x1313   :  { %v3645_v9 = vadd.f32 %v3643_v4, %v3639_v6 }
0x1314   :  { %v3644_v8 = vadd.f32 %v3643_v4, %v3638_v7 }
0x1316   :  { %13398 = vmatprep.mubr.msk.f32.mxu0 %vm126_vm0, %v3644_v8 }
0x1317   :  { %13399 = vmatmul.mubr.msk.f32.vlgmr.msra.gmra.mrb[34].mxu0 %vm126_vm0, %v3645_v9 }
0x1318   :  { %14483 = vmatpush3.bf16.msra.mxu0 %v15382_v48 }
0x1319   :  { %14484 = vmatprep.subr.bf16.mxu0 %v15382_v48 }
0x131c   :  { %14485 = vmatpush3.bf16.msra.mxu0 %v15382_v48 }
0x131d   :  { %14486 = vmatprep.subr.bf16.mxu0 %v15382_v48 }
0x13ea   :  { %v13400_v14 = vpop.f32.mrb[34].mxu0 }
0x13eb   :  { %v3737_v21 = vadd.f32 %v13400_v14, %v12024_v3  ;;  %v3731_v22 = vpop.f32.mrb[35].mxu0 }
0x13ec   :  { %v3732_v29 = vadd.f32 %v12024_v3, %v3731_v22  ;;  %v12041_v22 = vld [vmem:[%s16969_s2 + $0x18] ss:$0 sm:$0xff] }
0x13ed   :  { %v3741_v31 = vmax.f32 %v3737_v21, 0.0 }
0x13ee   :  { %v3740_v30 = vmax.f32 %v3732_v29, 0.0 }
0x13f0   :  { %13417 = vmatprep.mubr.msk.f32.mxu1 %vm1790_vm3, %v3740_v30 }
0x13f1   :  { %13418 = vmatmul.mubr.msk.f32.vlgmr.msra.gmra.mrb[34].mxu1 %vm1790_vm3, %v3741_v31  ;;  %v12052_v31 = vld [vmem:[%s16968_s1 + $0x150] sm:$0xff] }
0x13f2   :  { %14493 = vmatpush3.bf16.msra.mxu1 %v14490_v44 }
0x13f3   :  { %14495 = vmatprep.subr.bf16.mxu1 %v14494_v52 }
0x13f6   :  { %14497 = vmatpush3.bf16.msra.mxu1 %v14494_v52 }
0x13f7   :  { %14507 = vmatprep.subr.bf16.mxu1 %v14506_v60 }
0x14c4   :  { %v13419_v33 = vpop.f32.mrb[34].mxu1 }
0x14c5   :  { %v3833_v34 = vadd.f32 %v13419_v33, %v3754_v32  ;;  %v3827_v35 = vpop.f32.mrb[35].mxu1 }
0x14c6   :  { %v3828_v17 = vadd.f32 %v3827_v35, %v3754_v32  ;;  %v12053_v32 = vld [vmem:[%s16968_s1 + $0x158] sm:$0xff]  ;;  %v16063_v35 = vld [vmem:[%s16969_s2 + $0x20] sm:$0xff] }
0x14c7   :  { %v3837_v36 = vadd.f32 %v3833_v34, %v3645_v9  ;;  %v14510_v34 = vpack.c.bf16 %v12053_v32, %v12052_v31  ;;  %v4217_v5 = vrot.slane %v16063_v35, %v15552_v19  ;;  %v16106_v32 = vld [vmem:[#allocation8] sm:$0xff] }
0x14c8   :  { %v3836_v13 = vadd.f32 %v3828_v17, %v3644_v8  ;;  %v4138_v17 = vrot.slane %v16063_v35, %v15541_v16 }
0x14c9   :  { %v3922_v38 = vmul.f32 %v3837_v36, %v3837_v36 }
0x14ca   :  { %v3921_v37 = vmul.f32 %v3836_v13, %v3836_v13  ;;  %13428 = vmatprep.mubr.msk.f32.mxu0 %vm126_vm0, %v3836_v13 }
0x14cb   :  { %13429 = vmatmul.mubr.msk.f32.vlgmr.msra.gmra.mrb[36].mxu0 %vm126_vm0, %v3837_v36 }
0x14cc   :  { %14487 = vmatpush3.bf16.msra.mxu0 %v15382_v48  ;;  %13439 = vmatprep.mubr.msk.f32.mxu0 %vm126_vm0, %v3921_v37 }
0x14cd   :  { %14488 = vmatprep.subr.bf16.mxu0 %v15382_v48 }
0x14d0   :  { %14489 = vmatpush3.bf16.msra.mxu0 %v15382_v48 }
0x14d1   :  { %14499 = vmatprep.subr.bf16.mxu0 %v14498_v49 }
0x14d3   :  { %13440 = vmatmul.mubr.msk.f32.vlgmr.msra.gmra.mrb[38].mxu0 %vm126_vm0, %v3922_v38 }
0x14d4   :  { %14501 = vmatpush3.bf16.msra.mxu0 %v14498_v49 }
0x14d5   :  { %14503 = vmatprep.subr.bf16.mxu0 %v14502_v15 }
0x14d8   :  { %14505 = vmatpush3.bf16.msra.mxu0 %v14502_v15 }
0x159e   :  { %v13430_v54 = vpop.f32.mrb[36].mxu0 }
0x159f   :  { %v3910_v62 = vpop.f32.mrb[37].mxu0  ;;  %v3920_v63 = vmul.f32 0.03125, %v13430_v54 }
0x15a0   :  { %v3919_v0 = vmul.f32 0.03125, %v3910_v62 }
0x15a1   :  { %v4007_v51 = vmul.f32 %v3920_v63, %v3920_v63  ;;  %v4015_v9 = vsub.f32 %v3837_v36, %v3920_v63 }
0x15a2   :  { %v4006_v2 = vmul.f32 %v3919_v0, %v3919_v0  ;;  %v4014_v12 = vsub.f32 %v3836_v13, %v3919_v0  ;;  %v4053_v13 = vrot.slane %v16063_v35, %v15549_v18 }
0x15a6   :  { %v13441_v56 = vpop.f32.mrb[38].mxu0 }
0x15a7   :  { %v4005_v1 = vmul.f32 0.03125, %v13441_v56  ;;  %v3995_v58 = vpop.f32.mrb[39].mxu0 }
0x15a8   :  { %v4004_v59 = vmul.f32 0.03125, %v3995_v58 }
0x15a9   :  { %v4009_v4 = vsub.f32 %v4005_v1, %v4007_v51 }
0x15aa   :  { %v4008_v6 = vsub.f32 %v4004_v59, %v4006_v2 }
0x15ab   :  { %v4011_v7 = vadd.f32 1e-05, %v4009_v4 }
0x15ac   :  { %v4010_v8 = vadd.f32 1e-05, %v4008_v6 }
0x15ad   :  { %15090 = vrsqrt.f32 %v4011_v7 }
0x15ae   :  { %15092 = vrsqrt.f32 %v4010_v8 }
0x15b7   :  { %v15091_v11 = vpop.eup %15090 }
0x15b8   :  { %v15093_v3 = vpop.eup %15092  ;;  %v4017_v14 = vmul.f32 %v15091_v11, %v4015_v9 }
0x15b9   :  { %v4016_v21 = vmul.f32 %v15093_v3, %v4014_v12 }
0x15ba   :  { %v4023_v29 = vmul.f32 %v4021_v10, %v4017_v14 }
0x15bb   :  { %v4022_v30 = vmul.f32 %v4021_v10, %v4016_v21 }
0x15bc   :  { %v16044_v33 = vadd.f32 %v12041_v22, %v4023_v29 }
0x15bd   :  { %v16042_v61 = vadd.f32 %v12041_v22, %v4022_v30 }
0x15bf   :  { %13450 = vmatprep.mubr.msk.f32.mxu1 %vm126_vm0, %v16042_v61  ;;  %13461 = vmatprep.mubr.msk.f32.mxu0 %vm126_vm0, %v16042_v61 }
0x15c0   :  { %13451 = vmatmul.mubr.msk.f32.vlgmr.msra.gmra.mrb[36].mxu1 %vm126_vm0, %v16044_v33  ;;  %13462 = vmatmul.mubr.msk.f32.vlgmr.msra.gmra.mrb[40].mxu0 %vm126_vm0, %v16044_v33 }
0x15c1   :  { %14509 = vmatpush3.bf16.msra.mxu1 %v14506_v60  ;;  %13472 = vmatprep.mubr.msk.f32.mxu1 %vm126_vm0, %v16042_v61 }
0x15c2   :  { %14511 = vmatprep.subr.bf16.mxu1 %v14510_v34 }
0x15c5   :  { %14513 = vmatpush3.bf16.msra.mxu1 %v14510_v34 }
0x15c6   :  { %14520 = vmatprep.subr.bf16.mxu1 %v15382_v48 }
0x15c8   :  { %13473 = vmatmul.mubr.msk.f32.vlgmr.msra.gmra.mrb[38].mxu1 %vm126_vm0, %v16044_v33 }
0x15c9   :  { %14521 = vmatpush3.bf16.msra.mxu1 %v15382_v48 }
0x1693   :  { %v13452_v36 = vpop.f32.mrb[36].mxu1  ;;  %v13463_v37 = vpop.f32.mrb[40].mxu0 }
0x1694   :  { %v4211_v38 = vadd.f32 %v13463_v37, %v4138_v17  ;;  %v4126_v39 = vpop.f32.mrb[37].mxu1  ;;  %v4205_v40 = vpop.f32.mrb[41].mxu0  ;;  %v4132_v9 = vadd.f32 %v13452_v36, %v4053_v13 }
0x1695   :  { %v16069_v41 = vadd.f32 %v4126_v39, %v4053_v13  ;;  %v4206_v44 = vadd.f32 %v4205_v40, %v4138_v17  ;;  %v16109_v17 = vld [vmem:[#allocation8 + $0x8] sm:$0xff] }
0x1696   :  { %v4294_v45 = vmul.f32 %v4211_v38, %v15560_v23  ;;  %v4476_v46 = vmul.f32 %v4211_v38, %v15563_v24  ;;  %v4814_v47 = vmul.f32 %v4211_v38, %v15566_v25  ;;  %v5073_v49 = vmul.f32 %v4211_v38, %v15569_v26 }
0x1697   :  { %v4293_v52 = vmul.f32 %v4206_v44, %v15560_v23  ;;  %v4475_v55 = vmul.f32 %v4206_v44, %v15563_v24  ;;  %v4813_v57 = vmul.f32 %v4206_v44, %v15566_v25  ;;  %v5072_v15 = vmul.f32 %v4206_v44, %v15569_v26  ;;  %13479 = vmatprep.mubr.msk.f32.mxu0 %vm126_vm0, %v16069_v41 }
0x1699   :  { %v14514_v50 = vpack.c.bf16 %v4294_v45, %v4293_v52  ;;  %v14522_v60 = vpack.c.bf16 %v4476_v46, %v4475_v55  ;;  %v14538_v54 = vpack.c.bf16 %v4814_v47, %v4813_v57  ;;  %v14550_v62 = vpack.c.bf16 %v5073_v49, %v5072_v15 }
0x169b   :  { %v13474_v63 = vpop.f32.mrb[38].mxu1  ;;  %14516 = vmatprep.subr.msk.bf16.mxu0 %vm15583_vm1, %v14514_v50  ;;  %14524 = vmatprep.subr.msk.bf16.mxu1 %vm15583_vm1, %v14522_v60 }
0x169c   :  { %v4290_v0 = vadd.f32 %v13474_v63, %v4217_v5  ;;  %v4284_v56 = vpop.f32.mrb[39].mxu1  ;;  %14519 = vmatpush3.bf16.xpose.msk.msra.mxu0 %vm15583_vm1, %v14514_v50 }
0x169d   :  { %v4285_v51 = vadd.f32 %v4284_v56, %v4217_v5  ;;  %14528 = vmatprep.subr.bf16.mxu0 %v15382_v48 }
0x169e   :  { %v4478_v1 = vmul.f32 %v4290_v0, %v15563_v24  ;;  %v4296_v58 = vmul.f32 %v4290_v0, %v15560_v23  ;;  %v4816_v2 = vmul.f32 %v4290_v0, %v15566_v25  ;;  %v5075_v59 = vmul.f32 %v4290_v0, %v15569_v26 }
0x169f   :  { %v4477_v4 = vmul.f32 %v4285_v51, %v15563_v24  ;;  %v4295_v6 = vmul.f32 %v4285_v51, %v15560_v23  ;;  %v4815_v7 = vmul.f32 %v4285_v51, %v15566_v25  ;;  %v5074_v8 = vmul.f32 %v4285_v51, %v15569_v26 }
0x16a1   :  { %v14530_v10 = vpack.c.bf16 %v4478_v1, %v4477_v4  ;;  %v16098_v11 = vpack.c.bf16 %v4296_v58, %v4295_v6  ;;  %v16100_v12 = vpack.c.bf16 %v4816_v2, %v4815_v7  ;;  %v16102_v3 = vpack.c.bf16 %v5075_v59, %v5074_v8 }
0x16a3   :  { %13480 = vmatmul.mubr.msk.f32.vlgmr.msra.gmra.mrb[42].mxu0 %vm126_vm0, %v4132_v9 }
0x16a4   :  { %14529 = vmatpush3.bf16.msra.mxu0 %v15382_v48 }
0x16a5   :  { %14531 = vmatprep.subr.bf16.mxu0 %v14530_v10 }
0x1776   :  { %v13481_v14 = vpop.f32.mrb[42].mxu0 }
0x1777   :  { %v4386_v21 = vmul.f32 1.442695, %v13481_v14  ;;  %v4375_v22 = vpop.f32.mrb[43].mxu0 }
0x1778   :  { %v4384_v29 = vmul.f32 1.442695, %v4375_v22 }
0x1779   :  { %15094 = vpow2.f32 %v4386_v21 }
0x177a   :  { %15096 = vpow2.f32 %v4384_v29 }
0x1783   :  { %v15095_v30 = vpop.eup %15094 }
0x1784   :  { %v15097_v31 = vpop.eup %15096  ;;  %v4389_v13 = vmul.f32 %v16109_v17, %v15095_v30 }
0x1785   :  { %v4388_v34 = vmul.f32 %v16106_v32, %v15097_v31 }
0x1787   :  { %13486 = vmatprep.mubr.msk.f32.mxu1 %vm463_vm2, %v4388_v34 }
0x1788   :  { %13487 = vmatmul.mubr.msk.f32.vlgmr.msra.gmra.mrb[40].mxu1 %vm463_vm2, %v4389_v13 }
0x1789   :  { %14527 = vmatpush3.bf16.xpose.msk.msra.mxu1 %vm15583_vm1, %v14522_v60  ;;  %13493 = vmatprep.mubr.msk.f32.mxu1 %vm126_vm0, %v16069_v41 }
0x178a   :  { %14540 = vmatprep.subr.msk.bf16.mxu1 %vm15583_vm1, %v14538_v54 }
0x1790   :  { %13494 = vmatmul.mubr.msk.f32.vlgmr.msra.gmra.mrb[42].mxu1 %vm126_vm0, %v4132_v9 }
0x1791   :  { %14543 = vmatpush3.bf16.xpose.msk.msra.mxu1 %vm15583_vm1, %v14538_v54  ;;  %13521 = vmatprep.mubr.msk.f32.mxu1 %vm126_vm0, %v16069_v41 }
0x1792   :  { %14552 = vmatprep.subr.msk.bf16.mxu1 %vm15583_vm1, %v14550_v62 }
0x1798   :  { %13522 = vmatmul.mubr.msk.f32.vlgmr.msra.gmra.mrb[44].mxu1 %vm126_vm0, %v4132_v9 }
0x1799   :  { %14555 = vmatpush3.bf16.xpose.msk.msra.mxu1 %vm15583_vm1, %v14550_v62  ;;  %13542 = vmatprep.mubr.msk.f32.mxu1 %vm126_vm0, %v16069_v41 }
0x17a0   :  { %13543 = vmatmul.mubr.msk.f32.vlgmr.msra.gmra.mrb[46].mxu1 %vm126_vm0, %v4132_v9 }
0x185b   :  { %v13488_v36 = vpop.f32.mrb[40].mxu1 }
0x185c   :  { %v4462_v37 = vpop.f32.mrb[41].mxu1 }
0x1863   :  { %v13495_v38 = vpop.f32.mrb[42].mxu1 }
0x1864   :  { %v4562_v39 = vmul.f32 1.442695, %v13495_v38  ;;  %v4551_v40 = vpop.f32.mrb[43].mxu1  ;;  %v12057_v38 = vld [vmem:[%s16968_s1 + $0x178] sm:$0xff] }
0x1865   :  { %v4560_v44 = vmul.f32 1.442695, %v4551_v40 }
0x1866   :  { %15098 = vpow2.f32 %v4562_v39 }
0x1867   :  { %15100 = vpow2.f32 %v4560_v44 }
0x1868   :  { %15102 = vrcp.f32 %v4462_v37 }
0x186b   :  { %v13523_v45 = vpop.f32.mrb[44].mxu1 }
0x186c   :  { %v4889_v46 = vpop.f32.mrb[45].mxu1  ;;  %v4900_v60 = vmul.f32 1.442695, %v13523_v45 }
0x186d   :  { %v4898_v50 = vmul.f32 1.442695, %v4889_v46 }
0x1870   :  { %v15099_v47 = vpop.eup %15098 }
0x1871   :  { %v15101_v49 = vpop.eup %15100  ;;  %v4565_v57 = vmul.f32 %v16109_v17, %v15099_v47 }
0x1872   :  { %v4564_v52 = vmul.f32 %v16106_v32, %v15101_v49  ;;  %v15103_v54 = vpop.eup %15102 }
0x1873   :  { %v13544_v55 = vpop.f32.mrb[46].mxu1  ;;  %v4473_v51 = vmul.f32 %v15103_v54, %v4388_v34  ;;  %v12054_v34 = vld [vmem:[%s16968_s1 + $0x160] sm:$0xff] }
0x1874   :  { %13500 = vmatprep.mubr.msk.f32.mxu0 %vm463_vm2, %v4564_v52  ;;  %v5148_v41 = vpop.f32.mrb[47].mxu1  ;;  %v5159_v9 = vmul.f32 1.442695, %v13544_v55  ;;  %v5334_v55 = vrot.slane %v16063_v35, %v15555_v20 }
0x1875   :  { %13501 = vmatmul.mubr.msk.f32.vlgmr.msra.gmra.mrb[44].mxu0 %vm463_vm2, %v4565_v57  ;;  %v5157_v7 = vmul.f32 1.442695, %v5148_v41 }
0x1876   :  { %14533 = vmatpush3.bf16.msra.mxu0 %v14530_v10 }
0x1877   :  { %14535 = vmatprep.subr.bf16.mxu0 %v16098_v11 }
0x1948   :  { %v13502_v15 = vpop.f32.mrb[44].mxu0 }
0x1949   :  { %15104 = vrcp.f32 %v13502_v15  ;;  %v4638_v5 = vpop.f32.mrb[45].mxu0 }
0x194a   :  { %15106 = vrcp.f32 %v4638_v5 }
0x194b   :  { %15108 = vrcp.f32 %v13488_v36  ;;  %v12056_v36 = vld [vmem:[%s16968_s1 + $0x170] sm:$0xff] }
0x194c   :  { %15110 = vpow2.f32 %v4898_v50 }
0x194d   :  { %15112 = vpow2.f32 %v4900_v60 }
0x194e   :  { %15114 = vpow2.f32 %v5157_v7  ;;  %v12112_v7 = vld [vmem:[%s16972_s5 + $0xa0] sm:$0xff] }
0x1953   :  { %v15105_v62 = vpop.eup %15104 }
0x1954   :  { %v15107_v63 = vpop.eup %15106  ;;  %v4650_v56 = vmul.f32 %v15105_v62, %v4565_v57 }
0x1955   :  { %v4649_v0 = vmul.f32 %v15107_v63, %v4564_v52  ;;  %v15109_v1 = vpop.eup %15108  ;;  %v5611_v63 = vld [vmem:[#allocation5 + $0x40] sm:$0xff] }
0x1956   :  { %v15111_v58 = vpop.eup %15110  ;;  %v4474_v2 = vmul.f32 %v15109_v1, %v4389_v13  ;;  %v12055_v13 = vld [vmem:[%s16968_s1 + $0x168] sm:$0xff] }
0x1957   :  { %13507 = vmatprep.mubr.msk.f32.mxu0 %vm463_vm2, %v4649_v0  ;;  %v15113_v59 = vpop.eup %15112  ;;  %v4902_v4 = vmul.f32 %v16106_v32, %v15111_v58  ;;  %v14562_v37 = vpack.c.bf16 %v12055_v13, %v12054_v34  ;;  %v5612_v0 = vld [vmem:[#allocation5 + $0x48] sm:$0xff]  ;;  %v5614_v1 = vld [vmem:[#allocation5 + $0x58] sm:$0xff] }
0x1958   :  { %13508 = vmatmul.mubr.msk.f32.vlgmr.msra.gmra.mrb[46].mxu0 %vm463_vm2, %v4650_v56  ;;  %v4903_v6 = vmul.f32 %v16109_v17, %v15113_v59  ;;  %v14578_v56 = vpack.c.bf16 %v5612_v0, %v5611_v63 }
0x1959   :  { %14537 = vmatpush3.bf16.msra.mxu0 %v16098_v11  ;;  %13514 = vmatprep.mubr.msk.f32.mxu0 %vm463_vm2, %v4473_v51  ;;  %v15115_v11 = vpop.eup %15114  ;;  %v5613_v51 = vld [vmem:[#allocation5 + $0x50] sm:$0xff] }
0x195a   :  { %14544 = vmatprep.subr.bf16.mxu0 %v15382_v48  ;;  %14563 = vmatprep.subr.bf16.mxu1 %v14562_v37  ;;  %v14582_v58 = vpack.c.bf16 %v5614_v1, %v5613_v51  ;;  %v5718_v1 = vrot.slane %v16063_v35, %v15756_v53 }
0x195b   :  { %14565 = vmatpush3.bf16.msra.mxu1 %v14562_v37 }
0x1960   :  { %13515 = vmatmul.mubr.msk.f32.vlgmr.msra.gmra.mrb[46].mxu0 %vm463_vm2, %v4474_v2  ;;  %v12110_v2 = vld [vmem:[%s16972_s5 + $0x90] sm:$0xff] }
0x1961   :  { %14545 = vmatpush3.bf16.msra.mxu0 %v15382_v48  ;;  %13528 = vmatprep.mubr.msk.f32.mxu0 %vm463_vm2, %v4902_v4 }
0x1962   :  { %14547 = vmatprep.subr.bf16.mxu0 %v16100_v12 }
0x1964   :  { %13529 = vmatmul.mubr.msk.f32.vlgmr.msra.gmra.mrb[48].mxu0 %vm463_vm2, %v4903_v6 }
0x1965   :  { %14549 = vmatpush3.bf16.msra.mxu0 %v16100_v12  ;;  %v5161_v12 = vmul.f32 %v16106_v32, %v15115_v11 }
0x1966   :  { %14556 = vmatprep.subr.bf16.mxu0 %v15382_v48 }
0x1a37   :  { %v13530_v8 = vpop.f32.mrb[48].mxu0 }
0x1a38   :  { %15116 = vrcp.f32 %v13530_v8  ;;  %v4976_v10 = vpop.f32.mrb[49].mxu0  ;;  %v12113_v8 = vld [vmem:[%s16972_s5 + $0xa8] sm:$0xff] }
0x1a39   :  { %15118 = vrcp.f32 %v4976_v10 }
0x1a3a   :  { %15120 = vpow2.f32 %v5159_v9  ;;  %v14594_v9 = vpack.c.bf16 %v12113_v8, %v12112_v7  ;;  %v12123_v8 = vld [vmem:[%s16968_s1 + $0x180] sm:$0xff] }
0x1a42   :  { %v15117_v14 = vpop.eup %15116 }
0x1a43   :  { %v15119_v21 = vpop.eup %15118  ;;  %v4988_v29 = vmul.f32 %v15117_v14, %v4903_v6 }
0x1a44   :  { %v4987_v22 = vmul.f32 %v15119_v21, %v4902_v4  ;;  %v15121_v30 = vpop.eup %15120  ;;  %v12111_v4 = vld [vmem:[%s16972_s5 + $0x98] sm:$0xff] }
0x1a45   :  { %v5162_v31 = vmul.f32 %v16109_v17, %v15121_v30  ;;  %v14590_v6 = vpack.c.bf16 %v12111_v4, %v12110_v2 }
0x1a46   :  { %13535 = vmatprep.mubr.msk.f32.mxu0 %vm463_vm2, %v4987_v22 }
0x1a47   :  { %13536 = vmatmul.mubr.msk.f32.vlgmr.msra.gmra.mrb[46].mxu0 %vm463_vm2, %v4988_v29 }
0x1a48   :  { %14557 = vmatpush3.bf16.msra.mxu0 %v15382_v48  ;;  %13549 = vmatprep.mubr.msk.f32.mxu0 %vm463_vm2, %v5161_v12 }
0x1a49   :  { %14559 = vmatprep.subr.bf16.mxu0 %v16102_v3 }
0x1a4b   :  { %13550 = vmatmul.mubr.msk.f32.vlgmr.msra.gmra.mrb[50].mxu0 %vm463_vm2, %v5162_v31 }
0x1a4c   :  { %14561 = vmatpush3.bf16.msra.mxu0 %v16102_v3  ;;  %v14566_v3 = vpack.c.bf16 %v12057_v38, %v12056_v36 }
0x1a4d   :  { %14570 = vmatprep.subr.bf16.mxu0 %v15382_v48 }
0x1a4e   :  { %14567 = vmatprep.subr.bf16.mxu1 %v14566_v3 }
0x1a4f   :  { %14569 = vmatpush3.bf16.msra.mxu1 %v14566_v3 }
0x1a50   :  { %14574 = vmatprep.subr.bf16.mxu1 %v15382_v48 }
0x1b1e   :  { %v13551_v39 = vpop.f32.mrb[50].mxu0 }
0x1b1f   :  { %15122 = vrcp.f32 %v13551_v39  ;;  %v5235_v40 = vpop.f32.mrb[51].mxu0  ;;  %v5601_v39 = vrot.slane %v16063_v35, %v15729_v27 }
0x1b20   :  { %15124 = vrcp.f32 %v5235_v40 }
0x1b29   :  { %v15123_v44 = vpop.eup %15122 }
0x1b2a   :  { %v15125_v45 = vpop.eup %15124  ;;  %v5247_v47 = vmul.f32 %v15123_v44, %v5162_v31 }
0x1b2b   :  { %v5246_v46 = vmul.f32 %v15125_v45, %v5161_v12 }
0x1b2d   :  { %13556 = vmatprep.mubr.msk.f32.mxu0 %vm463_vm2, %v5246_v46 }
0x1b2e   :  { %13557 = vmatmul.mubr.msk.f32.vlgmr.msra.gmra.mrb[46].mxu0 %vm463_vm2, %v5247_v47 }
0x1b2f   :  { %14571 = vmatpush3.bf16.msra.mxu0 %v15382_v48 }
0x1b30   :  { %14572 = vmatprep.subr.bf16.mxu0 %v15382_v48 }
0x1b33   :  { %14573 = vmatpush3.bf16.msra.mxu0 %v15382_v48 }
0x1b34   :  { %14579 = vmatprep.subr.bf16.mxu0 %v14578_v56 }
0x1c01   :  { %v13558_v49 = vpop.f32.mrb[46].mxu0 }
0x1c02   :  { %v5320_v52 = vpop.f32.mrb[47].mxu0 }
0x1c03   :  { %13567 = vmatprep.mubr.msk.f32.mxu1 %vm126_vm0, %v5320_v52 }
0x1c04   :  { %13568 = vmatmul.mubr.msk.f32.vlgmr.msra.gmra.mrb[48].mxu1 %vm126_vm0, %v13558_v49  ;;  %v5607_v49 = vrot.slane %v16063_v35, %v15732_v28 }
0x1c05   :  { %14575 = vmatpush3.bf16.msra.mxu1 %v15382_v48 }
0x1c06   :  { %14576 = vmatprep.subr.bf16.mxu1 %v15382_v48 }
0x1c09   :  { %14577 = vmatpush3.bf16.msra.mxu1 %v15382_v48 }
0x1cd7   :  { %v13569_v57 = vpop.f32.mrb[48].mxu1 }
0x1cd8   :  { %v5413_v41 = vadd.f32 %v13569_v57, %v5334_v55  ;;  %v5407_v15 = vpop.f32.mrb[49].mxu1 }
0x1cd9   :  { %v5408_v5 = vadd.f32 %v5407_v15, %v5334_v55  ;;  %v12114_v15 = vld [vmem:[%s16972_s5 + $0xb0] sm:$0xff] }
0x1cda   :  { %v5417_v50 = vadd.f32 %v5413_v41, %v16044_v33  ;;  %v12109_v33 = vld [vmem:[%s16972_s5 + $0x88] sm:$0xff] }
0x1cdb   :  { %v5416_v60 = vadd.f32 %v5408_v5, %v16042_v61  ;;  %v12108_v61 = vld [vmem:[%s16972_s5 + $0x80] sm:$0xff]  ;;  %v12115_v5 = vld [vmem:[%s16972_s5 + $0xb8] sm:$0xff] }
0x1cdc   :  { %v5502_v62 = vmul.f32 %v5417_v50, %v5417_v50  ;;  %v14586_v59 = vpack.c.bf16 %v12109_v33, %v12108_v61 }
0x1cdd   :  { %v5501_v54 = vmul.f32 %v5416_v60, %v5416_v60  ;;  %13578 = vmatprep.mubr.msk.f32.mxu0 %vm126_vm0, %v5416_v60 }
0x1cde   :  { %13579 = vmatmul.mubr.msk.f32.vlgmr.msra.gmra.mrb[52].mxu0 %vm126_vm0, %v5417_v50  ;;  %14587 = vmatprep.subr.bf16.mxu1 %v14586_v59 }
0x1cdf   :  { %13589 = vmatprep.mubr.msk.f32.mxu1 %vm126_vm0, %v5501_v54  ;;  %14581 = vmatpush3.bf16.msra.mxu0 %v14578_v56 }
0x1ce0   :  { %13590 = vmatmul.mubr.msk.f32.vlgmr.msra.gmra.mrb[50].mxu1 %vm126_vm0, %v5502_v62  ;;  %14583 = vmatprep.subr.bf16.mxu0 %v14582_v58 }
0x1ce1   :  { %14589 = vmatpush3.bf16.msra.mxu1 %v14586_v59 }
0x1ce2   :  { %14591 = vmatprep.subr.bf16.mxu1 %v14590_v6 }
0x1ce3   :  { %14585 = vmatpush3.bf16.msra.mxu0 %v14582_v58 }
0x1ce4   :  { %14602 = vmatprep.subr.bf16.mxu0 %v15382_v48 }
0x1ce5   :  { %14593 = vmatpush3.bf16.msra.mxu1 %v14590_v6 }
0x1ce6   :  { %14595 = vmatprep.subr.bf16.mxu1 %v14594_v9 }
0x1ce9   :  { %14597 = vmatpush3.bf16.msra.mxu1 %v14594_v9  ;;  %v12124_v9 = vld [vmem:[%s16968_s1 + $0x188] sm:$0xff] }
0x1db1   :  { %v13580_v10 = vpop.f32.mrb[52].mxu0 }
0x1db2   :  { %v5500_v11 = vmul.f32 0.03125, %v13580_v10  ;;  %v5490_v14 = vpop.f32.mrb[53].mxu0  ;;  %v12127_v10 = vld [vmem:[%s16968_s1 + $0x1a0] sm:$0xff] }
0x1db3   :  { %v5499_v21 = vmul.f32 0.03125, %v5490_v14  ;;  %v13591_v22 = vpop.f32.mrb[50].mxu1  ;;  %v12128_v14 = vld [vmem:[%s16968_s1 + $0x1a8] sm:$0xff] }
0x1db4   :  { %v5587_v29 = vmul.f32 %v5500_v11, %v5500_v11  ;;  %v5585_v30 = vmul.f32 0.03125, %v13591_v22  ;;  %v5575_v12 = vpop.f32.mrb[51].mxu1  ;;  %v5595_v3 = vsub.f32 %v5417_v50, %v5500_v11  ;;  %v14598_v50 = vpack.c.bf16 %v12115_v5, %v12114_v15  ;;  %v12126_v22 = vld [vmem:[%s16968_s1 + $0x198] sm:$0xff] }
0x1db5   :  { %v5586_v31 = vmul.f32 %v5499_v21, %v5499_v21  ;;  %v5584_v34 = vmul.f32 0.03125, %v5575_v12  ;;  %v5594_v44 = vsub.f32 %v5416_v60, %v5499_v21  ;;  %v12105_v60 = vld [vmem:[%s16971_s4 + $0x2] ss:$0 sm:$0xff]  ;;  %v14610_v11 = vpack.c.bf16 %v12124_v9, %v12123_v8  ;;  %v12125_v21 = vld [vmem:[%s16968_s1 + $0x190] sm:$0xff] }
0x1db6   :  { %v5589_v13 = vsub.f32 %v5585_v30, %v5587_v29  ;;  %14599 = vmatprep.subr.bf16.mxu1 %v14598_v50  ;;  %v14618_v29 = vpack.c.bf16 %v12128_v14, %v12127_v10  ;;  %v14614_v30 = vpack.c.bf16 %v12126_v22, %v12125_v21  ;;  %v12129_v12 = vld [vmem:[%s16968_s1 + $0x1b0] sm:$0xff] }
0x1db7   :  { %v5588_v36 = vsub.f32 %v5584_v34, %v5586_v31  ;;  %14601 = vmatpush3.bf16.msra.mxu1 %v14598_v50  ;;  %v12130_v31 = vld [vmem:[%s16968_s1 + $0x1b8] sm:$0xff]  ;;  %v5985_v50 = vrot.slane %v16063_v35, %v15798_v43 }
0x1db8   :  { %v5591_v37 = vadd.f32 1e-05, %v5589_v13  ;;  %14611 = vmatprep.subr.bf16.mxu1 %v14610_v11  ;;  %v14622_v34 = vpack.c.bf16 %v12130_v31, %v12129_v12  ;;  %v12131_v13 = vld [vmem:[%s16968_s1 + $0x1c0] sm:$0xff] }
0x1db9   :  { %v5590_v38 = vadd.f32 1e-05, %v5588_v36  ;;  %v12132_v36 = vld [vmem:[%s16968_s1 + $0x1c8] sm:$0xff] }
0x1dba   :  { %15126 = vrsqrt.f32 %v5591_v37  ;;  %v14626_v37 = vpack.c.bf16 %v12132_v36, %v12131_v13 }
0x1dbb   :  { %15128 = vrsqrt.f32 %v5590_v38 }
0x1dc4   :  { %v15127_v40 = vpop.eup %15126 }
0x1dc5   :  { %v15129_v45 = vpop.eup %15128  ;;  %v5597_v46 = vmul.f32 %v15127_v40, %v5595_v3 }
0x1dc6   :  { %v5596_v47 = vmul.f32 %v15129_v45, %v5594_v44 }
0x1dc7   :  { %v5603_v52 = vmul.f32 %v5601_v39, %v5597_v46 }
0x1dc8   :  { %v5602_v55 = vmul.f32 %v5601_v39, %v5596_v47 }
0x1dc9   :  { %v5609_v41 = vadd.f32 %v5607_v49, %v5603_v52 }
0x1dca   :  { %v5608_v57 = vadd.f32 %v5607_v49, %v5602_v55 }
0x1dcc   :  { %13600 = vmatprep.mubr.msk.f32.mxu0 %vm126_vm0, %v5608_v57 }
0x1dcd   :  { %13601 = vmatmul.mubr.msk.f32.vlgmr.msra.gmra.mrb[54].mxu0 %vm126_vm0, %v5609_v41 }
0x1dce   :  { %14603 = vmatpush3.bf16.msra.mxu0 %v15382_v48 }
0x1dcf   :  { %14604 = vmatprep.subr.bf16.mxu0 %v15382_v48 }
0x1dd2   :  { %14605 = vmatpush3.bf16.msra.mxu0 %v15382_v48 }
0x1dd3   :  { %14606 = vmatprep.subr.bf16.mxu0 %v15382_v48 }
0x1ea0   :  { %v13602_v54 = vpop.f32.mrb[54].mxu0 }
0x1ea1   :  { %v5701_v62 = vadd.f32 %v13602_v54, %v12105_v60  ;;  %v5695_v63 = vpop.f32.mrb[55].mxu0 }
0x1ea2   :  { %v5696_v0 = vadd.f32 %v12105_v60, %v5695_v63 }
0x1ea3   :  { %v5705_v51 = vmax.f32 %v5701_v62, 0.0 }
0x1ea4   :  { %v5704_v56 = vmax.f32 %v5696_v0, 0.0 }
0x1ea6   :  { %13619 = vmatprep.mubr.msk.f32.mxu1 %vm1790_vm3, %v5704_v56  ;;  %v12122_v56 = vld [vmem:[%s16969_s2 + $0x28] ss:$0 sm:$0xff] }
0x1ea7   :  { %13620 = vmatmul.mubr.msk.f32.vlgmr.msra.gmra.mrb[52].mxu1 %vm1790_vm3, %v5705_v51 }
0x1ea8   :  { %14613 = vmatpush3.bf16.msra.mxu1 %v14610_v11 }
0x1ea9   :  { %14615 = vmatprep.subr.bf16.mxu1 %v14614_v30 }
0x1eac   :  { %14617 = vmatpush3.bf16.msra.mxu1 %v14614_v30 }
0x1ead   :  { %14627 = vmatprep.subr.bf16.mxu1 %v14626_v37 }
0x1f7a   :  { %v13621_v58 = vpop.f32.mrb[52].mxu1 }
0x1f7b   :  { %v5797_v61 = vadd.f32 %v13621_v58, %v5718_v1  ;;  %v5791_v33 = vpop.f32.mrb[53].mxu1  ;;  %v12133_v58 = vld [vmem:[%s16968_s1 + $0x1d0] sm:$0xff] }
0x1f7c   :  { %v5792_v2 = vadd.f32 %v5791_v33, %v5718_v1 }
0x1f7d   :  { %v5801_v4 = vadd.f32 %v5797_v61, %v5609_v41  ;;  %v12134_v61 = vld [vmem:[%s16968_s1 + $0x1d8] sm:$0xff] }
0x1f7e   :  { %v5800_v59 = vadd.f32 %v5792_v2, %v5608_v57  ;;  %v14630_v2 = vpack.c.bf16 %v12134_v61, %v12133_v58 }
0x1f7f   :  { %v5886_v7 = vmul.f32 %v5801_v4, %v5801_v4 }
0x1f80   :  { %v5885_v6 = vmul.f32 %v5800_v59, %v5800_v59  ;;  %13630 = vmatprep.mubr.msk.f32.mxu0 %vm126_vm0, %v5800_v59 }
0x1f81   :  { %13631 = vmatmul.mubr.msk.f32.vlgmr.msra.gmra.mrb[56].mxu0 %vm126_vm0, %v5801_v4 }
0x1f82   :  { %14607 = vmatpush3.bf16.msra.mxu0 %v15382_v48  ;;  %13641 = vmatprep.mubr.msk.f32.mxu0 %vm126_vm0, %v5885_v6 }
0x1f83   :  { %14608 = vmatprep.subr.bf16.mxu0 %v15382_v48 }
0x1f86   :  { %14609 = vmatpush3.bf16.msra.mxu0 %v15382_v48 }
0x1f87   :  { %14619 = vmatprep.subr.bf16.mxu0 %v14618_v29 }
0x1f89   :  { %13642 = vmatmul.mubr.msk.f32.vlgmr.msra.gmra.mrb[58].mxu0 %vm126_vm0, %v5886_v7 }
0x1f8a   :  { %14621 = vmatpush3.bf16.msra.mxu0 %v14618_v29 }
0x1f8b   :  { %14623 = vmatprep.subr.bf16.mxu0 %v14622_v34 }
0x1f8e   :  { %14625 = vmatpush3.bf16.msra.mxu0 %v14622_v34 }
0x2054   :  { %v13632_v38 = vpop.f32.mrb[56].mxu0 }
0x2055   :  { %v5874_v3 = vpop.f32.mrb[57].mxu0  ;;  %v5884_v39 = vmul.f32 0.03125, %v13632_v38 }
0x2056   :  { %v5883_v40 = vmul.f32 0.03125, %v5874_v3 }
0x2057   :  { %v5971_v45 = vmul.f32 %v5884_v39, %v5884_v39  ;;  %v5979_v5 = vsub.f32 %v5801_v4, %v5884_v39 }
0x2058   :  { %v5970_v49 = vmul.f32 %v5883_v40, %v5883_v40  ;;  %v5978_v54 = vsub.f32 %v5800_v59, %v5883_v40  ;;  %v16304_v59 = vld [vmem:[%s16969_s2 + $0x30] sm:$0xff] }
0x2059   :  { %v6102_v4 = vrot.slane %v16304_v59, %v15541_v16  ;;  %v6017_v6 = vrot.slane %v16304_v59, %v15549_v18 }
0x205c   :  { %v13643_v44 = vpop.f32.mrb[58].mxu0 }
0x205d   :  { %v5969_v46 = vmul.f32 0.03125, %v13643_v44  ;;  %v5959_v47 = vpop.f32.mrb[59].mxu0 }
0x205e   :  { %v5968_v52 = vmul.f32 0.03125, %v5959_v47 }
0x205f   :  { %v5973_v55 = vsub.f32 %v5969_v46, %v5971_v45 }
0x2060   :  { %v5972_v57 = vsub.f32 %v5968_v52, %v5970_v49 }
0x2061   :  { %v5975_v41 = vadd.f32 1e-05, %v5973_v55 }
0x2062   :  { %v5974_v15 = vadd.f32 1e-05, %v5972_v57 }
0x2063   :  { %15130 = vrsqrt.f32 %v5975_v41 }
0x2064   :  { %15132 = vrsqrt.f32 %v5974_v15 }
0x206d   :  { %v15131_v60 = vpop.eup %15130 }
0x206e   :  { %v15133_v62 = vpop.eup %15132  ;;  %v5981_v63 = vmul.f32 %v15131_v60, %v5979_v5 }
0x206f   :  { %v5980_v0 = vmul.f32 %v15133_v62, %v5978_v54 }
0x2070   :  { %v5987_v51 = vmul.f32 %v5985_v50, %v5981_v63 }
0x2071   :  { %v5986_v1 = vmul.f32 %v5985_v50, %v5980_v0 }
0x2072   :  { %v16285_v33 = vadd.f32 %v12122_v56, %v5987_v51 }
0x2073   :  { %v16283_v35 = vadd.f32 %v12122_v56, %v5986_v1 }
0x2075   :  { %13652 = vmatprep.mubr.msk.f32.mxu1 %vm126_vm0, %v16283_v35  ;;  %13663 = vmatprep.mubr.msk.f32.mxu0 %vm126_vm0, %v16283_v35 }
0x2076   :  { %13653 = vmatmul.mubr.msk.f32.vlgmr.msra.gmra.mrb[54].mxu1 %vm126_vm0, %v16285_v33  ;;  %13664 = vmatmul.mubr.msk.f32.vlgmr.msra.gmra.mrb[60].mxu0 %vm126_vm0, %v16285_v33 }
0x2077   :  { %14629 = vmatpush3.bf16.msra.mxu1 %v14626_v37  ;;  %13674 = vmatprep.mubr.msk.f32.mxu1 %vm126_vm0, %v16283_v35  ;;  %v6181_v37 = vrot.slane %v16304_v59, %v15552_v19 }
0x2078   :  { %14631 = vmatprep.subr.bf16.mxu1 %v14630_v2 }
0x207b   :  { %14633 = vmatpush3.bf16.msra.mxu1 %v14630_v2 }
0x207c   :  { %14640 = vmatprep.subr.bf16.mxu1 %v15382_v48 }
0x207e   :  { %13675 = vmatmul.mubr.msk.f32.vlgmr.msra.gmra.mrb[56].mxu1 %vm126_vm0, %v16285_v33 }
0x207f   :  { %14641 = vmatpush3.bf16.msra.mxu1 %v15382_v48 }
0x2149   :  { %v13654_v7 = vpop.f32.mrb[54].mxu1  ;;  %v13665_v8 = vpop.f32.mrb[60].mxu0 }
0x214a   :  { %v6175_v9 = vadd.f32 %v13665_v8, %v6102_v4  ;;  %v6090_v10 = vpop.f32.mrb[55].mxu1  ;;  %v6169_v11 = vpop.f32.mrb[61].mxu0  ;;  %v6096_v60 = vadd.f32 %v13654_v7, %v6017_v6 }
0x214b   :  { %v6091_v14 = vadd.f32 %v6090_v10, %v6017_v6  ;;  %v6170_v21 = vadd.f32 %v6169_v11, %v6102_v4 }
0x214c   :  { %v6258_v22 = vmul.f32 %v6175_v9, %v15560_v23  ;;  %v6440_v29 = vmul.f32 %v6175_v9, %v15563_v24  ;;  %v6778_v30 = vmul.f32 %v6175_v9, %v15566_v25  ;;  %v7037_v12 = vmul.f32 %v6175_v9, %v15569_v26 }
0x214d   :  { %v6257_v31 = vmul.f32 %v6170_v21, %v15560_v23  ;;  %v6439_v34 = vmul.f32 %v6170_v21, %v15563_v24  ;;  %v6777_v13 = vmul.f32 %v6170_v21, %v15566_v25  ;;  %v7036_v36 = vmul.f32 %v6170_v21, %v15569_v26  ;;  %13681 = vmatprep.mubr.msk.f32.mxu0 %vm126_vm0, %v6091_v14 }
0x214f   :  { %v14634_v38 = vpack.c.bf16 %v6258_v22, %v6257_v31  ;;  %v14642_v3 = vpack.c.bf16 %v6440_v29, %v6439_v34  ;;  %v14658_v39 = vpack.c.bf16 %v6778_v30, %v6777_v13  ;;  %v14670_v40 = vpack.c.bf16 %v7037_v12, %v7036_v36 }
0x2151   :  { %v13676_v44 = vpop.f32.mrb[56].mxu1  ;;  %14636 = vmatprep.subr.msk.bf16.mxu0 %vm15583_vm1, %v14634_v38  ;;  %14644 = vmatprep.subr.msk.bf16.mxu1 %vm15583_vm1, %v14642_v3 }
0x2152   :  { %v6254_v45 = vadd.f32 %v13676_v44, %v6181_v37  ;;  %v6248_v46 = vpop.f32.mrb[57].mxu1  ;;  %14639 = vmatpush3.bf16.xpose.msk.msra.mxu0 %vm15583_vm1, %v14634_v38 }
0x2153   :  { %v6249_v47 = vadd.f32 %v6248_v46, %v6181_v37  ;;  %14648 = vmatprep.subr.bf16.mxu0 %v15382_v48 }
0x2154   :  { %v6442_v49 = vmul.f32 %v6254_v45, %v15563_v24  ;;  %v6260_v52 = vmul.f32 %v6254_v45, %v15560_v23  ;;  %v6780_v55 = vmul.f32 %v6254_v45, %v15566_v25  ;;  %v7039_v57 = vmul.f32 %v6254_v45, %v15569_v26 }
0x2155   :  { %v6441_v41 = vmul.f32 %v6249_v47, %v15563_v24  ;;  %v6259_v15 = vmul.f32 %v6249_v47, %v15560_v23  ;;  %v6779_v5 = vmul.f32 %v6249_v47, %v15566_v25  ;;  %v7038_v50 = vmul.f32 %v6249_v47, %v15569_v26 }
0x2157   :  { %v14650_v54 = vpack.c.bf16 %v6442_v49, %v6441_v41  ;;  %v16336_v62 = vpack.c.bf16 %v6260_v52, %v6259_v15  ;;  %v16338_v63 = vpack.c.bf16 %v6780_v55, %v6779_v5  ;;  %v16340_v0 = vpack.c.bf16 %v7039_v57, %v7038_v50 }
0x2159   :  { %13682 = vmatmul.mubr.msk.f32.vlgmr.msra.gmra.mrb[62].mxu0 %vm126_vm0, %v6096_v60 }
0x215a   :  { %14649 = vmatpush3.bf16.msra.mxu0 %v15382_v48 }
0x215b   :  { %14651 = vmatprep.subr.bf16.mxu0 %v14650_v54 }
0x222c   :  { %v13683_v56 = vpop.f32.mrb[62].mxu0 }
0x222d   :  { %v6350_v51 = vmul.f32 1.442695, %v13683_v56  ;;  %v6339_v1 = vpop.f32.mrb[63].mxu0 }
0x222e   :  { %v6348_v58 = vmul.f32 1.442695, %v6339_v1 }
0x222f   :  { %15134 = vpow2.f32 %v6350_v51 }
0x2230   :  { %15136 = vpow2.f32 %v6348_v58 }
0x2239   :  { %v15135_v61 = vpop.eup %15134 }
0x223a   :  { %v15137_v2 = vpop.eup %15136  ;;  %v6353_v6 = vmul.f32 %v16109_v17, %v15135_v61 }
0x223b   :  { %v6352_v4 = vmul.f32 %v16106_v32, %v15137_v2 }
0x223d   :  { %13688 = vmatprep.mubr.msk.f32.mxu1 %vm463_vm2, %v6352_v4 }
0x223e   :  { %13689 = vmatmul.mubr.msk.f32.vlgmr.msra.gmra.mrb[58].mxu1 %vm463_vm2, %v6353_v6 }
0x223f   :  { %14647 = vmatpush3.bf16.xpose.msk.msra.mxu1 %vm15583_vm1, %v14642_v3  ;;  %13695 = vmatprep.mubr.msk.f32.mxu1 %vm126_vm0, %v6091_v14 }
0x2240   :  { %14660 = vmatprep.subr.msk.bf16.mxu1 %vm15583_vm1, %v14658_v39 }
0x2246   :  { %13696 = vmatmul.mubr.msk.f32.vlgmr.msra.gmra.mrb[60].mxu1 %vm126_vm0, %v6096_v60 }
0x2247   :  { %14663 = vmatpush3.bf16.xpose.msk.msra.mxu1 %vm15583_vm1, %v14658_v39  ;;  %13723 = vmatprep.mubr.msk.f32.mxu1 %vm126_vm0, %v6091_v14 }
0x2248   :  { %14672 = vmatprep.subr.msk.bf16.mxu1 %vm15583_vm1, %v14670_v40 }
0x224e   :  { %13724 = vmatmul.mubr.msk.f32.vlgmr.msra.gmra.mrb[62].mxu1 %vm126_vm0, %v6096_v60 }
0x224f   :  { %14675 = vmatpush3.bf16.xpose.msk.msra.mxu1 %vm15583_vm1, %v14670_v40  ;;  %13744 = vmatprep.mubr.msk.f32.mxu1 %vm126_vm0, %v6091_v14 }
0x2256   :  { %13745 = vmatmul.mubr.msk.f32.vlgmr.msra.gmra.mrb[64].mxu1 %vm126_vm0, %v6096_v60 }
0x2311   :  { %v13690_v7 = vpop.f32.mrb[58].mxu1 }
0x2312   :  { %v6426_v8 = vpop.f32.mrb[59].mxu1 }
0x2319   :  { %v13697_v9 = vpop.f32.mrb[60].mxu1 }
0x231a   :  { %v6526_v10 = vmul.f32 1.442695, %v13697_v9  ;;  %v6515_v11 = vpop.f32.mrb[61].mxu1 }
0x231b   :  { %v6524_v21 = vmul.f32 1.442695, %v6515_v11 }
0x231c   :  { %15138 = vpow2.f32 %v6526_v10 }
0x231d   :  { %15140 = vpow2.f32 %v6524_v21 }
0x231e   :  { %15142 = vrcp.f32 %v6426_v8 }
0x2321   :  { %v13725_v22 = vpop.f32.mrb[62].mxu1 }
0x2322   :  { %v6853_v29 = vpop.f32.mrb[63].mxu1  ;;  %v6864_v3 = vmul.f32 1.442695, %v13725_v22 }
0x2323   :  { %v6862_v38 = vmul.f32 1.442695, %v6853_v29 }
0x2326   :  { %v15139_v30 = vpop.eup %15138 }
0x2327   :  { %v15141_v12 = vpop.eup %15140  ;;  %v6529_v13 = vmul.f32 %v16109_v17, %v15139_v30 }
0x2328   :  { %v6528_v31 = vmul.f32 %v16106_v32, %v15141_v12  ;;  %v15143_v39 = vpop.eup %15142  ;;  %v7298_v12 = vrot.slane %v16304_v59, %v15555_v20 }
0x2329   :  { %v13746_v34 = vpop.f32.mrb[64].mxu1  ;;  %v6437_v47 = vmul.f32 %v15143_v39, %v6352_v4  ;;  %v12136_v4 = vld [vmem:[%s16968_s1 + $0x1e8] sm:$0xff]  ;;  %v7575_v39 = vld [vmem:[#allocation5 + $0x60] sm:$0xff] }
0x232a   :  { %13702 = vmatprep.mubr.msk.f32.mxu0 %vm463_vm2, %v6528_v31  ;;  %v7112_v14 = vpop.f32.mrb[65].mxu1  ;;  %v7123_v60 = vmul.f32 1.442695, %v13746_v34 }
0x232b   :  { %13703 = vmatmul.mubr.msk.f32.vlgmr.msra.gmra.mrb[64].mxu0 %vm463_vm2, %v6529_v13  ;;  %v7121_v5 = vmul.f32 1.442695, %v7112_v14 }
0x232c   :  { %14653 = vmatpush3.bf16.msra.mxu0 %v14650_v54 }
0x232d   :  { %14655 = vmatprep.subr.bf16.mxu0 %v16336_v62 }
0x23fe   :  { %v13704_v36 = vpop.f32.mrb[64].mxu0 }
0x23ff   :  { %15144 = vrcp.f32 %v13704_v36  ;;  %v6602_v37 = vpop.f32.mrb[65].mxu0 }
0x2400   :  { %15146 = vrcp.f32 %v6602_v37 }
0x2401   :  { %15148 = vrcp.f32 %v13690_v7 }
0x2402   :  { %15150 = vpow2.f32 %v6862_v38 }
0x2403   :  { %15152 = vpow2.f32 %v6864_v3 }
0x2404   :  { %15154 = vpow2.f32 %v7121_v5 }
0x2409   :  { %v15145_v40 = vpop.eup %15144 }
0x240a   :  { %v15147_v44 = vpop.eup %15146  ;;  %v6614_v46 = vmul.f32 %v15145_v40, %v6529_v13  ;;  %v7576_v40 = vld [vmem:[#allocation5 + $0x68] sm:$0xff] }
0x240b   :  { %v6613_v45 = vmul.f32 %v15147_v44, %v6528_v31  ;;  %v15149_v49 = vpop.eup %15148  ;;  %v14698_v44 = vpack.c.bf16 %v7576_v40, %v7575_v39 }
0x240c   :  { %v15151_v52 = vpop.eup %15150  ;;  %v6438_v55 = vmul.f32 %v15149_v49, %v6353_v6  ;;  %v12137_v6 = vld [vmem:[%s16968_s1 + $0x1f0] sm:$0xff] }
0x240d   :  { %13709 = vmatprep.mubr.msk.f32.mxu0 %vm463_vm2, %v6613_v45  ;;  %v15153_v57 = vpop.eup %15152  ;;  %v6866_v41 = vmul.f32 %v16106_v32, %v15151_v52  ;;  %v7577_v45 = vld [vmem:[#allocation5 + $0x70] sm:$0xff]  ;;  %v12191_v49 = vld [vmem:[%s16972_s5 + $0xd0] sm:$0xff] }
0x240e   :  { %13710 = vmatmul.mubr.msk.f32.vlgmr.msra.gmra.mrb[66].mxu0 %vm463_vm2, %v6614_v46  ;;  %v6867_v15 = vmul.f32 %v16109_v17, %v15153_v57  ;;  %v7578_v46 = vld [vmem:[#allocation5 + $0x78] sm:$0xff] }
0x240f   :  { %14657 = vmatpush3.bf16.msra.mxu0 %v16336_v62  ;;  %13716 = vmatprep.mubr.msk.f32.mxu0 %vm463_vm2, %v6437_v47  ;;  %v15155_v62 = vpop.eup %15154  ;;  %v14702_v47 = vpack.c.bf16 %v7578_v46, %v7577_v45 }
0x2410   :  { %14664 = vmatprep.subr.bf16.mxu0 %v15382_v48 }
0x2416   :  { %13717 = vmatmul.mubr.msk.f32.vlgmr.msra.gmra.mrb[66].mxu0 %vm463_vm2, %v6438_v55  ;;  %v12192_v55 = vld [vmem:[%s16972_s5 + $0xd8] sm:$0xff] }
0x2417   :  { %14665 = vmatpush3.bf16.msra.mxu0 %v15382_v48  ;;  %13730 = vmatprep.mubr.msk.f32.mxu0 %vm463_vm2, %v6866_v41  ;;  %v14710_v57 = vpack.c.bf16 %v12192_v55, %v12191_v49 }
0x2418   :  { %14667 = vmatprep.subr.bf16.mxu0 %v16338_v63 }
0x241a   :  { %13731 = vmatmul.mubr.msk.f32.vlgmr.msra.gmra.mrb[68].mxu0 %vm463_vm2, %v6867_v15 }
0x241b   :  { %14669 = vmatpush3.bf16.msra.mxu0 %v16338_v63  ;;  %v7125_v63 = vmul.f32 %v16106_v32, %v15155_v62  ;;  %v12135_v32 = vld [vmem:[%s16968_s1 + $0x1e0] sm:$0xff] }
0x241c   :  { %14676 = vmatprep.subr.bf16.mxu0 %v15382_v48  ;;  %v14682_v7 = vpack.c.bf16 %v12136_v4, %v12135_v32 }
0x241e   :  { %14683 = vmatprep.subr.bf16.mxu1 %v14682_v7 }
0x241f   :  { %14685 = vmatpush3.bf16.msra.mxu1 %v14682_v7 }
0x24ed   :  { %v13732_v50 = vpop.f32.mrb[68].mxu0 }
0x24ee   :  { %15156 = vrcp.f32 %v13732_v50  ;;  %v6940_v54 = vpop.f32.mrb[69].mxu0 }
0x24ef   :  { %15158 = vrcp.f32 %v6940_v54 }
0x24f0   :  { %15160 = vpow2.f32 %v7123_v60 }
0x24f8   :  { %v15157_v56 = vpop.eup %15156 }
0x24f9   :  { %v15159_v51 = vpop.eup %15158  ;;  %v6952_v58 = vmul.f32 %v15157_v56, %v6867_v15  ;;  %v12194_v15 = vld [vmem:[%s16972_s5 + $0xe8] sm:$0xff] }
0x24fa   :  { %v6951_v1 = vmul.f32 %v15159_v51, %v6866_v41  ;;  %v15161_v61 = vpop.eup %15160  ;;  %v12193_v41 = vld [vmem:[%s16972_s5 + $0xe0] sm:$0xff] }
0x24fb   :  { %v7126_v2 = vmul.f32 %v16109_v17, %v15161_v61  ;;  %v12138_v17 = vld [vmem:[%s16968_s1 + $0x1f8] sm:$0xff]  ;;  %v14714_v5 = vpack.c.bf16 %v12194_v15, %v12193_v41  ;;  %v12205_v41 = vld [vmem:[%s16968_s1 + $0x208] sm:$0xff]  ;;  %v12208_v15 = vld [vmem:[%s16968_s1 + $0x220] sm:$0xff] }
0x24fc   :  { %13737 = vmatprep.mubr.msk.f32.mxu0 %vm463_vm2, %v6951_v1 }
0x24fd   :  { %13738 = vmatmul.mubr.msk.f32.vlgmr.msra.gmra.mrb[66].mxu0 %vm463_vm2, %v6952_v58 }
0x24fe   :  { %14677 = vmatpush3.bf16.msra.mxu0 %v15382_v48  ;;  %13751 = vmatprep.mubr.msk.f32.mxu0 %vm463_vm2, %v7125_v63 }
0x24ff   :  { %14679 = vmatprep.subr.bf16.mxu0 %v16340_v0 }
0x2501   :  { %13752 = vmatmul.mubr.msk.f32.vlgmr.msra.gmra.mrb[70].mxu0 %vm463_vm2, %v7126_v2 }
0x2502   :  { %14681 = vmatpush3.bf16.msra.mxu0 %v16340_v0  ;;  %v14686_v0 = vpack.c.bf16 %v12138_v17, %v12137_v6  ;;  %v7565_v17 = vrot.slane %v16304_v59, %v15729_v27 }
0x2503   :  { %14690 = vmatprep.subr.bf16.mxu0 %v15382_v48 }
0x2504   :  { %14687 = vmatprep.subr.bf16.mxu1 %v14686_v0 }
0x2505   :  { %14689 = vmatpush3.bf16.msra.mxu1 %v14686_v0 }
0x2506   :  { %14694 = vmatprep.subr.bf16.mxu1 %v15382_v48 }
0x25d4   :  { %v13753_v8 = vpop.f32.mrb[70].mxu0 }
0x25d5   :  { %15162 = vrcp.f32 %v13753_v8  ;;  %v7199_v9 = vpop.f32.mrb[71].mxu0 }
0x25d6   :  { %15164 = vrcp.f32 %v7199_v9 }
0x25df   :  { %v15163_v10 = vpop.eup %15162 }
0x25e0   :  { %v15165_v11 = vpop.eup %15164  ;;  %v7211_v22 = vmul.f32 %v15163_v10, %v7126_v2 }
0x25e1   :  { %v7210_v21 = vmul.f32 %v15165_v11, %v7125_v63 }
0x25e3   :  { %13758 = vmatprep.mubr.msk.f32.mxu0 %vm463_vm2, %v7210_v21  ;;  %v7571_v21 = vrot.slane %v16304_v59, %v15732_v28 }
0x25e4   :  { %13759 = vmatmul.mubr.msk.f32.vlgmr.msra.gmra.mrb[66].mxu0 %vm463_vm2, %v7211_v22 }
0x25e5   :  { %14691 = vmatpush3.bf16.msra.mxu0 %v15382_v48 }
0x25e6   :  { %14692 = vmatprep.subr.bf16.mxu0 %v15382_v48 }
0x25e9   :  { %14693 = vmatpush3.bf16.msra.mxu0 %v15382_v48 }
0x25ea   :  { %14699 = vmatprep.subr.bf16.mxu0 %v14698_v44 }
0x26b7   :  { %v13760_v29 = vpop.f32.mrb[66].mxu0 }
0x26b8   :  { %v7284_v30 = vpop.f32.mrb[67].mxu0 }
0x26b9   :  { %13769 = vmatprep.mubr.msk.f32.mxu1 %vm126_vm0, %v7284_v30 }
0x26ba   :  { %13770 = vmatmul.mubr.msk.f32.vlgmr.msra.gmra.mrb[66].mxu1 %vm126_vm0, %v13760_v29 }
0x26bb   :  { %14695 = vmatpush3.bf16.msra.mxu1 %v15382_v48 }
0x26bc   :  { %14696 = vmatprep.subr.bf16.mxu1 %v15382_v48 }
0x26bf   :  { %14697 = vmatpush3.bf16.msra.mxu1 %v15382_v48 }
0x278d   :  { %v13771_v31 = vpop.f32.mrb[66].mxu1 }
0x278e   :  { %v7377_v34 = vadd.f32 %v13771_v31, %v7298_v12  ;;  %v7371_v13 = vpop.f32.mrb[67].mxu1  ;;  %v12195_v31 = vld [vmem:[%s16972_s5 + $0xf0] sm:$0xff] }
0x278f   :  { %v7372_v14 = vadd.f32 %v7371_v13, %v7298_v12 }
0x2790   :  { %v7381_v36 = vadd.f32 %v7377_v34, %v16285_v33  ;;  %v12190_v33 = vld [vmem:[%s16972_s5 + $0xc8] sm:$0xff]  ;;  %v12196_v34 = vld [vmem:[%s16972_s5 + $0xf8] sm:$0xff] }
0x2791   :  { %v7380_v37 = vadd.f32 %v7372_v14, %v16283_v35  ;;  %v12189_v35 = vld [vmem:[%s16972_s5 + $0xc0] sm:$0xff]  ;;  %v14718_v13 = vpack.c.bf16 %v12196_v34, %v12195_v31  ;;  %v7949_v31 = vrot.slane %v16304_v59, %v15798_v43 }
0x2792   :  { %v7466_v3 = vmul.f32 %v7381_v36, %v7381_v36  ;;  %v14706_v52 = vpack.c.bf16 %v12190_v33, %v12189_v35  ;;  %v12186_v14 = vld [vmem:[%s16971_s4 + $0x3] ss:$0 sm:$0xff] }
0x2793   :  { %v7465_v38 = vmul.f32 %v7380_v37, %v7380_v37  ;;  %13780 = vmatprep.mubr.msk.f32.mxu0 %vm126_vm0, %v7380_v37 }
0x2794   :  { %13781 = vmatmul.mubr.msk.f32.vlgmr.msra.gmra.mrb[72].mxu0 %vm126_vm0, %v7381_v36  ;;  %14707 = vmatprep.subr.bf16.mxu1 %v14706_v52 }
0x2795   :  { %13791 = vmatprep.mubr.msk.f32.mxu1 %vm126_vm0, %v7465_v38  ;;  %14701 = vmatpush3.bf16.msra.mxu0 %v14698_v44  ;;  %v7682_v44 = vrot.slane %v16304_v59, %v15756_v53 }
0x2796   :  { %13792 = vmatmul.mubr.msk.f32.vlgmr.msra.gmra.mrb[68].mxu1 %vm126_vm0, %v7466_v3  ;;  %14703 = vmatprep.subr.bf16.mxu0 %v14702_v47 }
0x2797   :  { %14709 = vmatpush3.bf16.msra.mxu1 %v14706_v52 }
0x2798   :  { %14711 = vmatprep.subr.bf16.mxu1 %v14710_v57 }
0x2799   :  { %14705 = vmatpush3.bf16.msra.mxu0 %v14702_v47 }
0x279a   :  { %14722 = vmatprep.subr.bf16.mxu0 %v15382_v48 }
0x279b   :  { %14713 = vmatpush3.bf16.msra.mxu1 %v14710_v57  ;;  %v12204_v57 = vld [vmem:[%s16968_s1 + $0x200] sm:$0xff] }
0x279c   :  { %14715 = vmatprep.subr.bf16.mxu1 %v14714_v5 }
0x279f   :  { %14717 = vmatpush3.bf16.msra.mxu1 %v14714_v5  ;;  %v14730_v5 = vpack.c.bf16 %v12205_v41, %v12204_v57 }
0x27a0   :  { %14719 = vmatprep.subr.bf16.mxu1 %v14718_v13 }
0x27a3   :  { %14721 = vmatpush3.bf16.msra.mxu1 %v14718_v13 }
0x27a4   :  { %14731 = vmatprep.subr.bf16.mxu1 %v14730_v5 }
0x2867   :  { %v13782_v50 = vpop.f32.mrb[72].mxu0 }
0x2868   :  { %v7464_v60 = vmul.f32 0.03125, %v13782_v50  ;;  %v7454_v54 = vpop.f32.mrb[73].mxu0  ;;  %v12209_v50 = vld [vmem:[%s16968_s1 + $0x228] sm:$0xff] }
0x2869   :  { %v7463_v62 = vmul.f32 0.03125, %v7454_v54  ;;  %v13793_v56 = vpop.f32.mrb[68].mxu1  ;;  %v12207_v54 = vld [vmem:[%s16968_s1 + $0x218] sm:$0xff] }
0x286a   :  { %v7551_v51 = vmul.f32 %v7464_v60, %v7464_v60  ;;  %v7549_v1 = vmul.f32 0.03125, %v13793_v56  ;;  %v7539_v58 = vpop.f32.mrb[69].mxu1  ;;  %v7559_v7 = vsub.f32 %v7381_v36, %v7464_v60  ;;  %v12206_v60 = vld [vmem:[%s16968_s1 + $0x210] sm:$0xff] }
0x286b   :  { %v7550_v61 = vmul.f32 %v7463_v62, %v7463_v62  ;;  %v7548_v63 = vmul.f32 0.03125, %v7539_v58  ;;  %v7558_v8 = vsub.f32 %v7380_v37, %v7463_v62  ;;  %v14738_v62 = vpack.c.bf16 %v12209_v50, %v12208_v15 }
0x286c   :  { %v7553_v2 = vsub.f32 %v7549_v1, %v7551_v51  ;;  %v14734_v56 = vpack.c.bf16 %v12207_v54, %v12206_v60  ;;  %v12210_v51 = vld [vmem:[%s16968_s1 + $0x230] sm:$0xff]  ;;  %v12211_v1 = vld [vmem:[%s16968_s1 + $0x238] sm:$0xff] }
0x286d   :  { %v7552_v32 = vsub.f32 %v7548_v63, %v7550_v61  ;;  %v14742_v58 = vpack.c.bf16 %v12211_v1, %v12210_v51  ;;  %v12212_v61 = vld [vmem:[%s16968_s1 + $0x240] sm:$0xff]  ;;  %v12213_v63 = vld [vmem:[%s16968_s1 + $0x248] sm:$0xff] }
0x286e   :  { %v7555_v4 = vadd.f32 1e-05, %v7553_v2  ;;  %v14746_v2 = vpack.c.bf16 %v12213_v63, %v12212_v61 }
0x286f   :  { %v7554_v6 = vadd.f32 1e-05, %v7552_v32 }
0x2870   :  { %15166 = vrsqrt.f32 %v7555_v4 }
0x2871   :  { %15168 = vrsqrt.f32 %v7554_v6 }
0x287a   :  { %v15167_v0 = vpop.eup %15166 }
0x287b   :  { %v15169_v9 = vpop.eup %15168  ;;  %v7561_v10 = vmul.f32 %v15167_v0, %v7559_v7 }
0x287c   :  { %v7560_v11 = vmul.f32 %v15169_v9, %v7558_v8 }
0x287d   :  { %v7567_v22 = vmul.f32 %v7565_v17, %v7561_v10 }
0x287e   :  { %v7566_v29 = vmul.f32 %v7565_v17, %v7560_v11 }
0x287f   :  { %v7573_v12 = vadd.f32 %v7571_v21, %v7567_v22 }
0x2880   :  { %v7572_v30 = vadd.f32 %v7571_v21, %v7566_v29 }
0x2882   :  { %13802 = vmatprep.mubr.msk.f32.mxu0 %vm126_vm0, %v7572_v30 }
0x2883   :  { %13803 = vmatmul.mubr.msk.f32.vlgmr.msra.gmra.mrb[74].mxu0 %vm126_vm0, %v7573_v12 }
0x2884   :  { %14723 = vmatpush3.bf16.msra.mxu0 %v15382_v48 }
0x2885   :  { %14724 = vmatprep.subr.bf16.mxu0 %v15382_v48 }
0x2888   :  { %14725 = vmatpush3.bf16.msra.mxu0 %v15382_v48 }
0x2889   :  { %14726 = vmatprep.subr.bf16.mxu0 %v15382_v48 }
0x2956   :  { %v13804_v36 = vpop.f32.mrb[74].mxu0 }
0x2957   :  { %v7665_v37 = vadd.f32 %v13804_v36, %v12186_v14  ;;  %v7659_v38 = vpop.f32.mrb[75].mxu0 }
0x2958   :  { %v7660_v3 = vadd.f32 %v12186_v14, %v7659_v38  ;;  %v12203_v38 = vld [vmem:[%s16969_s2 + $0x38] ss:$0 sm:$0xff] }
0x2959   :  { %v7669_v40 = vmax.f32 %v7665_v37, 0.0 }
0x295a   :  { %v7668_v39 = vmax.f32 %v7660_v3, 0.0 }
0x295c   :  { %13821 = vmatprep.mubr.msk.f32.mxu1 %vm1790_vm3, %v7668_v39 }
0x295d   :  { %13822 = vmatmul.mubr.msk.f32.vlgmr.msra.gmra.mrb[70].mxu1 %vm1790_vm3, %v7669_v40  ;;  %v12214_v40 = vld [vmem:[%s16968_s1 + $0x250] sm:$0xff] }
0x295e   :  { %14733 = vmatpush3.bf16.msra.mxu1 %v14730_v5 }
0x295f   :  { %14735 = vmatprep.subr.bf16.mxu1 %v14734_v56 }
0x2962   :  { %14737 = vmatpush3.bf16.msra.mxu1 %v14734_v56 }
0x2963   :  { %14747 = vmatprep.subr.bf16.mxu1 %v14746_v2 }
0x2a30   :  { %v13823_v45 = vpop.f32.mrb[70].mxu1 }
0x2a31   :  { %v7761_v46 = vadd.f32 %v13823_v45, %v7682_v44  ;;  %v7755_v47 = vpop.f32.mrb[71].mxu1 }
0x2a32   :  { %v7756_v35 = vadd.f32 %v7755_v47, %v7682_v44  ;;  %v12215_v44 = vld [vmem:[%s16968_s1 + $0x258] sm:$0xff]  ;;  %v16535_v47 = vld [vmem:[%s16969_s2 + $0x40] sm:$0xff] }
0x2a33   :  { %v7765_v49 = vadd.f32 %v7761_v46, %v7573_v12  ;;  %v14750_v46 = vpack.c.bf16 %v12215_v44, %v12214_v40  ;;  %v8145_v61 = vrot.slane %v16535_v47, %v15552_v19  ;;  %v16578_v44 = vld [vmem:[#allocation8] sm:$0xff] }
0x2a34   :  { %v7764_v33 = vadd.f32 %v7756_v35, %v7572_v30  ;;  %v8066_v35 = vrot.slane %v16535_v47, %v15541_v16 }
0x2a35   :  { %v7850_v55 = vmul.f32 %v7765_v49, %v7765_v49 }
0x2a36   :  { %v7849_v52 = vmul.f32 %v7764_v33, %v7764_v33  ;;  %13832 = vmatprep.mubr.msk.f32.mxu0 %vm126_vm0, %v7764_v33 }
0x2a37   :  { %13833 = vmatmul.mubr.msk.f32.vlgmr.msra.gmra.mrb[76].mxu0 %vm126_vm0, %v7765_v49 }
0x2a38   :  { %14727 = vmatpush3.bf16.msra.mxu0 %v15382_v48  ;;  %13843 = vmatprep.mubr.msk.f32.mxu0 %vm126_vm0, %v7849_v52 }
0x2a39   :  { %14728 = vmatprep.subr.bf16.mxu0 %v15382_v48 }
0x2a3c   :  { %14729 = vmatpush3.bf16.msra.mxu0 %v15382_v48 }
0x2a3d   :  { %14739 = vmatprep.subr.bf16.mxu0 %v14738_v62 }
0x2a3f   :  { %13844 = vmatmul.mubr.msk.f32.vlgmr.msra.gmra.mrb[78].mxu0 %vm126_vm0, %v7850_v55 }
0x2a40   :  { %14741 = vmatpush3.bf16.msra.mxu0 %v14738_v62 }
0x2a41   :  { %14743 = vmatprep.subr.bf16.mxu0 %v14742_v58 }
0x2a44   :  { %14745 = vmatpush3.bf16.msra.mxu0 %v14742_v58 }
0x2b0a   :  { %v13834_v32 = vpop.f32.mrb[76].mxu0 }
0x2b0b   :  { %v7838_v4 = vpop.f32.mrb[77].mxu0  ;;  %v7848_v6 = vmul.f32 0.03125, %v13834_v32 }
0x2b0c   :  { %v7847_v7 = vmul.f32 0.03125, %v7838_v4 }
0x2b0d   :  { %v7935_v0 = vmul.f32 %v7848_v6, %v7848_v6  ;;  %v7943_v12 = vsub.f32 %v7765_v49, %v7848_v6 }
0x2b0e   :  { %v7934_v10 = vmul.f32 %v7847_v7, %v7847_v7  ;;  %v7942_v13 = vsub.f32 %v7764_v33, %v7847_v7  ;;  %v7981_v33 = vrot.slane %v16535_v47, %v15549_v18 }
0x2b12   :  { %v13845_v17 = vpop.f32.mrb[78].mxu0 }
0x2b13   :  { %v7933_v8 = vmul.f32 0.03125, %v13845_v17  ;;  %v7923_v9 = vpop.f32.mrb[79].mxu0 }
0x2b14   :  { %v7932_v11 = vmul.f32 0.03125, %v7923_v9 }
0x2b15   :  { %v7937_v21 = vsub.f32 %v7933_v8, %v7935_v0 }
0x2b16   :  { %v7936_v22 = vsub.f32 %v7932_v11, %v7934_v10 }
0x2b17   :  { %v7939_v29 = vadd.f32 1e-05, %v7937_v21 }
0x2b18   :  { %v7938_v30 = vadd.f32 1e-05, %v7936_v22 }
0x2b19   :  { %15170 = vrsqrt.f32 %v7939_v29 }
0x2b1a   :  { %15172 = vrsqrt.f32 %v7938_v30 }
0x2b23   :  { %v15171_v34 = vpop.eup %15170 }
0x2b24   :  { %v15173_v14 = vpop.eup %15172  ;;  %v7945_v36 = vmul.f32 %v15171_v34, %v7943_v12 }
0x2b25   :  { %v7944_v37 = vmul.f32 %v15173_v14, %v7942_v13 }
0x2b26   :  { %v7951_v3 = vmul.f32 %v7949_v31, %v7945_v36 }
0x2b27   :  { %v7950_v39 = vmul.f32 %v7949_v31, %v7944_v37 }
0x2b28   :  { %v16516_v45 = vadd.f32 %v12203_v38, %v7951_v3 }
0x2b29   :  { %v16514_v59 = vadd.f32 %v12203_v38, %v7950_v39 }
0x2b2b   :  { %13854 = vmatprep.mubr.msk.f32.mxu1 %vm126_vm0, %v16514_v59  ;;  %13865 = vmatprep.mubr.msk.f32.mxu0 %vm126_vm0, %v16514_v59 }
0x2b2c   :  { %13855 = vmatmul.mubr.msk.f32.vlgmr.msra.gmra.mrb[72].mxu1 %vm126_vm0, %v16516_v45  ;;  %13866 = vmatmul.mubr.msk.f32.vlgmr.msra.gmra.mrb[80].mxu0 %vm126_vm0, %v16516_v45 }
0x2b2d   :  { %14749 = vmatpush3.bf16.msra.mxu1 %v14746_v2  ;;  %13876 = vmatprep.mubr.msk.f32.mxu1 %vm126_vm0, %v16514_v59 }
0x2b2e   :  { %14751 = vmatprep.subr.bf16.mxu1 %v14750_v46 }
0x2b31   :  { %14753 = vmatpush3.bf16.msra.mxu1 %v14750_v46 }
0x2b32   :  { %14760 = vmatprep.subr.bf16.mxu1 %v15382_v48 }
0x2b34   :  { %13877 = vmatmul.mubr.msk.f32.vlgmr.msra.gmra.mrb[74].mxu1 %vm126_vm0, %v16516_v45 }
0x2b35   :  { %14761 = vmatpush3.bf16.msra.mxu1 %v15382_v48 }
0x2bff   :  { %v13856_v49 = vpop.f32.mrb[72].mxu1  ;;  %v13867_v52 = vpop.f32.mrb[80].mxu0 }
0x2c00   :  { %v8139_v55 = vadd.f32 %v13867_v52, %v8066_v35  ;;  %v8054_v57 = vpop.f32.mrb[73].mxu1  ;;  %v8133_v41 = vpop.f32.mrb[81].mxu0  ;;  %v8060_v12 = vadd.f32 %v13856_v49, %v7981_v33 }
0x2c01   :  { %v16541_v15 = vadd.f32 %v8054_v57, %v7981_v33  ;;  %v8134_v5 = vadd.f32 %v8133_v41, %v8066_v35  ;;  %v16581_v35 = vld [vmem:[#allocation8 + $0x8] sm:$0xff] }
0x2c02   :  { %v8222_v50 = vmul.f32 %v8139_v55, %v15560_v23  ;;  %v8404_v60 = vmul.f32 %v8139_v55, %v15563_v24  ;;  %v8742_v54 = vmul.f32 %v8139_v55, %v15566_v25  ;;  %v9001_v62 = vmul.f32 %v8139_v55, %v15569_v26 }
0x2c03   :  { %v8221_v56 = vmul.f32 %v8134_v5, %v15560_v23  ;;  %v8403_v51 = vmul.f32 %v8134_v5, %v15563_v24  ;;  %v8741_v1 = vmul.f32 %v8134_v5, %v15566_v25  ;;  %v9000_v58 = vmul.f32 %v8134_v5, %v15569_v26  ;;  %13883 = vmatprep.mubr.msk.f32.mxu0 %vm126_vm0, %v16541_v15 }
0x2c05   :  { %v14754_v63 = vpack.c.bf16 %v8222_v50, %v8221_v56  ;;  %v14762_v2 = vpack.c.bf16 %v8404_v60, %v8403_v51  ;;  %v14778_v32 = vpack.c.bf16 %v8742_v54, %v8741_v1  ;;  %v14790_v4 = vpack.c.bf16 %v9001_v62, %v9000_v58 }
0x2c07   :  { %v13878_v6 = vpop.f32.mrb[74].mxu1  ;;  %14756 = vmatprep.subr.msk.bf16.mxu0 %vm15583_vm1, %v14754_v63  ;;  %14764 = vmatprep.subr.msk.bf16.mxu1 %vm15583_vm1, %v14762_v2 }
0x2c08   :  { %v8218_v7 = vadd.f32 %v13878_v6, %v8145_v61  ;;  %v8212_v17 = vpop.f32.mrb[75].mxu1  ;;  %14759 = vmatpush3.bf16.xpose.msk.msra.mxu0 %vm15583_vm1, %v14754_v63 }
0x2c09   :  { %v8213_v0 = vadd.f32 %v8212_v17, %v8145_v61  ;;  %14768 = vmatprep.subr.bf16.mxu0 %v15382_v48 }
0x2c0a   :  { %v8406_v8 = vmul.f32 %v8218_v7, %v15563_v24  ;;  %v8224_v9 = vmul.f32 %v8218_v7, %v15560_v23  ;;  %v8744_v10 = vmul.f32 %v8218_v7, %v15566_v25  ;;  %v9003_v11 = vmul.f32 %v8218_v7, %v15569_v26 }
0x2c0b   :  { %v8405_v21 = vmul.f32 %v8213_v0, %v15563_v24  ;;  %v8223_v22 = vmul.f32 %v8213_v0, %v15560_v23  ;;  %v8743_v29 = vmul.f32 %v8213_v0, %v15566_v25  ;;  %v9002_v30 = vmul.f32 %v8213_v0, %v15569_v26 }
0x2c0d   :  { %v14770_v31 = vpack.c.bf16 %v8406_v8, %v8405_v21  ;;  %v16570_v34 = vpack.c.bf16 %v8224_v9, %v8223_v22  ;;  %v16572_v13 = vpack.c.bf16 %v8744_v10, %v8743_v29  ;;  %v16574_v14 = vpack.c.bf16 %v9003_v11, %v9002_v30 }
0x2c0f   :  { %13884 = vmatmul.mubr.msk.f32.vlgmr.msra.gmra.mrb[82].mxu0 %vm126_vm0, %v8060_v12 }
0x2c10   :  { %14769 = vmatpush3.bf16.msra.mxu0 %v15382_v48 }
0x2c11   :  { %14771 = vmatprep.subr.bf16.mxu0 %v14770_v31 }
0x2ce2   :  { %v13885_v36 = vpop.f32.mrb[82].mxu0 }
0x2ce3   :  { %v8314_v37 = vmul.f32 1.442695, %v13885_v36  ;;  %v8303_v38 = vpop.f32.mrb[83].mxu0 }
0x2ce4   :  { %v8312_v3 = vmul.f32 1.442695, %v8303_v38 }
0x2ce5   :  { %15174 = vpow2.f32 %v8314_v37 }
0x2ce6   :  { %15176 = vpow2.f32 %v8312_v3 }
0x2cef   :  { %v15175_v39 = vpop.eup %15174 }
0x2cf0   :  { %v15177_v40 = vpop.eup %15176  ;;  %v8317_v33 = vmul.f32 %v16581_v35, %v15175_v39 }
0x2cf1   :  { %v8316_v46 = vmul.f32 %v16578_v44, %v15177_v40 }
0x2cf3   :  { %13890 = vmatprep.mubr.msk.f32.mxu1 %vm463_vm2, %v8316_v46 }
0x2cf4   :  { %13891 = vmatmul.mubr.msk.f32.vlgmr.msra.gmra.mrb[76].mxu1 %vm463_vm2, %v8317_v33 }
0x2cf5   :  { %14767 = vmatpush3.bf16.xpose.msk.msra.mxu1 %vm15583_vm1, %v14762_v2  ;;  %13897 = vmatprep.mubr.msk.f32.mxu1 %vm126_vm0, %v16541_v15 }
0x2cf6   :  { %14780 = vmatprep.subr.msk.bf16.mxu1 %vm15583_vm1, %v14778_v32 }
0x2cfc   :  { %13898 = vmatmul.mubr.msk.f32.vlgmr.msra.gmra.mrb[78].mxu1 %vm126_vm0, %v8060_v12 }
0x2cfd   :  { %14783 = vmatpush3.bf16.xpose.msk.msra.mxu1 %vm15583_vm1, %v14778_v32  ;;  %13925 = vmatprep.mubr.msk.f32.mxu1 %vm126_vm0, %v16541_v15 }
0x2cfe   :  { %14792 = vmatprep.subr.msk.bf16.mxu1 %vm15583_vm1, %v14790_v4 }
0x2d04   :  { %13926 = vmatmul.mubr.msk.f32.vlgmr.msra.gmra.mrb[80].mxu1 %vm126_vm0, %v8060_v12 }
0x2d05   :  { %14795 = vmatpush3.bf16.xpose.msk.msra.mxu1 %vm15583_vm1, %v14790_v4  ;;  %13946 = vmatprep.mubr.msk.f32.mxu1 %vm126_vm0, %v16541_v15 }
0x2d0c   :  { %13947 = vmatmul.mubr.msk.f32.vlgmr.msra.gmra.mrb[82].mxu1 %vm126_vm0, %v8060_v12 }
0x2dc7   :  { %v13892_v49 = vpop.f32.mrb[76].mxu1 }
0x2dc8   :  { %v8390_v52 = vpop.f32.mrb[77].mxu1 }
0x2dcf   :  { %v13899_v55 = vpop.f32.mrb[78].mxu1 }
0x2dd0   :  { %v8490_v57 = vmul.f32 1.442695, %v13899_v55  ;;  %v8479_v41 = vpop.f32.mrb[79].mxu1  ;;  %v12219_v55 = vld [vmem:[%s16968_s1 + $0x278] sm:$0xff] }
0x2dd1   :  { %v8488_v5 = vmul.f32 1.442695, %v8479_v41 }
0x2dd2   :  { %15178 = vpow2.f32 %v8490_v57 }
0x2dd3   :  { %15180 = vpow2.f32 %v8488_v5 }
0x2dd4   :  { %15182 = vrcp.f32 %v8390_v52 }
0x2dd7   :  { %v13927_v50 = vpop.f32.mrb[80].mxu1 }
0x2dd8   :  { %v8817_v60 = vpop.f32.mrb[81].mxu1  ;;  %v8828_v2 = vmul.f32 1.442695, %v13927_v50 }
0x2dd9   :  { %v8826_v63 = vmul.f32 1.442695, %v8817_v60 }
0x2ddc   :  { %v15179_v54 = vpop.eup %15178 }
0x2ddd   :  { %v15181_v62 = vpop.eup %15180  ;;  %v8493_v1 = vmul.f32 %v16581_v35, %v15179_v54 }
0x2dde   :  { %v8492_v56 = vmul.f32 %v16578_v44, %v15181_v62  ;;  %v15183_v32 = vpop.eup %15182 }
0x2ddf   :  { %v13948_v51 = vpop.f32.mrb[82].mxu1  ;;  %v8401_v0 = vmul.f32 %v15183_v32, %v8316_v46  ;;  %v12216_v46 = vld [vmem:[%s16968_s1 + $0x260] sm:$0xff] }
0x2de0   :  { %13904 = vmatprep.mubr.msk.f32.mxu0 %vm463_vm2, %v8492_v56  ;;  %v9076_v15 = vpop.f32.mrb[83].mxu1  ;;  %v9087_v12 = vmul.f32 1.442695, %v13948_v51  ;;  %v9262_v51 = vrot.slane %v16535_v47, %v15555_v20 }
0x2de1   :  { %13905 = vmatmul.mubr.msk.f32.vlgmr.msra.gmra.mrb[84].mxu0 %vm463_vm2, %v8493_v1  ;;  %v9085_v29 = vmul.f32 1.442695, %v9076_v15 }
0x2de2   :  { %14773 = vmatpush3.bf16.msra.mxu0 %v14770_v31 }
0x2de3   :  { %14775 = vmatprep.subr.bf16.mxu0 %v16570_v34 }
0x2eb4   :  { %v13906_v58 = vpop.f32.mrb[84].mxu0 }
0x2eb5   :  { %15184 = vrcp.f32 %v13906_v58  ;;  %v8566_v61 = vpop.f32.mrb[85].mxu0 }
0x2eb6   :  { %15186 = vrcp.f32 %v8566_v61 }
0x2eb7   :  { %15188 = vrcp.f32 %v13892_v49  ;;  %v12218_v49 = vld [vmem:[%s16968_s1 + $0x270] sm:$0xff] }
0x2eb8   :  { %15190 = vpow2.f32 %v8826_v63 }
0x2eb9   :  { %15192 = vpow2.f32 %v8828_v2 }
0x2eba   :  { %15194 = vpow2.f32 %v9085_v29  ;;  %v12274_v29 = vld [vmem:[%s16972_s5 + $0x120] sm:$0xff] }
0x2ebf   :  { %v15185_v4 = vpop.eup %15184 }
0x2ec0   :  { %v15187_v6 = vpop.eup %15186  ;;  %v8578_v17 = vmul.f32 %v15185_v4, %v8493_v1 }
0x2ec1   :  { %v8577_v7 = vmul.f32 %v15187_v6, %v8492_v56  ;;  %v15189_v8 = vpop.eup %15188  ;;  %v9539_v6 = vld [vmem:[#allocation5 + $0x80] sm:$0xff] }
0x2ec2   :  { %v15191_v9 = vpop.eup %15190  ;;  %v8402_v10 = vmul.f32 %v15189_v8, %v8317_v33  ;;  %v12217_v33 = vld [vmem:[%s16968_s1 + $0x268] sm:$0xff] }
0x2ec3   :  { %13911 = vmatprep.mubr.msk.f32.mxu0 %vm463_vm2, %v8577_v7  ;;  %v15193_v11 = vpop.eup %15192  ;;  %v8830_v21 = vmul.f32 %v16578_v44, %v15191_v9  ;;  %v14802_v52 = vpack.c.bf16 %v12217_v33, %v12216_v46  ;;  %v9540_v7 = vld [vmem:[#allocation5 + $0x88] sm:$0xff]  ;;  %v9542_v8 = vld [vmem:[#allocation5 + $0x98] sm:$0xff] }
0x2ec4   :  { %13912 = vmatmul.mubr.msk.f32.vlgmr.msra.gmra.mrb[86].mxu0 %vm463_vm2, %v8578_v17  ;;  %v8831_v22 = vmul.f32 %v16581_v35, %v15193_v11  ;;  %v14818_v17 = vpack.c.bf16 %v9540_v7, %v9539_v6 }
0x2ec5   :  { %14777 = vmatpush3.bf16.msra.mxu0 %v16570_v34  ;;  %13918 = vmatprep.mubr.msk.f32.mxu0 %vm463_vm2, %v8401_v0  ;;  %v15195_v34 = vpop.eup %15194  ;;  %v9541_v0 = vld [vmem:[#allocation5 + $0x90] sm:$0xff] }
0x2ec6   :  { %14784 = vmatprep.subr.bf16.mxu0 %v15382_v48  ;;  %14803 = vmatprep.subr.bf16.mxu1 %v14802_v52  ;;  %v14822_v9 = vpack.c.bf16 %v9542_v8, %v9541_v0  ;;  %v9646_v8 = vrot.slane %v16535_v47, %v15756_v53 }
0x2ec7   :  { %14805 = vmatpush3.bf16.msra.mxu1 %v14802_v52 }
0x2ecc   :  { %13919 = vmatmul.mubr.msk.f32.vlgmr.msra.gmra.mrb[86].mxu0 %vm463_vm2, %v8402_v10  ;;  %v12272_v10 = vld [vmem:[%s16972_s5 + $0x110] sm:$0xff] }
0x2ecd   :  { %14785 = vmatpush3.bf16.msra.mxu0 %v15382_v48  ;;  %13932 = vmatprep.mubr.msk.f32.mxu0 %vm463_vm2, %v8830_v21 }
0x2ece   :  { %14787 = vmatprep.subr.bf16.mxu0 %v16572_v13 }
0x2ed0   :  { %13933 = vmatmul.mubr.msk.f32.vlgmr.msra.gmra.mrb[88].mxu0 %vm463_vm2, %v8831_v22 }
0x2ed1   :  { %14789 = vmatpush3.bf16.msra.mxu0 %v16572_v13  ;;  %v9089_v13 = vmul.f32 %v16578_v44, %v15195_v34 }
0x2ed2   :  { %14796 = vmatprep.subr.bf16.mxu0 %v15382_v48 }
0x2fa3   :  { %v13934_v30 = vpop.f32.mrb[88].mxu0 }
0x2fa4   :  { %15196 = vrcp.f32 %v13934_v30  ;;  %v8904_v31 = vpop.f32.mrb[89].mxu0  ;;  %v12275_v30 = vld [vmem:[%s16972_s5 + $0x128] sm:$0xff] }
0x2fa5   :  { %15198 = vrcp.f32 %v8904_v31 }
0x2fa6   :  { %15200 = vpow2.f32 %v9087_v12  ;;  %v14834_v12 = vpack.c.bf16 %v12275_v30, %v12274_v29  ;;  %v12285_v30 = vld [vmem:[%s16968_s1 + $0x280] sm:$0xff] }
0x2fae   :  { %v15197_v36 = vpop.eup %15196 }
0x2faf   :  { %v15199_v37 = vpop.eup %15198  ;;  %v8916_v3 = vmul.f32 %v15197_v36, %v8831_v22 }
0x2fb0   :  { %v8915_v38 = vmul.f32 %v15199_v37, %v8830_v21  ;;  %v15201_v39 = vpop.eup %15200  ;;  %v12273_v21 = vld [vmem:[%s16972_s5 + $0x118] sm:$0xff] }
0x2fb1   :  { %v9090_v40 = vmul.f32 %v16581_v35, %v15201_v39  ;;  %v14830_v22 = vpack.c.bf16 %v12273_v21, %v12272_v10 }
0x2fb2   :  { %13939 = vmatprep.mubr.msk.f32.mxu0 %vm463_vm2, %v8915_v38 }
0x2fb3   :  { %13940 = vmatmul.mubr.msk.f32.vlgmr.msra.gmra.mrb[86].mxu0 %vm463_vm2, %v8916_v3 }
0x2fb4   :  { %14797 = vmatpush3.bf16.msra.mxu0 %v15382_v48  ;;  %13953 = vmatprep.mubr.msk.f32.mxu0 %vm463_vm2, %v9089_v13 }
0x2fb5   :  { %14799 = vmatprep.subr.bf16.mxu0 %v16574_v14 }
0x2fb7   :  { %13954 = vmatmul.mubr.msk.f32.vlgmr.msra.gmra.mrb[90].mxu0 %vm463_vm2, %v9090_v40 }
0x2fb8   :  { %14801 = vmatpush3.bf16.msra.mxu0 %v16574_v14  ;;  %v14806_v14 = vpack.c.bf16 %v12219_v55, %v12218_v49 }
0x2fb9   :  { %14810 = vmatprep.subr.bf16.mxu0 %v15382_v48 }
0x2fba   :  { %14807 = vmatprep.subr.bf16.mxu1 %v14806_v14 }
0x2fbb   :  { %14809 = vmatpush3.bf16.msra.mxu1 %v14806_v14 }
0x2fbc   :  { %14814 = vmatprep.subr.bf16.mxu1 %v15382_v48 }
0x308a   :  { %v13955_v57 = vpop.f32.mrb[90].mxu0 }
0x308b   :  { %15202 = vrcp.f32 %v13955_v57  ;;  %v9163_v41 = vpop.f32.mrb[91].mxu0  ;;  %v9529_v57 = vrot.slane %v16535_v47, %v15729_v27 }
0x308c   :  { %15204 = vrcp.f32 %v9163_v41 }
0x3095   :  { %v15203_v5 = vpop.eup %15202 }
0x3096   :  { %v15205_v50 = vpop.eup %15204  ;;  %v9175_v54 = vmul.f32 %v15203_v5, %v9090_v40 }
0x3097   :  { %v9174_v60 = vmul.f32 %v15205_v50, %v9089_v13 }
0x3099   :  { %13960 = vmatprep.mubr.msk.f32.mxu0 %vm463_vm2, %v9174_v60 }
0x309a   :  { %13961 = vmatmul.mubr.msk.f32.vlgmr.msra.gmra.mrb[86].mxu0 %vm463_vm2, %v9175_v54 }
0x309b   :  { %14811 = vmatpush3.bf16.msra.mxu0 %v15382_v48 }
0x309c   :  { %14812 = vmatprep.subr.bf16.mxu0 %v15382_v48 }
0x309f   :  { %14813 = vmatpush3.bf16.msra.mxu0 %v15382_v48 }
0x30a0   :  { %14819 = vmatprep.subr.bf16.mxu0 %v14818_v17 }
0x316d   :  { %v13962_v62 = vpop.f32.mrb[86].mxu0 }
0x316e   :  { %v9248_v56 = vpop.f32.mrb[87].mxu0 }
0x316f   :  { %13971 = vmatprep.mubr.msk.f32.mxu1 %vm126_vm0, %v9248_v56 }
0x3170   :  { %13972 = vmatmul.mubr.msk.f32.vlgmr.msra.gmra.mrb[84].mxu1 %vm126_vm0, %v13962_v62  ;;  %v9535_v62 = vrot.slane %v16535_v47, %v15732_v28 }
0x3171   :  { %14815 = vmatpush3.bf16.msra.mxu1 %v15382_v48 }
0x3172   :  { %14816 = vmatprep.subr.bf16.mxu1 %v15382_v48 }
0x3175   :  { %14817 = vmatpush3.bf16.msra.mxu1 %v15382_v48 }
0x3243   :  { %v13973_v1 = vpop.f32.mrb[84].mxu1 }
0x3244   :  { %v9341_v15 = vadd.f32 %v13973_v1, %v9262_v51  ;;  %v9335_v58 = vpop.f32.mrb[85].mxu1 }
0x3245   :  { %v9336_v61 = vadd.f32 %v9335_v58, %v9262_v51  ;;  %v12276_v58 = vld [vmem:[%s16972_s5 + $0x130] sm:$0xff] }
0x3246   :  { %v9345_v63 = vadd.f32 %v9341_v15, %v16516_v45  ;;  %v12271_v45 = vld [vmem:[%s16972_s5 + $0x108] sm:$0xff] }
0x3247   :  { %v9344_v2 = vadd.f32 %v9336_v61, %v16514_v59  ;;  %v12270_v59 = vld [vmem:[%s16972_s5 + $0x100] sm:$0xff]  ;;  %v12277_v61 = vld [vmem:[%s16972_s5 + $0x138] sm:$0xff] }
0x3248   :  { %v9430_v4 = vmul.f32 %v9345_v63, %v9345_v63  ;;  %v14826_v11 = vpack.c.bf16 %v12271_v45, %v12270_v59 }
0x3249   :  { %v9429_v32 = vmul.f32 %v9344_v2, %v9344_v2  ;;  %13982 = vmatprep.mubr.msk.f32.mxu0 %vm126_vm0, %v9344_v2 }
0x324a   :  { %13983 = vmatmul.mubr.msk.f32.vlgmr.msra.gmra.mrb[92].mxu0 %vm126_vm0, %v9345_v63  ;;  %14827 = vmatprep.subr.bf16.mxu1 %v14826_v11 }
0x324b   :  { %13993 = vmatprep.mubr.msk.f32.mxu1 %vm126_vm0, %v9429_v32  ;;  %14821 = vmatpush3.bf16.msra.mxu0 %v14818_v17 }
0x324c   :  { %13994 = vmatmul.mubr.msk.f32.vlgmr.msra.gmra.mrb[86].mxu1 %vm126_vm0, %v9430_v4  ;;  %14823 = vmatprep.subr.bf16.mxu0 %v14822_v9 }
0x324d   :  { %14829 = vmatpush3.bf16.msra.mxu1 %v14826_v11 }
0x324e   :  { %14831 = vmatprep.subr.bf16.mxu1 %v14830_v22 }
0x324f   :  { %14825 = vmatpush3.bf16.msra.mxu0 %v14822_v9 }
0x3250   :  { %14842 = vmatprep.subr.bf16.mxu0 %v15382_v48 }
0x3251   :  { %14833 = vmatpush3.bf16.msra.mxu1 %v14830_v22 }
0x3252   :  { %14835 = vmatprep.subr.bf16.mxu1 %v14834_v12 }
0x3255   :  { %14837 = vmatpush3.bf16.msra.mxu1 %v14834_v12  ;;  %v12286_v12 = vld [vmem:[%s16968_s1 + $0x288] sm:$0xff] }
0x331d   :  { %v13984_v31 = vpop.f32.mrb[92].mxu0 }
0x331e   :  { %v9428_v34 = vmul.f32 0.03125, %v13984_v31  ;;  %v9418_v36 = vpop.f32.mrb[93].mxu0  ;;  %v12289_v31 = vld [vmem:[%s16968_s1 + $0x2a0] sm:$0xff] }
0x331f   :  { %v9427_v37 = vmul.f32 0.03125, %v9418_v36  ;;  %v13995_v38 = vpop.f32.mrb[86].mxu1  ;;  %v12290_v36 = vld [vmem:[%s16968_s1 + $0x2a8] sm:$0xff] }
0x3320   :  { %v9515_v3 = vmul.f32 %v9428_v34, %v9428_v34  ;;  %v9513_v39 = vmul.f32 0.03125, %v13995_v38  ;;  %v9503_v13 = vpop.f32.mrb[87].mxu1  ;;  %v9523_v14 = vsub.f32 %v9345_v63, %v9428_v34  ;;  %v14838_v63 = vpack.c.bf16 %v12277_v61, %v12276_v58  ;;  %v12288_v38 = vld [vmem:[%s16968_s1 + $0x298] sm:$0xff] }
0x3321   :  { %v9514_v40 = vmul.f32 %v9427_v37, %v9427_v37  ;;  %v9512_v46 = vmul.f32 0.03125, %v9503_v13  ;;  %v9522_v5 = vsub.f32 %v9344_v2, %v9427_v37  ;;  %v12267_v2 = vld [vmem:[%s16971_s4 + $0x4] ss:$0 sm:$0xff]  ;;  %v14850_v34 = vpack.c.bf16 %v12286_v12, %v12285_v30  ;;  %v12287_v37 = vld [vmem:[%s16968_s1 + $0x290] sm:$0xff] }
0x3322   :  { %v9517_v33 = vsub.f32 %v9513_v39, %v9515_v3  ;;  %14839 = vmatprep.subr.bf16.mxu1 %v14838_v63  ;;  %v14858_v3 = vpack.c.bf16 %v12290_v36, %v12289_v31  ;;  %v14854_v39 = vpack.c.bf16 %v12288_v38, %v12287_v37  ;;  %v12291_v13 = vld [vmem:[%s16968_s1 + $0x2b0] sm:$0xff] }
0x3323   :  { %v9516_v49 = vsub.f32 %v9512_v46, %v9514_v40  ;;  %14841 = vmatpush3.bf16.msra.mxu1 %v14838_v63  ;;  %v12292_v40 = vld [vmem:[%s16968_s1 + $0x2b8] sm:$0xff]  ;;  %v9913_v63 = vrot.slane %v16535_v47, %v15798_v43 }
0x3324   :  { %v9519_v52 = vadd.f32 1e-05, %v9517_v33  ;;  %14851 = vmatprep.subr.bf16.mxu1 %v14850_v34  ;;  %v14862_v46 = vpack.c.bf16 %v12292_v40, %v12291_v13  ;;  %v12293_v33 = vld [vmem:[%s16968_s1 + $0x2c0] sm:$0xff] }
0x3325   :  { %v9518_v55 = vadd.f32 1e-05, %v9516_v49  ;;  %v12294_v49 = vld [vmem:[%s16968_s1 + $0x2c8] sm:$0xff] }
0x3326   :  { %15206 = vrsqrt.f32 %v9519_v52  ;;  %v14866_v52 = vpack.c.bf16 %v12294_v49, %v12293_v33 }
0x3327   :  { %15208 = vrsqrt.f32 %v9518_v55 }
0x3330   :  { %v15207_v41 = vpop.eup %15206 }
0x3331   :  { %v15209_v50 = vpop.eup %15208  ;;  %v9525_v60 = vmul.f32 %v15207_v41, %v9523_v14 }
0x3332   :  { %v9524_v54 = vmul.f32 %v15209_v50, %v9522_v5 }
0x3333   :  { %v9531_v56 = vmul.f32 %v9529_v57, %v9525_v60 }
0x3334   :  { %v9530_v51 = vmul.f32 %v9529_v57, %v9524_v54 }
0x3335   :  { %v9537_v15 = vadd.f32 %v9535_v62, %v9531_v56 }
0x3336   :  { %v9536_v1 = vadd.f32 %v9535_v62, %v9530_v51 }
0x3338   :  { %14004 = vmatprep.mubr.msk.f32.mxu0 %vm126_vm0, %v9536_v1 }
0x3339   :  { %14005 = vmatmul.mubr.msk.f32.vlgmr.msra.gmra.mrb[94].mxu0 %vm126_vm0, %v9537_v15 }
0x333a   :  { %14843 = vmatpush3.bf16.msra.mxu0 %v15382_v48 }
0x333b   :  { %14844 = vmatprep.subr.bf16.mxu0 %v15382_v48 }
0x333e   :  { %14845 = vmatpush3.bf16.msra.mxu0 %v15382_v48 }
0x333f   :  { %14846 = vmatprep.subr.bf16.mxu0 %v15382_v48 }
0x340c   :  { %v14006_v32 = vpop.f32.mrb[94].mxu0 }
0x340d   :  { %v9629_v4 = vadd.f32 %v14006_v32, %v12267_v2  ;;  %v9623_v6 = vpop.f32.mrb[95].mxu0 }
0x340e   :  { %v9624_v7 = vadd.f32 %v12267_v2, %v9623_v6 }
0x340f   :  { %v9633_v0 = vmax.f32 %v9629_v4, 0.0 }
0x3410   :  { %v9632_v17 = vmax.f32 %v9624_v7, 0.0 }
0x3412   :  { %14023 = vmatprep.mubr.msk.f32.mxu1 %vm1790_vm3, %v9632_v17  ;;  %v12284_v17 = vld [vmem:[%s16969_s2 + $0x48] ss:$0 sm:$0xff] }
0x3413   :  { %14024 = vmatmul.mubr.msk.f32.vlgmr.msra.gmra.mrb[88].mxu1 %vm1790_vm3, %v9633_v0 }
0x3414   :  { %14853 = vmatpush3.bf16.msra.mxu1 %v14850_v34 }
0x3415   :  { %14855 = vmatprep.subr.bf16.mxu1 %v14854_v39 }
0x3418   :  { %14857 = vmatpush3.bf16.msra.mxu1 %v14854_v39 }
0x3419   :  { %14867 = vmatprep.subr.bf16.mxu1 %v14866_v52 }
0x34e6   :  { %v14025_v9 = vpop.f32.mrb[88].mxu1 }
0x34e7   :  { %v9725_v59 = vadd.f32 %v14025_v9, %v9646_v8  ;;  %v9719_v45 = vpop.f32.mrb[89].mxu1  ;;  %v12295_v9 = vld [vmem:[%s16968_s1 + $0x2d0] sm:$0xff] }
0x34e8   :  { %v9720_v10 = vadd.f32 %v9719_v45, %v9646_v8 }
0x34e9   :  { %v9729_v21 = vadd.f32 %v9725_v59, %v9537_v15  ;;  %v12296_v59 = vld [vmem:[%s16968_s1 + $0x2d8] sm:$0xff] }
0x34ea   :  { %v9728_v11 = vadd.f32 %v9720_v10, %v9536_v1  ;;  %v14870_v10 = vpack.c.bf16 %v12296_v59, %v12295_v9 }
0x34eb   :  { %v9814_v29 = vmul.f32 %v9729_v21, %v9729_v21 }
0x34ec   :  { %v9813_v22 = vmul.f32 %v9728_v11, %v9728_v11  ;;  %14034 = vmatprep.mubr.msk.f32.mxu0 %vm126_vm0, %v9728_v11 }
0x34ed   :  { %14035 = vmatmul.mubr.msk.f32.vlgmr.msra.gmra.mrb[96].mxu0 %vm126_vm0, %v9729_v21 }
0x34ee   :  { %14847 = vmatpush3.bf16.msra.mxu0 %v15382_v48  ;;  %14045 = vmatprep.mubr.msk.f32.mxu0 %vm126_vm0, %v9813_v22 }
0x34ef   :  { %14848 = vmatprep.subr.bf16.mxu0 %v15382_v48 }
0x34f2   :  { %14849 = vmatpush3.bf16.msra.mxu0 %v15382_v48 }
0x34f3   :  { %14859 = vmatprep.subr.bf16.mxu0 %v14858_v3 }
0x34f5   :  { %14046 = vmatmul.mubr.msk.f32.vlgmr.msra.gmra.mrb[98].mxu0 %vm126_vm0, %v9814_v29 }
0x34f6   :  { %14861 = vmatpush3.bf16.msra.mxu0 %v14858_v3 }
0x34f7   :  { %14863 = vmatprep.subr.bf16.mxu0 %v14862_v46 }
0x34fa   :  { %14865 = vmatpush3.bf16.msra.mxu0 %v14862_v46 }
0x35c0   :  { %v14036_v55 = vpop.f32.mrb[96].mxu0 }
0x35c1   :  { %v9802_v14 = vpop.f32.mrb[97].mxu0  ;;  %v9812_v57 = vmul.f32 0.03125, %v14036_v55 }
0x35c2   :  { %v9811_v41 = vmul.f32 0.03125, %v9802_v14 }
0x35c3   :  { %v9899_v50 = vmul.f32 %v9812_v57, %v9812_v57  ;;  %v9907_v61 = vsub.f32 %v9729_v21, %v9812_v57 }
0x35c4   :  { %v9898_v62 = vmul.f32 %v9811_v41, %v9811_v41  ;;  %v9906_v32 = vsub.f32 %v9728_v11, %v9811_v41  ;;  %v16776_v11 = vld [vmem:[%s16969_s2 + $0x50] sm:$0xff] }
0x35c5   :  { %v10030_v21 = vrot.slane %v16776_v11, %v15541_v16  ;;  %v9945_v22 = vrot.slane %v16776_v11, %v15549_v18  ;;  %v10109_v33 = vrot.slane %v16776_v11, %v15552_v19 }
0x35c8   :  { %v14047_v5 = vpop.f32.mrb[98].mxu0 }
0x35c9   :  { %v9897_v60 = vmul.f32 0.03125, %v14047_v5  ;;  %v9887_v54 = vpop.f32.mrb[99].mxu0 }
0x35ca   :  { %v9896_v56 = vmul.f32 0.03125, %v9887_v54 }
0x35cb   :  { %v9901_v51 = vsub.f32 %v9897_v60, %v9899_v50 }
0x35cc   :  { %v9900_v1 = vsub.f32 %v9896_v56, %v9898_v62 }
0x35cd   :  { %v9903_v15 = vadd.f32 1e-05, %v9901_v51 }
0x35ce   :  { %v9902_v58 = vadd.f32 1e-05, %v9900_v1 }
0x35cf   :  { %15210 = vrsqrt.f32 %v9903_v15 }
0x35d0   :  { %15212 = vrsqrt.f32 %v9902_v58 }
0x35d9   :  { %v15211_v2 = vpop.eup %15210 }
0x35da   :  { %v15213_v4 = vpop.eup %15212  ;;  %v9909_v6 = vmul.f32 %v15211_v2, %v9907_v61 }
0x35db   :  { %v9908_v7 = vmul.f32 %v15213_v4, %v9906_v32 }
0x35dc   :  { %v9915_v0 = vmul.f32 %v9913_v63, %v9909_v6 }
0x35dd   :  { %v9914_v8 = vmul.f32 %v9913_v63, %v9908_v7 }
0x35de   :  { %v16757_v45 = vadd.f32 %v12284_v17, %v9915_v0 }
0x35df   :  { %v16755_v47 = vadd.f32 %v12284_v17, %v9914_v8 }
0x35e1   :  { %14056 = vmatprep.mubr.msk.f32.mxu1 %vm126_vm0, %v16755_v47  ;;  %14067 = vmatprep.mubr.msk.f32.mxu0 %vm126_vm0, %v16755_v47 }
0x35e2   :  { %14057 = vmatmul.mubr.msk.f32.vlgmr.msra.gmra.mrb[90].mxu1 %vm126_vm0, %v16757_v45  ;;  %14068 = vmatmul.mubr.msk.f32.vlgmr.msra.gmra.mrb[100].mxu0 %vm126_vm0, %v16757_v45 }
0x35e3   :  { %14869 = vmatpush3.bf16.msra.mxu1 %v14866_v52  ;;  %14078 = vmatprep.mubr.msk.f32.mxu1 %vm126_vm0, %v16755_v47 }
0x35e4   :  { %14871 = vmatprep.subr.bf16.mxu1 %v14870_v10 }
0x35e7   :  { %14873 = vmatpush3.bf16.msra.mxu1 %v14870_v10 }
0x35e8   :  { %14880 = vmatprep.subr.bf16.mxu1 %v15382_v48 }
0x35ea   :  { %14079 = vmatmul.mubr.msk.f32.vlgmr.msra.gmra.mrb[92].mxu1 %vm126_vm0, %v16757_v45 }
0x35eb   :  { %14881 = vmatpush3.bf16.msra.mxu1 %v15382_v48 }
0x36b5   :  { %v14058_v29 = vpop.f32.mrb[90].mxu1  ;;  %v14069_v30 = vpop.f32.mrb[100].mxu0 }
0x36b6   :  { %v10103_v12 = vadd.f32 %v14069_v30, %v10030_v21  ;;  %v10018_v31 = vpop.f32.mrb[91].mxu1  ;;  %v10097_v34 = vpop.f32.mrb[101].mxu0  ;;  %v10024_v58 = vadd.f32 %v14058_v29, %v9945_v22 }
0x36b7   :  { %v10019_v36 = vadd.f32 %v10018_v31, %v9945_v22  ;;  %v10098_v37 = vadd.f32 %v10097_v34, %v10030_v21 }
0x36b8   :  { %v10186_v38 = vmul.f32 %v10103_v12, %v15560_v23  ;;  %v10368_v3 = vmul.f32 %v10103_v12, %v15563_v24  ;;  %v10706_v39 = vmul.f32 %v10103_v12, %v15566_v25  ;;  %v10965_v13 = vmul.f32 %v10103_v12, %v15569_v26 }
0x36b9   :  { %v10185_v16 = vmul.f32 %v10098_v37, %v15560_v23  ;;  %v10367_v40 = vmul.f32 %v10098_v37, %v15563_v24  ;;  %v10705_v18 = vmul.f32 %v10098_v37, %v15566_v25  ;;  %v10964_v46 = vmul.f32 %v10098_v37, %v15569_v26  ;;  %14085 = vmatprep.mubr.msk.f32.mxu0 %vm126_vm0, %v10019_v36 }
0x36bb   :  { %v14874_v49 = vpack.c.bf16 %v10186_v38, %v10185_v16  ;;  %v14882_v52 = vpack.c.bf16 %v10368_v3, %v10367_v40  ;;  %v14898_v55 = vpack.c.bf16 %v10706_v39, %v10705_v18  ;;  %v14910_v14 = vpack.c.bf16 %v10965_v13, %v10964_v46 }
0x36bd   :  { %v14080_v57 = vpop.f32.mrb[92].mxu1  ;;  %14876 = vmatprep.subr.msk.bf16.mxu0 %vm15583_vm1, %v14874_v49  ;;  %14884 = vmatprep.subr.msk.bf16.mxu1 %vm15583_vm1, %v14882_v52 }
0x36be   :  { %v10182_v41 = vadd.f32 %v14080_v57, %v10109_v33  ;;  %v10176_v5 = vpop.f32.mrb[93].mxu1  ;;  %14879 = vmatpush3.bf16.xpose.msk.msra.mxu0 %vm15583_vm1, %v14874_v49 }
0x36bf   :  { %v10177_v50 = vadd.f32 %v10176_v5, %v10109_v33  ;;  %14888 = vmatprep.subr.bf16.mxu0 %v15382_v48 }
0x36c0   :  { %v10370_v19 = vmul.f32 %v10182_v41, %v15563_v24  ;;  %v10188_v60 = vmul.f32 %v10182_v41, %v15560_v23  ;;  %v10708_v54 = vmul.f32 %v10182_v41, %v15566_v25  ;;  %v10967_v62 = vmul.f32 %v10182_v41, %v15569_v26 }
0x36c1   :  { %v10369_v56 = vmul.f32 %v10177_v50, %v15563_v24  ;;  %v10187_v51 = vmul.f32 %v10177_v50, %v15560_v23  ;;  %v10707_v1 = vmul.f32 %v10177_v50, %v15566_v25  ;;  %v10966_v15 = vmul.f32 %v10177_v50, %v15569_v26 }
0x36c3   :  { %v14890_v61 = vpack.c.bf16 %v10370_v19, %v10369_v56  ;;  %v16808_v63 = vpack.c.bf16 %v10188_v60, %v10187_v51  ;;  %v16810_v2 = vpack.c.bf16 %v10708_v54, %v10707_v1  ;;  %v16812_v32 = vpack.c.bf16 %v10967_v62, %v10966_v15 }
0x36c5   :  { %14086 = vmatmul.mubr.msk.f32.vlgmr.msra.gmra.mrb[102].mxu0 %vm126_vm0, %v10024_v58 }
0x36c6   :  { %14889 = vmatpush3.bf16.msra.mxu0 %v15382_v48 }
0x36c7   :  { %14891 = vmatprep.subr.bf16.mxu0 %v14890_v61 }
0x3798   :  { %v14087_v24 = vpop.f32.mrb[102].mxu0 }
0x3799   :  { %v10278_v4 = vmul.f32 1.442695, %v14087_v24  ;;  %v10267_v23 = vpop.f32.mrb[103].mxu0 }
0x379a   :  { %v10276_v6 = vmul.f32 1.442695, %v10267_v23 }
0x379b   :  { %15214 = vpow2.f32 %v10278_v4 }
0x379c   :  { %15216 = vpow2.f32 %v10276_v6 }
0x37a5   :  { %v15215_v25 = vpop.eup %15214 }
0x37a6   :  { %v15217_v26 = vpop.eup %15216  ;;  %v10281_v17 = vmul.f32 %v16581_v35, %v15215_v25 }
0x37a7   :  { %v10280_v7 = vmul.f32 %v16578_v44, %v15217_v26 }
0x37a9   :  { %14092 = vmatprep.mubr.msk.f32.mxu1 %vm463_vm2, %v10280_v7 }
0x37aa   :  { %14093 = vmatmul.mubr.msk.f32.vlgmr.msra.gmra.mrb[94].mxu1 %vm463_vm2, %v10281_v17 }
0x37ab   :  { %14887 = vmatpush3.bf16.xpose.msk.msra.mxu1 %vm15583_vm1, %v14882_v52  ;;  %14099 = vmatprep.mubr.msk.f32.mxu1 %vm126_vm0, %v10019_v36 }
0x37ac   :  { %14900 = vmatprep.subr.msk.bf16.mxu1 %vm15583_vm1, %v14898_v55 }
0x37b2   :  { %14100 = vmatmul.mubr.msk.f32.vlgmr.msra.gmra.mrb[96].mxu1 %vm126_vm0, %v10024_v58 }
0x37b3   :  { %14903 = vmatpush3.bf16.xpose.msk.msra.mxu1 %vm15583_vm1, %v14898_v55  ;;  %14127 = vmatprep.mubr.msk.f32.mxu1 %vm126_vm0, %v10019_v36 }
0x37b4   :  { %14912 = vmatprep.subr.msk.bf16.mxu1 %vm15583_vm1, %v14910_v14 }
0x37ba   :  { %14128 = vmatmul.mubr.msk.f32.vlgmr.msra.gmra.mrb[98].mxu1 %vm126_vm0, %v10024_v58 }
0x37bb   :  { %14915 = vmatpush3.bf16.xpose.msk.msra.mxu1 %vm15583_vm1, %v14910_v14  ;;  %14148 = vmatprep.mubr.msk.f32.mxu1 %vm126_vm0, %v10019_v36 }
0x37c2   :  { %14149 = vmatmul.mubr.msk.f32.vlgmr.msra.gmra.mrb[100].mxu1 %vm126_vm0, %v10024_v58 }
0x387d   :  { %v14094_v0 = vpop.f32.mrb[94].mxu1 }
0x387e   :  { %v10354_v8 = vpop.f32.mrb[95].mxu1 }
0x3885   :  { %v14101_v9 = vpop.f32.mrb[96].mxu1 }
0x3886   :  { %v10454_v59 = vmul.f32 1.442695, %v14101_v9  ;;  %v10443_v10 = vpop.f32.mrb[97].mxu1 }
0x3887   :  { %v10452_v21 = vmul.f32 1.442695, %v10443_v10 }
0x3888   :  { %15218 = vpow2.f32 %v10454_v59 }
0x3889   :  { %15220 = vpow2.f32 %v10452_v21 }
0x388a   :  { %15222 = vrcp.f32 %v10354_v8  ;;  %v11226_v8 = vrot.slane %v16776_v11, %v15555_v20  ;;  %v11504_v20 = vld [vmem:[#allocation5 + $0xa8] sm:$0xff] }
0x388d   :  { %v14129_v22 = vpop.f32.mrb[98].mxu1 }
0x388e   :  { %v10781_v29 = vpop.f32.mrb[99].mxu1  ;;  %v10792_v39 = vmul.f32 1.442695, %v14129_v22 }
0x388f   :  { %v10790_v3 = vmul.f32 1.442695, %v10781_v29 }
0x3892   :  { %v15219_v30 = vpop.eup %15218 }
0x3893   :  { %v15221_v12 = vpop.eup %15220  ;;  %v10457_v34 = vmul.f32 %v16581_v35, %v15219_v30 }
0x3894   :  { %v10456_v31 = vmul.f32 %v16578_v44, %v15221_v12  ;;  %v15223_v13 = vpop.eup %15222 }
0x3895   :  { %v14150_v42 = vpop.f32.mrb[100].mxu1  ;;  %v10365_v33 = vmul.f32 %v15223_v13, %v10280_v7 }
0x3896   :  { %14106 = vmatprep.mubr.msk.f32.mxu0 %vm463_vm2, %v10456_v31  ;;  %v11040_v36 = vpop.f32.mrb[101].mxu1  ;;  %v11051_v19 = vmul.f32 1.442695, %v14150_v42 }
0x3897   :  { %14107 = vmatmul.mubr.msk.f32.vlgmr.msra.gmra.mrb[104].mxu0 %vm463_vm2, %v10457_v34  ;;  %v11049_v5 = vmul.f32 1.442695, %v11040_v36  ;;  %v11506_v36 = vld [vmem:[#allocation5 + $0xb8] sm:$0xff] }
0x3898   :  { %14893 = vmatpush3.bf16.msra.mxu0 %v14890_v61 }
0x3899   :  { %14895 = vmatprep.subr.bf16.mxu0 %v16808_v63 }
0x396a   :  { %v14108_v37 = vpop.f32.mrb[104].mxu0 }
0x396b   :  { %15224 = vrcp.f32 %v14108_v37  ;;  %v10530_v38 = vpop.f32.mrb[105].mxu0 }
0x396c   :  { %15226 = vrcp.f32 %v10530_v38  ;;  %v12353_v38 = vld [vmem:[%s16972_s5 + $0x150] sm:$0xff] }
0x396d   :  { %15228 = vrcp.f32 %v14094_v0 }
0x396e   :  { %15230 = vpow2.f32 %v10790_v3 }
0x396f   :  { %15232 = vpow2.f32 %v10792_v39  ;;  %v12354_v39 = vld [vmem:[%s16972_s5 + $0x158] sm:$0xff] }
0x3970   :  { %15234 = vpow2.f32 %v11049_v5  ;;  %v14950_v13 = vpack.c.bf16 %v12354_v39, %v12353_v38 }
0x3975   :  { %v15225_v16 = vpop.eup %15224 }
0x3976   :  { %v15227_v40 = vpop.eup %15226  ;;  %v10542_v46 = vmul.f32 %v15225_v16, %v10457_v34  ;;  %v11505_v34 = vld [vmem:[#allocation5 + $0xb0] sm:$0xff] }
0x3977   :  { %v10541_v18 = vmul.f32 %v15227_v40, %v10456_v31  ;;  %v15229_v49 = vpop.eup %15228  ;;  %v11503_v31 = vld [vmem:[#allocation5 + $0xa0] sm:$0xff]  ;;  %v14942_v37 = vpack.c.bf16 %v11506_v36, %v11505_v34  ;;  %v12355_v16 = vld [vmem:[%s16972_s5 + $0x160] sm:$0xff]  ;;  %v12356_v40 = vld [vmem:[%s16972_s5 + $0x168] sm:$0xff] }
0x3978   :  { %v15231_v52 = vpop.eup %15230  ;;  %v10366_v55 = vmul.f32 %v15229_v49, %v10281_v17  ;;  %v14938_v42 = vpack.c.bf16 %v11504_v20, %v11503_v31 }
0x3979   :  { %14113 = vmatprep.mubr.msk.f32.mxu0 %vm463_vm2, %v10541_v18  ;;  %v15233_v14 = vpop.eup %15232  ;;  %v10794_v57 = vmul.f32 %v16578_v44, %v15231_v52  ;;  %v14954_v18 = vpack.c.bf16 %v12356_v40, %v12355_v16  ;;  %v11877_v40 = vrot.slane %v16776_v11, %v15798_v43 }
0x397a   :  { %14114 = vmatmul.mubr.msk.f32.vlgmr.msra.gmra.mrb[106].mxu0 %vm463_vm2, %v10542_v46  ;;  %v10795_v41 = vmul.f32 %v16581_v35, %v15233_v14  ;;  %v15235_v54 = vpop.eup %15234 }
0x397b   :  { %14897 = vmatpush3.bf16.msra.mxu0 %v16808_v63  ;;  %14120 = vmatprep.mubr.msk.f32.mxu0 %vm463_vm2, %v10365_v33  ;;  %v11053_v58 = vmul.f32 %v16578_v44, %v15235_v54  ;;  %v12297_v44 = vld [vmem:[%s16968_s1 + $0x2e0] sm:$0xff]  ;;  %v12298_v63 = vld [vmem:[%s16968_s1 + $0x2e8] sm:$0xff] }
0x397c   :  { %14904 = vmatprep.subr.bf16.mxu0 %v15382_v48  ;;  %v14922_v24 = vpack.c.bf16 %v12298_v63, %v12297_v44  ;;  %v11499_v63 = vrot.slane %v16776_v11, %v15732_v28  ;;  %v12358_v28 = vld [vmem:[%s16972_s5 + $0x178] sm:$0xff] }
0x397e   :  { %14923 = vmatprep.subr.bf16.mxu1 %v14922_v24 }
0x397f   :  { %14925 = vmatpush3.bf16.msra.mxu1 %v14922_v24 }
0x3982   :  { %14121 = vmatmul.mubr.msk.f32.vlgmr.msra.gmra.mrb[106].mxu0 %vm463_vm2, %v10366_v55 }
0x3983   :  { %14905 = vmatpush3.bf16.msra.mxu0 %v15382_v48  ;;  %14134 = vmatprep.mubr.msk.f32.mxu0 %vm463_vm2, %v10794_v57 }
0x3984   :  { %14907 = vmatprep.subr.bf16.mxu0 %v16810_v2 }
0x3986   :  { %14135 = vmatmul.mubr.msk.f32.vlgmr.msra.gmra.mrb[108].mxu0 %vm463_vm2, %v10795_v41 }
0x3987   :  { %14909 = vmatpush3.bf16.msra.mxu0 %v16810_v2  ;;  %v12299_v2 = vld [vmem:[%s16968_s1 + $0x2f0] sm:$0xff] }
0x3988   :  { %14916 = vmatprep.subr.bf16.mxu0 %v15382_v48 }
0x3a59   :  { %v14136_v50 = vpop.f32.mrb[108].mxu0 }
0x3a5a   :  { %15236 = vrcp.f32 %v14136_v50  ;;  %v10868_v60 = vpop.f32.mrb[109].mxu0 }
0x3a5b   :  { %15238 = vrcp.f32 %v10868_v60 }
0x3a5c   :  { %15240 = vpow2.f32 %v11051_v19 }
0x3a64   :  { %v15237_v62 = vpop.eup %15236 }
0x3a65   :  { %v15239_v56 = vpop.eup %15238  ;;  %v10880_v1 = vmul.f32 %v15237_v62, %v10795_v41 }
0x3a66   :  { %v10879_v51 = vmul.f32 %v15239_v56, %v10794_v57  ;;  %v15241_v15 = vpop.eup %15240 }
0x3a67   :  { %v11054_v61 = vmul.f32 %v16581_v35, %v15241_v15  ;;  %v12300_v35 = vld [vmem:[%s16968_s1 + $0x2f8] sm:$0xff] }
0x3a68   :  { %14141 = vmatprep.mubr.msk.f32.mxu0 %vm463_vm2, %v10879_v51  ;;  %v11493_v51 = vrot.slane %v16776_v11, %v15729_v27  ;;  %v12357_v27 = vld [vmem:[%s16972_s5 + $0x170] sm:$0xff] }
0x3a69   :  { %14142 = vmatmul.mubr.msk.f32.vlgmr.msra.gmra.mrb[106].mxu0 %vm463_vm2, %v10880_v1 }
0x3a6a   :  { %14917 = vmatpush3.bf16.msra.mxu0 %v15382_v48  ;;  %14155 = vmatprep.mubr.msk.f32.mxu0 %vm463_vm2, %v11053_v58 }
0x3a6b   :  { %14919 = vmatprep.subr.bf16.mxu0 %v16812_v32 }
0x3a6d   :  { %14156 = vmatmul.mubr.msk.f32.vlgmr.msra.gmra.mrb[110].mxu0 %vm463_vm2, %v11054_v61 }
0x3a6e   :  { %14921 = vmatpush3.bf16.msra.mxu0 %v16812_v32  ;;  %v14926_v32 = vpack.c.bf16 %v12300_v35, %v12299_v2 }
0x3a6f   :  { %14930 = vmatprep.subr.bf16.mxu0 %v15382_v48 }
0x3a70   :  { %14927 = vmatprep.subr.bf16.mxu1 %v14926_v32 }
0x3a71   :  { %14929 = vmatpush3.bf16.msra.mxu1 %v14926_v32 }
0x3a72   :  { %14934 = vmatprep.subr.bf16.mxu1 %v15382_v48 }
0x3b40   :  { %v14157_v4 = vpop.f32.mrb[110].mxu0 }
0x3b41   :  { %15242 = vrcp.f32 %v14157_v4  ;;  %v11127_v23 = vpop.f32.mrb[111].mxu0  ;;  %v14958_v4 = vpack.c.bf16 %v12358_v28, %v12357_v27 }
0x3b42   :  { %15244 = vrcp.f32 %v11127_v23  ;;  %v12348_v23 = vld [vmem:[%s16971_s4 + $0x5] ss:$0 sm:$0xff] }
0x3b4b   :  { %v15243_v6 = vpop.eup %15242 }
0x3b4c   :  { %v15245_v25 = vpop.eup %15244  ;;  %v11139_v7 = vmul.f32 %v15243_v6, %v11054_v61 }
0x3b4d   :  { %v11138_v26 = vmul.f32 %v15245_v25, %v11053_v58 }
0x3b4f   :  { %14162 = vmatprep.mubr.msk.f32.mxu0 %vm463_vm2, %v11138_v26 }
0x3b50   :  { %14163 = vmatmul.mubr.msk.f32.vlgmr.msra.gmra.mrb[106].mxu0 %vm463_vm2, %v11139_v7 }
0x3b51   :  { %14931 = vmatpush3.bf16.msra.mxu0 %v15382_v48 }
0x3b52   :  { %14932 = vmatprep.subr.bf16.mxu0 %v15382_v48 }
0x3b55   :  { %14933 = vmatpush3.bf16.msra.mxu0 %v15382_v48 }
0x3b56   :  { %14939 = vmatprep.subr.bf16.mxu0 %v14938_v42 }
0x3c23   :  { %v14164_v17 = vpop.f32.mrb[106].mxu0 }
0x3c24   :  { %v11212_v0 = vpop.f32.mrb[107].mxu0 }
0x3c25   :  { %14173 = vmatprep.mubr.msk.f32.mxu1 %vm126_vm0, %v11212_v0 }
0x3c26   :  { %14174 = vmatmul.mubr.msk.f32.vlgmr.msra.gmra.mrb[102].mxu1 %vm126_vm0, %v14164_v17 }
0x3c27   :  { %14935 = vmatpush3.bf16.msra.mxu1 %v15382_v48 }
0x3c28   :  { %14936 = vmatprep.subr.bf16.mxu1 %v15382_v48 }
0x3c2b   :  { %14937 = vmatpush3.bf16.msra.mxu1 %v15382_v48 }
0x3cf9   :  { %v14175_v9 = vpop.f32.mrb[102].mxu1 }
0x3cfa   :  { %v11305_v59 = vadd.f32 %v14175_v9, %v11226_v8  ;;  %v11299_v10 = vpop.f32.mrb[103].mxu1 }
0x3cfb   :  { %v11300_v21 = vadd.f32 %v11299_v10, %v11226_v8  ;;  %v11610_v8 = vrot.slane %v16776_v11, %v15756_v53 }
0x3cfc   :  { %v11309_v22 = vadd.f32 %v11305_v59, %v16757_v45  ;;  %v12352_v45 = vld [vmem:[%s16972_s5 + $0x148] sm:$0xff] }
0x3cfd   :  { %v11308_v29 = vadd.f32 %v11300_v21, %v16755_v47  ;;  %v12351_v47 = vld [vmem:[%s16972_s5 + $0x140] sm:$0xff] }
0x3cfe   :  { %v11394_v12 = vmul.f32 %v11309_v22, %v11309_v22  ;;  %v14946_v3 = vpack.c.bf16 %v12352_v45, %v12351_v47 }
0x3cff   :  { %v11393_v30 = vmul.f32 %v11308_v29, %v11308_v29  ;;  %14184 = vmatprep.mubr.msk.f32.mxu0 %vm126_vm0, %v11308_v29 }
0x3d00   :  { %14185 = vmatmul.mubr.msk.f32.vlgmr.msra.gmra.mrb[112].mxu0 %vm126_vm0, %v11309_v22  ;;  %14947 = vmatprep.subr.bf16.mxu1 %v14946_v3 }
0x3d01   :  { %14195 = vmatprep.mubr.msk.f32.mxu1 %vm126_vm0, %v11393_v30  ;;  %14941 = vmatpush3.bf16.msra.mxu0 %v14938_v42 }
0x3d02   :  { %14196 = vmatmul.mubr.msk.f32.vlgmr.msra.gmra.mrb[104].mxu1 %vm126_vm0, %v11394_v12  ;;  %14943 = vmatprep.subr.bf16.mxu0 %v14942_v37 }
0x3d03   :  { %14949 = vmatpush3.bf16.msra.mxu1 %v14946_v3 }
0x3d04   :  { %14951 = vmatprep.subr.bf16.mxu1 %v14950_v13 }
0x3d05   :  { %14945 = vmatpush3.bf16.msra.mxu0 %v14942_v37 }
0x3d06   :  { %14962 = vmatprep.subr.bf16.mxu0 %v15382_v48 }
0x3d07   :  { %14953 = vmatpush3.bf16.msra.mxu1 %v14950_v13 }
0x3d08   :  { %14955 = vmatprep.subr.bf16.mxu1 %v14954_v18 }
0x3d0b   :  { %14957 = vmatpush3.bf16.msra.mxu1 %v14954_v18 }
0x3d0c   :  { %14959 = vmatprep.subr.bf16.mxu1 %v14958_v4 }
0x3d0f   :  { %14961 = vmatpush3.bf16.msra.mxu1 %v14958_v4 }
0x3dd3   :  { %v14186_v46 = vpop.f32.mrb[112].mxu0 }
0x3dd4   :  { %v11392_v33 = vmul.f32 0.03125, %v14186_v46  ;;  %v11382_v49 = vpop.f32.mrb[113].mxu0 }
0x3dd5   :  { %v11391_v52 = vmul.f32 0.03125, %v11382_v49  ;;  %v14197_v55 = vpop.f32.mrb[104].mxu1 }
0x3dd6   :  { %v11479_v14 = vmul.f32 %v11392_v33, %v11392_v33  ;;  %v11477_v57 = vmul.f32 0.03125, %v14197_v55  ;;  %v11467_v41 = vpop.f32.mrb[105].mxu1  ;;  %v11487_v56 = vsub.f32 %v11309_v22, %v11392_v33 }
0x3dd7   :  { %v11478_v5 = vmul.f32 %v11391_v52, %v11391_v52  ;;  %v11476_v50 = vmul.f32 0.03125, %v11467_v41  ;;  %v11486_v15 = vsub.f32 %v11308_v29, %v11391_v52  ;;  %v12365_v52 = vld [vmem:[%s16969_s2 + $0x58] ss:$0 sm:$0xff] }
0x3dd8   :  { %v11481_v19 = vsub.f32 %v11477_v57, %v11479_v14 }
0x3dd9   :  { %v11480_v60 = vsub.f32 %v11476_v50, %v11478_v5 }
0x3dda   :  { %v11483_v54 = vadd.f32 1e-05, %v11481_v19 }
0x3ddb   :  { %v11482_v62 = vadd.f32 1e-05, %v11480_v60 }
0x3ddc   :  { %15246 = vrsqrt.f32 %v11483_v54 }
0x3ddd   :  { %15248 = vrsqrt.f32 %v11482_v62 }
0x3de6   :  { %v15247_v1 = vpop.eup %15246 }
0x3de7   :  { %v15249_v58 = vpop.eup %15248  ;;  %v11489_v61 = vmul.f32 %v15247_v1, %v11487_v56 }
0x3de8   :  { %v11488_v44 = vmul.f32 %v15249_v58, %v11486_v15 }
0x3de9   :  { %v11495_v2 = vmul.f32 %v11493_v51, %v11489_v61 }
0x3dea   :  { %v11494_v24 = vmul.f32 %v11493_v51, %v11488_v44 }
0x3deb   :  { %v11501_v32 = vadd.f32 %v11499_v63, %v11495_v2 }
0x3dec   :  { %v11500_v35 = vadd.f32 %v11499_v63, %v11494_v24 }
0x3dee   :  { %14206 = vmatprep.mubr.msk.f32.mxu0 %vm126_vm0, %v11500_v35 }
0x3def   :  { %14207 = vmatmul.mubr.msk.f32.vlgmr.msra.gmra.mrb[114].mxu0 %vm126_vm0, %v11501_v32 }
0x3df0   :  { %14963 = vmatpush3.bf16.msra.mxu0 %v15382_v48 }
0x3df1   :  { %14964 = vmatprep.subr.bf16.mxu0 %v15382_v48 }
0x3df4   :  { %14965 = vmatpush3.bf16.msra.mxu0 %v15382_v48 }
0x3df5   :  { %14966 = vmatprep.subr.bf16.mxu0 %v15382_v48 }
0x3ec2   :  { %v14208_v6 = vpop.f32.mrb[114].mxu0 }
0x3ec3   :  { %v11593_v25 = vadd.f32 %v14208_v6, %v12348_v23  ;;  %v11587_v26 = vpop.f32.mrb[115].mxu0 }
0x3ec4   :  { %v11588_v7 = vadd.f32 %v12348_v23, %v11587_v26 }
0x3ec5   :  { %v11597_v0 = vmax.f32 %v11593_v25, 0.0 }
0x3ec6   :  { %v11596_v17 = vmax.f32 %v11588_v7, 0.0 }
0x3ec8   :  { %14225 = vmatprep.mubr.msk.f32.mxu1 %vm1790_vm3, %v11596_v17 }
0x3ec9   :  { %14226 = vmatmul.mubr.msk.f32.vlgmr.msra.gmra.mrb[106].mxu1 %vm1790_vm3, %v11597_v0 }
0x3f9c   :  { %v14227_v9 = vpop.f32.mrb[106].mxu1 }
0x3f9d   :  { %v11689_v59 = vadd.f32 %v14227_v9, %v11610_v8  ;;  %v11683_v10 = vpop.f32.mrb[107].mxu1 }
0x3f9e   :  { %v11684_v21 = vadd.f32 %v11683_v10, %v11610_v8 }
0x3f9f   :  { %v11693_v29 = vadd.f32 %v11689_v59, %v11501_v32 }
0x3fa0   :  { %v11692_v22 = vadd.f32 %v11684_v21, %v11500_v35 }
0x3fa1   :  { %v11778_v53 = vmul.f32 %v11693_v29, %v11693_v29 }
0x3fa2   :  { %v11777_v30 = vmul.f32 %v11692_v22, %v11692_v22  ;;  %14236 = vmatprep.mubr.msk.f32.mxu0 %vm126_vm0, %v11692_v22 }
0x3fa3   :  { %14237 = vmatmul.mubr.msk.f32.vlgmr.msra.gmra.mrb[116].mxu0 %vm126_vm0, %v11693_v29 }
0x3fa4   :  { %14967 = vmatpush3.bf16.msra.mxu0 %v15382_v48  ;;  %14247 = vmatprep.mubr.msk.f32.mxu0 %vm126_vm0, %v11777_v30 }
0x3fa5   :  { %14968 = vmatprep.subr.bf16.mxu0 %v15382_v48 }
0x3fa8   :  { %14969 = vmatpush3.bf16.msra.mxu0 %v15382_v48 }
0x3fab   :  { %14248 = vmatmul.mubr.msk.f32.vlgmr.msra.gmra.mrb[118].mxu0 %vm126_vm0, %v11778_v53 }
0x4076   :  { %v14238_v12 = vpop.f32.mrb[116].mxu0 }
0x4077   :  { %v11766_v31 = vpop.f32.mrb[117].mxu0  ;;  %v11776_v20 = vmul.f32 0.03125, %v14238_v12 }
0x4078   :  { %v11775_v42 = vmul.f32 0.03125, %v11766_v31 }
0x4079   :  { %v11863_v36 = vmul.f32 %v11776_v20, %v11776_v20  ;;  %v11871_v48 = vsub.f32 %v11693_v29, %v11776_v20 }
0x407a   :  { %v11862_v45 = vmul.f32 %v11775_v42, %v11775_v42  ;;  %v11870_v46 = vsub.f32 %v11692_v22, %v11775_v42 }
0x407e   :  { %v14249_v34 = vpop.f32.mrb[118].mxu0 }
0x407f   :  { %v11861_v37 = vmul.f32 0.03125, %v14249_v34  ;;  %v11851_v47 = vpop.f32.mrb[119].mxu0 }
0x4080   :  { %v11860_v38 = vmul.f32 0.03125, %v11851_v47 }
0x4081   :  { %v11865_v3 = vsub.f32 %v11861_v37, %v11863_v36 }
0x4082   :  { %v11864_v39 = vsub.f32 %v11860_v38, %v11862_v45 }
0x4083   :  { %v11867_v13 = vadd.f32 1e-05, %v11865_v3 }
0x4084   :  { %v11866_v16 = vadd.f32 1e-05, %v11864_v39 }
0x4085   :  { %15250 = vrsqrt.f32 %v11867_v13 }
0x4086   :  { %15252 = vrsqrt.f32 %v11866_v16 }
0x408f   :  { %v15251_v18 = vpop.eup %15250 }
0x4090   :  { %v15253_v33 = vpop.eup %15252  ;;  %v11873_v49 = vmul.f32 %v15251_v18, %v11871_v48 }
0x4091   :  { %v11872_v55 = vmul.f32 %v15253_v33, %v11870_v46 }
0x4092   :  { %v11879_v14 = vmul.f32 %v11877_v40, %v11873_v49 }
0x4093   :  { %v11878_v57 = vmul.f32 %v11877_v40, %v11872_v55 }
0x4094   :  { %v11885_v41 = vadd.f32 %v12365_v52, %v11879_v14 }
0x4095   :  { %v11884_v5 = vadd.f32 %v12365_v52, %v11878_v57 }
0x4096   :  { %11887 = vst.msk [vmem:[#allocation10 + $0x8] sm:$0xff] %vm126_vm0, %v11885_v41 }
0x4097   :  { %11886 = vst.msk [vmem:[#allocation10] sm:$0xff] %vm126_vm0, %v11884_v5 }
0x4098   :  { %15357 = shalt.err (!%p15354_p8)
}
0x4099   :  { %s15358_s22 = scalar_lea.hbm %s16975_s8, 256 }
0x409a   :  { %p15359_p9 = scmp.ne.s32.totalorder %s16975_s8, %s15358_s22  ;;  %p15362_p10 = scmp.lt.u32.totalorder %s15358_s22, %s16975_s8 }
0x409c   :  { %p15364_p11 = pnand %p15362_p10, %p15359_p9 }
0x409e   :  { %15367 = shalt.err (!%p15364_p11)
}
0x409f   :  { %11899 = dma.vmem_to_hbm [thread:$0]  %s11894_s21, 256, %s16975_s8, [#allocation4], %s15378_s17, %s15378_s17, %s15379_s18  }
0x40a0   :  { %15374 = dma.done.wait [#allocation4], 256  }
0x40a1   :  { %15375 = vsyncadd [#allocation4], 4294967040 }
0x40a2   :  { %11903 = vsyncpa [#allocation3], 1 }
0x40a3   :  { %11904 = vsyncpa [#allocation6], 1 }
0x40a4   :  { %11905 = vsyncpa [#allocation9], 1 }
0x40a5   :  { %11906 = vsyncpa [#allocation4], 1 }

</bundles_post_ra>
